<compile_context>
chip_gen: v7x
topology: tpu7x:2x2x1
jax: 0.10.0
libtpu: 0.0.40
codegen_flags: <defaults>
</compile_context>

<pallas_src>
import jax
import jax.numpy as jnp
from jax import lax
from jax.experimental import pallas as pl
from jax.experimental.pallas import tpu as pltpu


# Set to jnp.bfloat16 on v6e/v7x to feed the bf16-native MXU (matmul inputs
# cast to bf16, accumulation stays f32, LayerNorm/sigmoid/tanh stay f32).
# Default f32 keeps numerics identical to the PyTorch fp32 module.
MATMUL_DTYPE = jnp.float32


# ----------------------------------------------------------------------------
# tiling helpers (always return sizes that divide exactly and satisfy the
# (8, 128) block constraints)
# ----------------------------------------------------------------------------
def _pick_row_tile(n, target=512):
    """Row tile: multiple of 8 that divides n, close to `target` (or n itself)."""
    if n <= target:
        return n
    t = target - (target % 8)
    while t >= 8:
        if n % t == 0:
            return t
        t -= 8
    return n


def _pick_time_chunk(s, target=16):
    """Time-steps per grid iteration for the GRU kernel (must divide S)."""
    if s <= target:
        return s
    t = target
    while t > 1:
        if s % t == 0:
            return t
        t -= 1
    return 1


def _pick_f_chunk(f, target=2048):
    """Static chunk of the FFN hidden width F (multiple of 128 dividing F)."""
    if f <= target:
        return f
    c = target - (target % 128)
    while c >= 128:
        if f % c == 0:
            return c
        c -= 128
    return f


# ----------------------------------------------------------------------------
# Kernel A: fused (downsample ∘ layer-1 input projection), per-gate outputs.
#   gi[g] = x @ W_comb[g] + b_comb[g]          g in [r, z, n]
# Row-tiled over N = S*B, weights resident, "parallel" grid axis.
# ----------------------------------------------------------------------------
def _gate_proj_kernel(x_ref, w_ref, b_ref, o_ref):
    x = x_ref[...].astype(MATMUL_DTYPE)
    for g in range(3):  # static unroll over gates [r, z, n]
        y = jnp.dot(x, w_ref[g].astype(MATMUL_DTYPE),
                    preferred_element_type=jnp.float32)
        o_ref[g] = (y + b_ref[g]).astype(o_ref.dtype)


def gate_input_projection(x2d, w, b, *, row_tile=512):
    N, D = x2d.shape
    H = w.shape[-1]
    tn = _pick_row_tile(N, row_tile)
    return pl.pallas_call(
        _gate_proj_kernel,
        out_shape=jax.ShapeDtypeStruct((3, N, H), x2d.dtype),
        grid_spec=pltpu.PrefetchScalarGridSpec(
            num_scalar_prefetch=0,
            grid=(N // tn,),
            in_specs=[
                pl.BlockSpec((tn, D), lambda i: (i, 0)),
                pl.BlockSpec((3, D, H), lambda i: (0, 0, 0)),
                pl.BlockSpec((3, 1, H), lambda i: (0, 0, 0)),
            ],
            out_specs=pl.BlockSpec((3, tn, H), lambda i: (0, i, 0)),
        ),
        compiler_params=pltpu.CompilerParams(
            dimension_semantics=("parallel",)),
    )(x2d, w, b)


# ----------------------------------------------------------------------------
# Kernel B: fused 2-layer GRU recurrence, chunked over time.
# Gate order matches PyTorch [r, z, n]:
#   r = sigmoid(gi_r + h W_hr + b_hr)
#   z = sigmoid(gi_z + h W_hz + b_hz)
#   n = tanh   (gi_n + r * (h W_hn + b_hn))
#   h' = (1 - z) * n + z * h
# Layer-1's gi comes precomputed from Kernel A; layer-2's gi = h1 @ W_ih2 + b
# is recurrence-dependent and stays inside the loop.  Hidden states persist in
# VMEM scratch across grid iterations (chunks); reset at chunk 0.
# ----------------------------------------------------------------------------
def _gru2_kernel(gi_ref, whh1_ref, bhh1_ref, wih2_ref, bih2_ref,
                 whh2_ref, bhh2_ref, o_ref, h1_ref, h2_ref):
    c = pl.program_id(0)
    T = o_ref.shape[0]

    @pl.when(c == 0)
    def _():
        h1_ref[...] = jnp.zeros_like(h1_ref)
        h2_ref[...] = jnp.zeros_like(h2_ref)

    def cell(gr, gz, gn, h, whh_ref, bhh_ref):
        # recurrence kept in f32 for numerical fidelity (dots are tiny)
        hr = jnp.dot(h, whh_ref[0], preferred_element_type=jnp.float32) + bhh_ref[0]
        hz = jnp.dot(h, whh_ref[1], preferred_element_type=jnp.float32) + bhh_ref[1]
        hn = jnp.dot(h, whh_ref[2], preferred_element_type=jnp.float32) + bhh_ref[2]
        r = jax.nn.sigmoid(gr + hr)
        z = jax.nn.sigmoid(gz + hz)
        n = jnp.tanh(gn + r * hn)
        return (1.0 - z) * n + z * h

    def step(t, carry):
        h1, h2 = carry
        # layer 1: input projection was hoisted out of the recurrence
        gr = gi_ref[0, t].astype(jnp.float32)
        gz = gi_ref[1, t].astype(jnp.float32)
        gn = gi_ref[2, t].astype(jnp.float32)
        h1 = cell(gr, gz, gn, h1, whh1_ref, bhh1_ref)
        # layer 2: input projection depends on recurrent h1 -> stays in-loop
        ir = jnp.dot(h1, wih2_ref[0], preferred_element_type=jnp.float32) + bih2_ref[0]
        iz = jnp.dot(h1, wih2_ref[1], preferred_element_type=jnp.float32) + bih2_ref[1]
        inn = jnp.dot(h1, wih2_ref[2], preferred_element_type=jnp.float32) + bih2_ref[2]
        h2 = cell(ir, iz, inn, h2, whh2_ref, bhh2_ref)
        o_ref[t] = h2.astype(o_ref.dtype)
        return h1, h2

    h1, h2 = lax.fori_loop(0, T, step, (h1_ref[...], h2_ref[...]), unroll=True)
    h1_ref[...] = h1
    h2_ref[...] = h2


def gru_two_layer(gi, whh1, bhh1, wih2, bih2, whh2, bhh2, *, time_chunk=16):
    _, S, B, H = gi.shape
    T = _pick_time_chunk(S, time_chunk)
    w_spec = pl.BlockSpec((3, H, H), lambda c: (0, 0, 0))
    b_spec = pl.BlockSpec((3, 1, H), lambda c: (0, 0, 0))
    return pl.pallas_call(
        _gru2_kernel,
        out_shape=jax.ShapeDtypeStruct((S, B, H), gi.dtype),
        grid_spec=pltpu.PrefetchScalarGridSpec(
            num_scalar_prefetch=0,
            grid=(S // T,),
            in_specs=[
                pl.BlockSpec((3, T, B, H), lambda c: (0, c, 0, 0)),
                w_spec, b_spec,   # layer-1 hidden weights / biases
                w_spec, b_spec,   # layer-2 input  weights / biases
                w_spec, b_spec,   # layer-2 hidden weights / biases
            ],
            out_specs=pl.BlockSpec((T, B, H), lambda c: (c, 0, 0)),
            scratch_shapes=[pltpu.VMEM((B, H), jnp.float32),   # h layer 1
                            pltpu.VMEM((B, H), jnp.float32)],  # h layer 2
        ),
        compiler_params=pltpu.CompilerParams(
            dimension_semantics=("arbitrary",)),  # sequential recurrence
    )(gi, whh1, bhh1, wih2, bih2, whh2, bhh2)


# ----------------------------------------------------------------------------
# Kernel C: fused LayerNorm1 -> Linear1+ReLU -> Linear2 -> residual add ->
#           LayerNorm2.  Row-tiled; static chunk loop over F keeps the
#           (tile_N, F) intermediate bounded for large d_model.
# ----------------------------------------------------------------------------
def _ffn_ln_kernel(g_ref, res_ref, ln1g_ref, ln1b_ref, w1_ref, b1_ref,
                   w2_ref, b2_ref, ln2g_ref, ln2b_ref, o_ref):
    eps = 1e-5

    x = g_ref[...].astype(jnp.float32)
    mu = jnp.mean(x, axis=-1, keepdims=True)
    var = jnp.mean(jnp.square(x - mu), axis=-1, keepdims=True)
    y = (x - mu) * lax.rsqrt(var + eps) * ln1g_ref[...] + ln1b_ref[...]

    F = w1_ref.shape[1]
    fc = _pick_f_chunk(F)
    y_mm = y.astype(MATMUL_DTYPE)
    h2 = jnp.zeros((y.shape[0], w2_ref.shape[1]), jnp.float32)
    for f0 in range(0, F, fc):  # static chunking of the FFN hidden width
        h1 = jnp.dot(y_mm, w1_ref[:, f0:f0 + fc].astype(MATMUL_DTYPE),
                     preferred_element_type=jnp.float32) + b1_ref[:, f0:f0 + fc]
        h1 = jnp.maximum(h1, 0.0)
        h2 = h2 + jnp.dot(h1.astype(MATMUL_DTYPE),
                          w2_ref[f0:f0 + fc, :].astype(MATMUL_DTYPE),
                          preferred_element_type=jnp.float32)
    h2 = h2 + b2_ref[...]

    z = res_ref[...].astype(jnp.float32) + h2
    mu2 = jnp.mean(z, axis=-1, keepdims=True)
    var2 = jnp.mean(jnp.square(z - mu2), axis=-1, keepdims=True)
    out = (z - mu2) * lax.rsqrt(var2 + eps) * ln2g_ref[...] + ln2b_ref[...]

    o_ref[...] = out.astype(o_ref.dtype)


def ffn_layernorm(gru2d, res2d, ln1_g, ln1_b, w1, b1, w2, b2, ln2_g, ln2_b,
                  *, row_tile=256):
    N, H = gru2d.shape
    D = res2d.shape[1]
    F = w1.shape[1]
    tn = _pick_row_tile(N, row_tile)
    return pl.pallas_call(
        _ffn_ln_kernel,
        out_shape=jax.ShapeDtypeStruct((N, D), res2d.dtype),
        grid_spec=pltpu.PrefetchScalarGridSpec(
            num_scalar_prefetch=0,
            grid=(N // tn,),
            in_specs=[
                pl.BlockSpec((tn, H), lambda i: (i, 0)),
                pl.BlockSpec((tn, D), lambda i: (i, 0)),
                pl.BlockSpec((1, H), lambda i: (0, 0)),
                pl.BlockSpec((1, H), lambda i: (0, 0)),
                pl.BlockSpec((H, F), lambda i: (0, 0)),
                pl.BlockSpec((1, F), lambda i: (0, 0)),
                pl.BlockSpec((F, D), lambda i: (0, 0)),
                pl.BlockSpec((1, D), lambda i: (0, 0)),
                pl.BlockSpec((1, D), lambda i: (0, 0)),
                pl.BlockSpec((1, D), lambda i: (0, 0)),
            ],
            out_specs=pl.BlockSpec((tn, D), lambda i: (i, 0)),
        ),
        compiler_params=pltpu.CompilerParams(
            dimension_semantics=("parallel",)),
    )(gru2d, res2d, ln1_g.reshape(1, H), ln1_b.reshape(1, H),
      w1, b1.reshape(1, F), w2, b2.reshape(1, D),
      ln2_g.reshape(1, D), ln2_b.reshape(1, D))


# ----------------------------------------------------------------------------
# Full forward pass
# ----------------------------------------------------------------------------
def residual_lstm_forward(x, kparams):
    S, B, D = x.shape
    H = kparams["whh1"].shape[-1]

    x2d = x.reshape(S * B, D)          # residual kept as the raw input rows

    # (downsample ∘ GRU layer-1 input projection), hoisted out of recurrence
    gi = gate_input_projection(x2d, kparams["gate_w"], kparams["gate_b"])
    gi = gi.reshape(3, S, B, H)        # free reshape (rows are S-major)

    # fused 2-layer GRU recurrence (inter-layer dropout = identity in eval)
    h = gru_two_layer(gi,
                      kparams["whh1"], kparams["bhh1"],
                      kparams["wih2"], kparams["bih2"],
                      kparams["whh2"], kparams["bhh2"])

    # norm1 -> linear1+relu -> linear2 -> residual -> norm2 (fused kernel)
    out2d = ffn_layernorm(
        h.reshape(S * B, H), x2d,
        kparams["ln1_g"], kparams["ln1_b"],
        kparams["w1"], kparams["b1"],
        kparams["w2"], kparams["b2"],
        kparams["ln2_g"], kparams["ln2_b"])
    return out2d.reshape(S, B, D)


# ----------------------------------------------------------------------------
# Deterministic parameter init (shapes follow the PyTorch module's __init__).
# NOTE on importing real PyTorch weights: nn.GRU stores weight_ih_l{k} /
# weight_hh_l{k} as (3H, in) with gate blocks in [r, z, n] order; they must be
# split per gate and TRANSPOSED to (in, H) to match this layout.  nn.Linear
# weights ((out, in)) must likewise be transposed to (in, out).
# ----------------------------------------------------------------------------
def init_params(d_model, key):
    H = d_model // 2
    F = d_model * 4
    ks = list(jax.random.split(key, 16))

    def u(k, shape, fan_in):
        bound = 1.0 / (fan_in ** 0.5)
        return jax.random.uniform(k, shape, jnp.float32, -bound, bound)

    params = {
        "down_w": u(ks[0], (d_model, H), d_model),   # (in, out)
        "down_b": u(ks[1], (H,), d_model),
        "gru": [],
        "ln1_g": jnp.ones((H,), jnp.float32),
        "ln1_b": jnp.zeros((H,), jnp.float32),
        "w1": u(ks[2], (H, F), H),
        "b1": u(ks[3], (F,), H),
        "w2": u(ks[4], (F, d_model), F),
        "b2": u(ks[5], (d_model,), F),
        "ln2_g": jnp.ones((d_model,), jnp.float32),
        "ln2_b": jnp.zeros((d_model,), jnp.float32),
    }
    idx = 6
    for _ in range(2):  # num_layers = 2
        params["gru"].append({
            # per-gate stacked [r, z, n], each (in, H)
            "w_ih": u(ks[idx + 0], (3, H, H), H),
            "w_hh": u(ks[idx + 1], (3, H, H), H),
            "b_ih": u(ks[idx + 2], (3, H), H),
            "b_hh": u(ks[idx + 3], (3, H), H),
        })
        idx += 4
    return params


def prepare_params(params):
    """One-time prep: fold the downsample Linear into layer-1's input
    projection (valid in eval mode — no op sits between them)."""
    H = params["down_w"].shape[1]
    l1, l2 = params["gru"]
    gate_w = jnp.einsum("dh,ghk->gdk", params["down_w"], l1["w_ih"])       # (3, D, H)
    gate_b = jnp.einsum("h,ghk->gk", params["down_b"], l1["w_ih"]) + l1["b_ih"]
    return {
        "gate_w": gate_w,
        "gate_b": gate_b.reshape(3, 1, H),
        "whh1": l1["w_hh"], "bhh1": l1["b_hh"].reshape(3, 1, H),
        "wih2": l2["w_ih"], "bih2": l2["b_ih"].reshape(3, 1, H),
        "whh2": l2["w_hh"], "bhh2": l2["b_hh"].reshape(3, 1, H),
        "ln1_g": params["ln1_g"], "ln1_b": params["ln1_b"],
        "w1": params["w1"], "b1": params["b1"],
        "w2": params["w2"], "b2": params["b2"],
        "ln2_g": params["ln2_g"], "ln2_b": params["ln2_b"],
    }


if __name__ == "__main__":
    d_model = 32          # H = 16, FFN width = 128
    S, B = 8, 2           # seq = 8, batch = 2

    root = jax.random.PRNGKey(0)
    kx, kw = jax.random.split(root)
    x = jax.random.normal(kx, (S, B, d_model), jnp.float32)
    params = init_params(d_model, kw)
    kparams = prepare_params(params)

    fwd = jax.jit(residual_lstm_forward)
    y = fwd(x, kparams)
    jax.block_until_ready(y)
    assert y.shape == (S, B, d_model)
    print("KERNEL_OK")
</pallas_src>

<mosaic_0001>
module attributes {stable_mosaic.version = 11 : i64} {
  func.func @_gate_proj_kernel(%arg0: i32, %arg1: memref<16x32xf32, #tpu.memory_space<vmem>>, %arg2: memref<3x32x16xf32, #tpu.memory_space<vmem>>, %arg3: memref<3x1x16xf32, #tpu.memory_space<vmem>>, %arg4: memref<3x16x16xf32, #tpu.memory_space<vmem>>) attributes {dimension_semantics = [#tpu.dimension_semantics<parallel>], iteration_bounds = array<i64: 1>, scalar_prefetch = 0 : i64, scratch_operands = 0 : i64, tpu.core_type = #tpu.core_type<tc>, window_params = [{transform_indices = @transform_0, window_bounds = array<i64: 16, 32>}, {pipeline_mode = #tpu.pipeline_mode<synchronous>, transform_indices = @transform_1, window_bounds = array<i64: 3, 32, 16>}, {pipeline_mode = #tpu.pipeline_mode<synchronous>, transform_indices = @transform_2, window_bounds = array<i64: 3, 1, 16>}, {transform_indices = @transform_3, window_bounds = array<i64: 3, 16, 16>}]} {
    %c0 = arith.constant 0 : index
    %c0_0 = arith.constant 0 : index
    %0 = vector.load %arg1[%c0, %c0_0] : memref<16x32xf32, #tpu.memory_space<vmem>>, vector<16x32xf32>
    %c0_1 = arith.constant 0 : index
    %c0_2 = arith.constant 0 : index
    %c0_3 = arith.constant 0 : index
    %1 = vector.load %arg2[%c0_1, %c0_2, %c0_3] : memref<3x32x16xf32, #tpu.memory_space<vmem>>, vector<1x32x16xf32>
    %2 = vector.shape_cast %1 : vector<1x32x16xf32> to vector<32x16xf32>
    %cst = arith.constant dense<0.000000e+00> : vector<16x16xf32>
    %3 = tpu.matmul %0, %2, %cst {dimension_numbers = #tpu.dot_dimension_numbers<[1], [0], [0], [1], [0, 0, 1, 1], [], []>} : vector<16x32xf32>, vector<32x16xf32>, vector<16x16xf32> -> vector<16x16xf32>
    %c0_4 = arith.constant 0 : index
    %c0_5 = arith.constant 0 : index
    %c0_6 = arith.constant 0 : index
    %4 = vector.load %arg3[%c0_4, %c0_5, %c0_6] : memref<3x1x16xf32, #tpu.memory_space<vmem>>, vector<1x1x16xf32>
    %5 = vector.shape_cast %4 : vector<1x1x16xf32> to vector<1x16xf32>
    %6 = vector.broadcast %5 : vector<1x16xf32> to vector<16x16xf32>
    %7 = arith.addf %3, %6 : vector<16x16xf32>
    %c0_7 = arith.constant 0 : index
    %c0_8 = arith.constant 0 : index
    %c0_9 = arith.constant 0 : index
    %8 = vector.load %arg4[%c0_7, %c0_8, %c0_9] : memref<3x16x16xf32, #tpu.memory_space<vmem>>, vector<1x16x16xf32>
    %9 = vector.shape_cast %8 : vector<1x16x16xf32> to vector<16x16xf32>
    %10 = vector.shape_cast %7 : vector<16x16xf32> to vector<1x16x16xf32>
    tpu.vector_store %arg4[%c0_7, %c0_8, %c0_9], %10 {strides = array<i32>} : memref<3x16x16xf32, #tpu.memory_space<vmem>>, vector<1x16x16xf32>,
    %c1 = arith.constant 1 : index
    %c0_10 = arith.constant 0 : index
    %c0_11 = arith.constant 0 : index
    %11 = vector.load %arg2[%c1, %c0_10, %c0_11] : memref<3x32x16xf32, #tpu.memory_space<vmem>>, vector<1x32x16xf32>
    %12 = vector.shape_cast %11 : vector<1x32x16xf32> to vector<32x16xf32>
    %cst_12 = arith.constant dense<0.000000e+00> : vector<16x16xf32>
    %13 = tpu.matmul %0, %12, %cst_12 {dimension_numbers = #tpu.dot_dimension_numbers<[1], [0], [0], [1], [0, 0, 1, 1], [], []>} : vector<16x32xf32>, vector<32x16xf32>, vector<16x16xf32> -> vector<16x16xf32>
    %c1_13 = arith.constant 1 : index
    %c0_14 = arith.constant 0 : index
    %c0_15 = arith.constant 0 : index
    %14 = vector.load %arg3[%c1_13, %c0_14, %c0_15] : memref<3x1x16xf32, #tpu.memory_space<vmem>>, vector<1x1x16xf32>
    %15 = vector.shape_cast %14 : vector<1x1x16xf32> to vector<1x16xf32>
    %16 = vector.broadcast %15 : vector<1x16xf32> to vector<16x16xf32>
    %17 = arith.addf %13, %16 : vector<16x16xf32>
    %c1_16 = arith.constant 1 : index
    %c0_17 = arith.constant 0 : index
    %c0_18 = arith.constant 0 : index
    %18 = vector.load %arg4[%c1_16, %c0_17, %c0_18] : memref<3x16x16xf32, #tpu.memory_space<vmem>>, vector<1x16x16xf32>
    %19 = vector.shape_cast %18 : vector<1x16x16xf32> to vector<16x16xf32>
    %20 = vector.shape_cast %17 : vector<16x16xf32> to vector<1x16x16xf32>
    tpu.vector_store %arg4[%c1_16, %c0_17, %c0_18], %20 {strides = array<i32>} : memref<3x16x16xf32, #tpu.memory_space<vmem>>, vector<1x16x16xf32>,
    %c2 = arith.constant 2 : index
    %c0_19 = arith.constant 0 : index
    %c0_20 = arith.constant 0 : index
    %21 = vector.load %arg2[%c2, %c0_19, %c0_20] : memref<3x32x16xf32, #tpu.memory_space<vmem>>, vector<1x32x16xf32>
    %22 = vector.shape_cast %21 : vector<1x32x16xf32> to vector<32x16xf32>
    %cst_21 = arith.constant dense<0.000000e+00> : vector<16x16xf32>
    %23 = tpu.matmul %0, %22, %cst_21 {dimension_numbers = #tpu.dot_dimension_numbers<[1], [0], [0], [1], [0, 0, 1, 1], [], []>} : vector<16x32xf32>, vector<32x16xf32>, vector<16x16xf32> -> vector<16x16xf32>
    %c2_22 = arith.constant 2 : index
    %c0_23 = arith.constant 0 : index
    %c0_24 = arith.constant 0 : index
    %24 = vector.load %arg3[%c2_22, %c0_23, %c0_24] : memref<3x1x16xf32, #tpu.memory_space<vmem>>, vector<1x1x16xf32>
    %25 = vector.shape_cast %24 : vector<1x1x16xf32> to vector<1x16xf32>
    %26 = vector.broadcast %25 : vector<1x16xf32> to vector<16x16xf32>
    %27 = arith.addf %23, %26 : vector<16x16xf32>
    %c2_25 = arith.constant 2 : index
    %c0_26 = arith.constant 0 : index
    %c0_27 = arith.constant 0 : index
    %28 = vector.load %arg4[%c2_25, %c0_26, %c0_27] : memref<3x16x16xf32, #tpu.memory_space<vmem>>, vector<1x16x16xf32>
    %29 = vector.shape_cast %28 : vector<1x16x16xf32> to vector<16x16xf32>
    %30 = vector.shape_cast %27 : vector<16x16xf32> to vector<1x16x16xf32>
    tpu.vector_store %arg4[%c2_25, %c0_26, %c0_27], %30 {strides = array<i32>} : memref<3x16x16xf32, #tpu.memory_space<vmem>>, vector<1x16x16xf32>,
    return
  }
  func.func @transform_0(%arg0: i32) -> (i32, i32) {
    %c0_i32 = arith.constant 0 : i32
    %c0_i32_0 = arith.constant 0 : i32
    return %arg0, %c0_i32 : i32, i32
  }
  func.func @transform_1(%arg0: i32) -> (i32, i32, i32) {
    %c0_i32 = arith.constant 0 : i32
    %c0_i32_0 = arith.constant 0 : i32
    %c0_i32_1 = arith.constant 0 : i32
    %c0_i32_2 = arith.constant 0 : i32
    return %c0_i32, %c0_i32_0, %c0_i32_1 : i32, i32, i32
  }
  func.func @transform_2(%arg0: i32) -> (i32, i32, i32) {
    %c0_i32 = arith.constant 0 : i32
    %c0_i32_0 = arith.constant 0 : i32
    %c0_i32_1 = arith.constant 0 : i32
    %c0_i32_2 = arith.constant 0 : i32
    return %c0_i32, %c0_i32_0, %c0_i32_1 : i32, i32, i32
  }
  func.func @transform_3(%arg0: i32) -> (i32, i32, i32) {
    %c0_i32 = arith.constant 0 : i32
    %c0_i32_0 = arith.constant 0 : i32
    %c0_i32_1 = arith.constant 0 : i32
    return %c0_i32, %arg0, %c0_i32_0 : i32, i32, i32
  }
}

module attributes {stable_mosaic.version = 11 : i64} {
  func.func @_ffn_ln_kernel(%arg0: i32, %arg1: memref<16x16xf32, #tpu.memory_space<vmem>>, %arg2: memref<16x32xf32, #tpu.memory_space<vmem>>, %arg3: memref<1x16xf32, #tpu.memory_space<vmem>>, %arg4: memref<1x16xf32, #tpu.memory_space<vmem>>, %arg5: memref<16x128xf32, #tpu.memory_space<vmem>>, %arg6: memref<1x128xf32, #tpu.memory_space<vmem>>, %arg7: memref<128x32xf32, #tpu.memory_space<vmem>>, %arg8: memref<1x32xf32, #tpu.memory_space<vmem>>, %arg9: memref<1x32xf32, #tpu.memory_space<vmem>>, %arg10: memref<1x32xf32, #tpu.memory_space<vmem>>, %arg11: memref<16x32xf32, #tpu.memory_space<vmem>>) attributes {dimension_semantics = [#tpu.dimension_semantics<parallel>], iteration_bounds = array<i64: 1>, scalar_prefetch = 0 : i64, scratch_operands = 0 : i64, tpu.core_type = #tpu.core_type<tc>, window_params = [{transform_indices = @transform_0, window_bounds = array<i64: 16, 16>}, {transform_indices = @transform_1, window_bounds = array<i64: 16, 32>}, {pipeline_mode = #tpu.pipeline_mode<synchronous>, transform_indices = @transform_2, window_bounds = array<i64: 1, 16>}, {pipeline_mode = #tpu.pipeline_mode<synchronous>, transform_indices = @transform_3, window_bounds = array<i64: 1, 16>}, {pipeline_mode = #tpu.pipeline_mode<synchronous>, transform_indices = @transform_4, window_bounds = array<i64: 16, 128>}, {pipeline_mode = #tpu.pipeline_mode<synchronous>, transform_indices = @transform_5, window_bounds = array<i64: 1, 128>}, {pipeline_mode = #tpu.pipeline_mode<synchronous>, transform_indices = @transform_6, window_bounds = array<i64: 128, 32>}, {pipeline_mode = #tpu.pipeline_mode<synchronous>, transform_indices = @transform_7, window_bounds = array<i64: 1, 32>}, {pipeline_mode = #tpu.pipeline_mode<synchronous>, transform_indices = @transform_8, window_bounds = array<i64: 1, 32>}, {pipeline_mode = #tpu.pipeline_mode<synchronous>, transform_indices = @transform_9, window_bounds = array<i64: 1, 32>}, {transform_indices = @transform_10, window_bounds = array<i64: 16, 32>}]} {
    %c0 = arith.constant 0 : index
    %c0_0 = arith.constant 0 : index
    %0 = vector.load %arg1[%c0, %c0_0] : memref<16x16xf32, #tpu.memory_space<vmem>>, vector<16x16xf32>
    %cst = arith.constant dense<0.000000e+00> : vector<16xf32>
    %1 = vector.multi_reduction <add>, %0, %cst [1] : vector<16x16xf32> to vector<16xf32>
    %2 = vector.shape_cast %1 : vector<16xf32> to vector<16x1xf32>
    %cst_1 = arith.constant 1.600000e+01 : f32
    %3 = vector.broadcast %cst_1 : f32 to vector<16x1xf32>
    %4 = arith.divf %2, %3 : vector<16x1xf32>
    %5 = vector.broadcast %4 : vector<16x1xf32> to vector<16x16xf32>
    %6 = arith.subf %0, %5 : vector<16x16xf32>
    %7 = arith.mulf %6, %6 : vector<16x16xf32>
    %cst_2 = arith.constant dense<0.000000e+00> : vector<16xf32>
    %8 = vector.multi_reduction <add>, %7, %cst_2 [1] : vector<16x16xf32> to vector<16xf32>
    %9 = vector.shape_cast %8 : vector<16xf32> to vector<16x1xf32>
    %cst_3 = arith.constant 1.600000e+01 : f32
    %10 = vector.broadcast %cst_3 : f32 to vector<16x1xf32>
    %11 = arith.divf %9, %10 : vector<16x1xf32>
    %12 = vector.broadcast %4 : vector<16x1xf32> to vector<16x16xf32>
    %13 = arith.subf %0, %12 : vector<16x16xf32>
    %cst_4 = arith.constant 9.99999974E-6 : f32
    %14 = vector.broadcast %cst_4 : f32 to vector<16x1xf32>
    %15 = arith.addf %11, %14 : vector<16x1xf32>
    %16 = math.rsqrt %15 : vector<16x1xf32>
    %17 = vector.broadcast %16 : vector<16x1xf32> to vector<16x16xf32>
    %18 = arith.mulf %13, %17 : vector<16x16xf32>
    %c0_5 = arith.constant 0 : index
    %c0_6 = arith.constant 0 : index
    %19 = vector.load %arg3[%c0_5, %c0_6] : memref<1x16xf32, #tpu.memory_space<vmem>>, vector<1x16xf32>
    %20 = vector.broadcast %19 : vector<1x16xf32> to vector<16x16xf32>
    %21 = arith.mulf %18, %20 : vector<16x16xf32>
    %c0_7 = arith.constant 0 : index
    %c0_8 = arith.constant 0 : index
    %22 = vector.load %arg4[%c0_7, %c0_8] : memref<1x16xf32, #tpu.memory_space<vmem>>, vector<1x16xf32>
    %23 = vector.broadcast %22 : vector<1x16xf32> to vector<16x16xf32>
    %24 = arith.addf %21, %23 : vector<16x16xf32>
    %cst_9 = arith.constant 0.000000e+00 : f32
    %25 = vector.broadcast %cst_9 : f32 to vector<16x32xf32>
    %c0_10 = arith.constant 0 : index
    %c0_11 = arith.constant 0 : index
    %26 = vector.load %arg5[%c0_10, %c0_11] : memref<16x128xf32, #tpu.memory_space<vmem>>, vector<16x128xf32>
    %cst_12 = arith.constant dense<0.000000e+00> : vector<16x128xf32>
    %27 = tpu.matmul %24, %26, %cst_12 {dimension_numbers = #tpu.dot_dimension_numbers<[1], [0], [0], [1], [0, 0, 1, 1], [], []>} : vector<16x16xf32>, vector<16x128xf32>, vector<16x128xf32> -> vector<16x128xf32>
    %c0_13 = arith.constant 0 : index
    %c0_14 = arith.constant 0 : index
    %28 = vector.load %arg6[%c0_13, %c0_14] : memref<1x128xf32, #tpu.memory_space<vmem>>, vector<1x128xf32>
    %29 = vector.broadcast %28 : vector<1x128xf32> to vector<16x128xf32>
    %30 = arith.addf %27, %29 : vector<16x128xf32>
    %cst_15 = arith.constant 0.000000e+00 : f32
    %31 = vector.broadcast %cst_15 : f32 to vector<16x128xf32>
    %32 = arith.maximumf %30, %31 : vector<16x128xf32>
    %c0_16 = arith.constant 0 : index
    %c0_17 = arith.constant 0 : index
    %33 = vector.load %arg7[%c0_16, %c0_17] : memref<128x32xf32, #tpu.memory_space<vmem>>, vector<128x32xf32>
    %cst_18 = arith.constant dense<0.000000e+00> : vector<16x32xf32>
    %34 = tpu.matmul %32, %33, %cst_18 {dimension_numbers = #tpu.dot_dimension_numbers<[1], [0], [0], [1], [0, 0, 1, 1], [], []>} : vector<16x128xf32>, vector<128x32xf32>, vector<16x32xf32> -> vector<16x32xf32>
    %35 = arith.addf %25, %34 : vector<16x32xf32>
    %c0_19 = arith.constant 0 : index
    %c0_20 = arith.constant 0 : index
    %36 = vector.load %arg8[%c0_19, %c0_20] : memref<1x32xf32, #tpu.memory_space<vmem>>, vector<1x32xf32>
    %37 = vector.broadcast %36 : vector<1x32xf32> to vector<16x32xf32>
    %38 = arith.addf %35, %37 : vector<16x32xf32>
    %c0_21 = arith.constant 0 : index
    %c0_22 = arith.constant 0 : index
    %39 = vector.load %arg2[%c0_21, %c0_22] : memref<16x32xf32, #tpu.memory_space<vmem>>, vector<16x32xf32>
    %40 = arith.addf %39, %38 : vector<16x32xf32>
    %cst_23 = arith.constant dense<0.000000e+00> : vector<16xf32>
    %41 = vector.multi_reduction <add>, %40, %cst_23 [1] : vector<16x32xf32> to vector<16xf32>
    %42 = vector.shape_cast %41 : vector<16xf32> to vector<16x1xf32>
    %cst_24 = arith.constant 3.200000e+01 : f32
    %43 = vector.broadcast %cst_24 : f32 to vector<16x1xf32>
    %44 = arith.divf %42, %43 : vector<16x1xf32>
    %45 = vector.broadcast %44 : vector<16x1xf32> to vector<16x32xf32>
    %46 = arith.subf %40, %45 : vector<16x32xf32>
    %47 = arith.mulf %46, %46 : vector<16x32xf32>
    %cst_25 = arith.constant dense<0.000000e+00> : vector<16xf32>
    %48 = vector.multi_reduction <add>, %47, %cst_25 [1] : vector<16x32xf32> to vector<16xf32>
    %49 = vector.shape_cast %48 : vector<16xf32> to vector<16x1xf32>
    %cst_26 = arith.constant 3.200000e+01 : f32
    %50 = vector.broadcast %cst_26 : f32 to vector<16x1xf32>
    %51 = arith.divf %49, %50 : vector<16x1xf32>
    %52 = vector.broadcast %44 : vector<16x1xf32> to vector<16x32xf32>
    %53 = arith.subf %40, %52 : vector<16x32xf32>
    %cst_27 = arith.constant 9.99999974E-6 : f32
    %54 = vector.broadcast %cst_27 : f32 to vector<16x1xf32>
    %55 = arith.addf %51, %54 : vector<16x1xf32>
    %56 = math.rsqrt %55 : vector<16x1xf32>
    %57 = vector.broadcast %56 : vector<16x1xf32> to vector<16x32xf32>
    %58 = arith.mulf %53, %57 : vector<16x32xf32>
    %c0_28 = arith.constant 0 : index
    %c0_29 = arith.constant 0 : index
    %59 = vector.load %arg9[%c0_28, %c0_29] : memref<1x32xf32, #tpu.memory_space<vmem>>, vector<1x32xf32>
    %60 = vector.broadcast %59 : vector<1x32xf32> to vector<16x32xf32>
    %61 = arith.mulf %58, %60 : vector<16x32xf32>
    %c0_30 = arith.constant 0 : index
    %c0_31 = arith.constant 0 : index
    %62 = vector.load %arg10[%c0_30, %c0_31] : memref<1x32xf32, #tpu.memory_space<vmem>>, vector<1x32xf32>
    %63 = vector.broadcast %62 : vector<1x32xf32> to vector<16x32xf32>
    %64 = arith.addf %61, %63 : vector<16x32xf32>
    %c0_32 = arith.constant 0 : index
    %c0_33 = arith.constant 0 : index
    %65 = vector.load %arg11[%c0_32, %c0_33] : memref<16x32xf32, #tpu.memory_space<vmem>>, vector<16x32xf32>
    tpu.vector_store %arg11[%c0_32, %c0_33], %64 {strides = array<i32>} : memref<16x32xf32, #tpu.memory_space<vmem>>, vector<16x32xf32>,
    return
  }
  func.func @transform_0(%arg0: i32) -> (i32, i32) {
    %c0_i32 = arith.constant 0 : i32
    %c0_i32_0 = arith.constant 0 : i32
    return %arg0, %c0_i32 : i32, i32
  }
  func.func @transform_1(%arg0: i32) -> (i32, i32) {
    %c0_i32 = arith.constant 0 : i32
    %c0_i32_0 = arith.constant 0 : i32
    return %arg0, %c0_i32 : i32, i32
  }
  func.func @transform_2(%arg0: i32) -> (i32, i32) {
    %c0_i32 = arith.constant 0 : i32
    %c0_i32_0 = arith.constant 0 : i32
    %c0_i32_1 = arith.constant 0 : i32
    return %c0_i32, %c0_i32_0 : i32, i32
  }
  func.func @transform_3(%arg0: i32) -> (i32, i32) {
    %c0_i32 = arith.constant 0 : i32
    %c0_i32_0 = arith.constant 0 : i32
    %c0_i32_1 = arith.constant 0 : i32
    return %c0_i32, %c0_i32_0 : i32, i32
  }
  func.func @transform_4(%arg0: i32) -> (i32, i32) {
    %c0_i32 = arith.constant 0 : i32
    %c0_i32_0 = arith.constant 0 : i32
    %c0_i32_1 = arith.constant 0 : i32
    return %c0_i32, %c0_i32_0 : i32, i32
  }
  func.func @transform_5(%arg0: i32) -> (i32, i32) {
    %c0_i32 = arith.constant 0 : i32
    %c0_i32_0 = arith.constant 0 : i32
    %c0_i32_1 = arith.constant 0 : i32
    return %c0_i32, %c0_i32_0 : i32, i32
  }
  func.func @transform_6(%arg0: i32) -> (i32, i32) {
    %c0_i32 = arith.constant 0 : i32
    %c0_i32_0 = arith.constant 0 : i32
    %c0_i32_1 = arith.constant 0 : i32
    return %c0_i32, %c0_i32_0 : i32, i32
  }
  func.func @transform_7(%arg0: i32) -> (i32, i32) {
    %c0_i32 = arith.constant 0 : i32
    %c0_i32_0 = arith.constant 0 : i32
    %c0_i32_1 = arith.constant 0 : i32
    return %c0_i32, %c0_i32_0 : i32, i32
  }
  func.func @transform_8(%arg0: i32) -> (i32, i32) {
    %c0_i32 = arith.constant 0 : i32
    %c0_i32_0 = arith.constant 0 : i32
    %c0_i32_1 = arith.constant 0 : i32
    return %c0_i32, %c0_i32_0 : i32, i32
  }
  func.func @transform_9(%arg0: i32) -> (i32, i32) {
    %c0_i32 = arith.constant 0 : i32
    %c0_i32_0 = arith.constant 0 : i32
    %c0_i32_1 = arith.constant 0 : i32
    return %c0_i32, %c0_i32_0 : i32, i32
  }
  func.func @transform_10(%arg0: i32) -> (i32, i32) {
    %c0_i32 = arith.constant 0 : i32
    %c0_i32_0 = arith.constant 0 : i32
    return %arg0, %c0_i32 : i32, i32
  }
}

module attributes {stable_mosaic.version = 11 : i64} {
  func.func @_gru2_kernel(%arg0: i32, %arg1: memref<3x8x2x16xf32, #tpu.memory_space<vmem>>, %arg2: memref<3x16x16xf32, #tpu.memory_space<vmem>>, %arg3: memref<3x1x16xf32, #tpu.memory_space<vmem>>, %arg4: memref<3x16x16xf32, #tpu.memory_space<vmem>>, %arg5: memref<3x1x16xf32, #tpu.memory_space<vmem>>, %arg6: memref<3x16x16xf32, #tpu.memory_space<vmem>>, %arg7: memref<3x1x16xf32, #tpu.memory_space<vmem>>, %arg8: memref<8x2x16xf32, #tpu.memory_space<vmem>>, %arg9: memref<2x16xf32, #tpu.memory_space<vmem>>, %arg10: memref<2x16xf32, #tpu.memory_space<vmem>>) attributes {dimension_semantics = [#tpu.dimension_semantics<arbitrary>], iteration_bounds = array<i64: 1>, scalar_prefetch = 0 : i64, scratch_operands = 2 : i64, tpu.core_type = #tpu.core_type<tc>, window_params = [{transform_indices = @transform_0, window_bounds = array<i64: 3, 8, 2, 16>}, {pipeline_mode = #tpu.pipeline_mode<synchronous>, transform_indices = @transform_1, window_bounds = array<i64: 3, 16, 16>}, {pipeline_mode = #tpu.pipeline_mode<synchronous>, transform_indices = @transform_2, window_bounds = array<i64: 3, 1, 16>}, {pipeline_mode = #tpu.pipeline_mode<synchronous>, transform_indices = @transform_3, window_bounds = array<i64: 3, 16, 16>}, {pipeline_mode = #tpu.pipeline_mode<synchronous>, transform_indices = @transform_4, window_bounds = array<i64: 3, 1, 16>}, {pipeline_mode = #tpu.pipeline_mode<synchronous>, transform_indices = @transform_5, window_bounds = array<i64: 3, 16, 16>}, {pipeline_mode = #tpu.pipeline_mode<synchronous>, transform_indices = @transform_6, window_bounds = array<i64: 3, 1, 16>}, {transform_indices = @transform_7, window_bounds = array<i64: 8, 2, 16>}]} {
    %c0_i32 = arith.constant 0 : i32
    %0 = arith.cmpi eq, %arg0, %c0_i32 : i32
    %1 = arith.extui %0 : i1 to i32
    %c0_i32_0 = arith.constant 0 : i32
    %2 = arith.cmpi ne, %1, %c0_i32_0 : i32
    scf.if %2 {
      %cst_646 = arith.constant 0.000000e+00 : f32
      %935 = vector.broadcast %cst_646 : f32 to vector<2x16xf32>
      %c0_647 = arith.constant 0 : index
      %c0_648 = arith.constant 0 : index
      %936 = vector.load %arg9[%c0_647, %c0_648] : memref<2x16xf32, #tpu.memory_space<vmem>>, vector<2x16xf32>
      tpu.vector_store %arg9[%c0_647, %c0_648], %935 {strides = array<i32>} : memref<2x16xf32, #tpu.memory_space<vmem>>, vector<2x16xf32>,
      %cst_649 = arith.constant 0.000000e+00 : f32
      %937 = vector.broadcast %cst_649 : f32 to vector<2x16xf32>
      %c0_650 = arith.constant 0 : index
      %c0_651 = arith.constant 0 : index
      %938 = vector.load %arg10[%c0_650, %c0_651] : memref<2x16xf32, #tpu.memory_space<vmem>>, vector<2x16xf32>
      tpu.vector_store %arg10[%c0_650, %c0_651], %937 {strides = array<i32>} : memref<2x16xf32, #tpu.memory_space<vmem>>, vector<2x16xf32>,
    } else {
    }
    %c0 = arith.constant 0 : index
    %c0_1 = arith.constant 0 : index
    %3 = vector.load %arg9[%c0, %c0_1] : memref<2x16xf32, #tpu.memory_space<vmem>>, vector<2x16xf32>
    %c0_2 = arith.constant 0 : index
    %c0_3 = arith.constant 0 : index
    %4 = vector.load %arg10[%c0_2, %c0_3] : memref<2x16xf32, #tpu.memory_space<vmem>>, vector<2x16xf32>
    %c0_i32_4 = arith.constant 0 : i32
    %c0_5 = arith.constant 0 : index
    %5 = arith.index_cast %c0_i32_4 : i32 to index
    %c0_6 = arith.constant 0 : index
    %c0_7 = arith.constant 0 : index
    %6 = vector.load %arg1[%c0_5, %5, %c0_6, %c0_7] : memref<3x8x2x16xf32, #tpu.memory_space<vmem>>, vector<1x1x2x16xf32>
    %7 = vector.shape_cast %6 : vector<1x1x2x16xf32> to vector<2x16xf32>
    %c1 = arith.constant 1 : index
    %8 = arith.index_cast %c0_i32_4 : i32 to index
    %c0_8 = arith.constant 0 : index
    %c0_9 = arith.constant 0 : index
    %9 = vector.load %arg1[%c1, %8, %c0_8, %c0_9] : memref<3x8x2x16xf32, #tpu.memory_space<vmem>>, vector<1x1x2x16xf32>
    %10 = vector.shape_cast %9 : vector<1x1x2x16xf32> to vector<2x16xf32>
    %c2 = arith.constant 2 : index
    %11 = arith.index_cast %c0_i32_4 : i32 to index
    %c0_10 = arith.constant 0 : index
    %c0_11 = arith.constant 0 : index
    %12 = vector.load %arg1[%c2, %11, %c0_10, %c0_11] : memref<3x8x2x16xf32, #tpu.memory_space<vmem>>, vector<1x1x2x16xf32>
    %13 = vector.shape_cast %12 : vector<1x1x2x16xf32> to vector<2x16xf32>
    %c0_12 = arith.constant 0 : index
    %c0_13 = arith.constant 0 : index
    %c0_14 = arith.constant 0 : index
    %14 = vector.load %arg2[%c0_12, %c0_13, %c0_14] : memref<3x16x16xf32, #tpu.memory_space<vmem>>, vector<1x16x16xf32>
    %15 = vector.shape_cast %14 : vector<1x16x16xf32> to vector<16x16xf32>
    %cst = arith.constant dense<0.000000e+00> : vector<2x16xf32>
    %16 = tpu.matmul %3, %15, %cst {dimension_numbers = #tpu.dot_dimension_numbers<[1], [0], [0], [1], [0, 0, 1, 1], [], []>} : vector<2x16xf32>, vector<16x16xf32>, vector<2x16xf32> -> vector<2x16xf32>
    %c0_15 = arith.constant 0 : index
    %c0_16 = arith.constant 0 : index
    %c0_17 = arith.constant 0 : index
    %17 = vector.load %arg3[%c0_15, %c0_16, %c0_17] : memref<3x1x16xf32, #tpu.memory_space<vmem>>, vector<1x1x16xf32>
    %18 = vector.shape_cast %17 : vector<1x1x16xf32> to vector<1x16xf32>
    %19 = vector.broadcast %18 : vector<1x16xf32> to vector<2x16xf32>
    %20 = arith.addf %16, %19 : vector<2x16xf32>
    %c1_18 = arith.constant 1 : index
    %c0_19 = arith.constant 0 : index
    %c0_20 = arith.constant 0 : index
    %21 = vector.load %arg2[%c1_18, %c0_19, %c0_20] : memref<3x16x16xf32, #tpu.memory_space<vmem>>, vector<1x16x16xf32>
    %22 = vector.shape_cast %21 : vector<1x16x16xf32> to vector<16x16xf32>
    %cst_21 = arith.constant dense<0.000000e+00> : vector<2x16xf32>
    %23 = tpu.matmul %3, %22, %cst_21 {dimension_numbers = #tpu.dot_dimension_numbers<[1], [0], [0], [1], [0, 0, 1, 1], [], []>} : vector<2x16xf32>, vector<16x16xf32>, vector<2x16xf32> -> vector<2x16xf32>
    %c1_22 = arith.constant 1 : index
    %c0_23 = arith.constant 0 : index
    %c0_24 = arith.constant 0 : index
    %24 = vector.load %arg3[%c1_22, %c0_23, %c0_24] : memref<3x1x16xf32, #tpu.memory_space<vmem>>, vector<1x1x16xf32>
    %25 = vector.shape_cast %24 : vector<1x1x16xf32> to vector<1x16xf32>
    %26 = vector.broadcast %25 : vector<1x16xf32> to vector<2x16xf32>
    %27 = arith.addf %23, %26 : vector<2x16xf32>
    %c2_25 = arith.constant 2 : index
    %c0_26 = arith.constant 0 : index
    %c0_27 = arith.constant 0 : index
    %28 = vector.load %arg2[%c2_25, %c0_26, %c0_27] : memref<3x16x16xf32, #tpu.memory_space<vmem>>, vector<1x16x16xf32>
    %29 = vector.shape_cast %28 : vector<1x16x16xf32> to vector<16x16xf32>
    %cst_28 = arith.constant dense<0.000000e+00> : vector<2x16xf32>
    %30 = tpu.matmul %3, %29, %cst_28 {dimension_numbers = #tpu.dot_dimension_numbers<[1], [0], [0], [1], [0, 0, 1, 1], [], []>} : vector<2x16xf32>, vector<16x16xf32>, vector<2x16xf32> -> vector<2x16xf32>
    %c2_29 = arith.constant 2 : index
    %c0_30 = arith.constant 0 : index
    %c0_31 = arith.constant 0 : index
    %31 = vector.load %arg3[%c2_29, %c0_30, %c0_31] : memref<3x1x16xf32, #tpu.memory_space<vmem>>, vector<1x1x16xf32>
    %32 = vector.shape_cast %31 : vector<1x1x16xf32> to vector<1x16xf32>
    %33 = vector.broadcast %32 : vector<1x16xf32> to vector<2x16xf32>
    %34 = arith.addf %30, %33 : vector<2x16xf32>
    %35 = arith.addf %7, %20 : vector<2x16xf32>
    %36 = arith.negf %35 : vector<2x16xf32>
    %37 = math.exp %36 : vector<2x16xf32>
    %cst_32 = arith.constant 1.000000e+00 : f32
    %38 = vector.broadcast %cst_32 : f32 to vector<2x16xf32>
    %39 = arith.addf %38, %37 : vector<2x16xf32>
    %40 = arith.divf %38, %39 : vector<2x16xf32>
    %41 = arith.addf %10, %27 : vector<2x16xf32>
    %42 = arith.negf %41 : vector<2x16xf32>
    %43 = math.exp %42 : vector<2x16xf32>
    %cst_33 = arith.constant 1.000000e+00 : f32
    %44 = vector.broadcast %cst_33 : f32 to vector<2x16xf32>
    %45 = arith.addf %44, %43 : vector<2x16xf32>
    %46 = arith.divf %44, %45 : vector<2x16xf32>
    %47 = arith.mulf %40, %34 : vector<2x16xf32>
    %48 = arith.addf %13, %47 : vector<2x16xf32>
    %49 = math.tanh %48 : vector<2x16xf32>
    %cst_34 = arith.constant 1.000000e+00 : f32
    %50 = vector.broadcast %cst_34 : f32 to vector<2x16xf32>
    %51 = arith.subf %50, %46 : vector<2x16xf32>
    %52 = arith.mulf %51, %49 : vector<2x16xf32>
    %53 = arith.mulf %46, %3 : vector<2x16xf32>
    %54 = arith.addf %52, %53 : vector<2x16xf32>
    %c0_35 = arith.constant 0 : index
    %c0_36 = arith.constant 0 : index
    %c0_37 = arith.constant 0 : index
    %55 = vector.load %arg4[%c0_35, %c0_36, %c0_37] : memref<3x16x16xf32, #tpu.memory_space<vmem>>, vector<1x16x16xf32>
    %56 = vector.shape_cast %55 : vector<1x16x16xf32> to vector<16x16xf32>
    %cst_38 = arith.constant dense<0.000000e+00> : vector<2x16xf32>
    %57 = tpu.matmul %54, %56, %cst_38 {dimension_numbers = #tpu.dot_dimension_numbers<[1], [0], [0], [1], [0, 0, 1, 1], [], []>} : vector<2x16xf32>, vector<16x16xf32>, vector<2x16xf32> -> vector<2x16xf32>
    %c0_39 = arith.constant 0 : index
    %c0_40 = arith.constant 0 : index
    %c0_41 = arith.constant 0 : index
    %58 = vector.load %arg5[%c0_39, %c0_40, %c0_41] : memref<3x1x16xf32, #tpu.memory_space<vmem>>, vector<1x1x16xf32>
    %59 = vector.shape_cast %58 : vector<1x1x16xf32> to vector<1x16xf32>
    %60 = vector.broadcast %59 : vector<1x16xf32> to vector<2x16xf32>
    %61 = arith.addf %57, %60 : vector<2x16xf32>
    %c1_42 = arith.constant 1 : index
    %c0_43 = arith.constant 0 : index
    %c0_44 = arith.constant 0 : index
    %62 = vector.load %arg4[%c1_42, %c0_43, %c0_44] : memref<3x16x16xf32, #tpu.memory_space<vmem>>, vector<1x16x16xf32>
    %63 = vector.shape_cast %62 : vector<1x16x16xf32> to vector<16x16xf32>
    %cst_45 = arith.constant dense<0.000000e+00> : vector<2x16xf32>
    %64 = tpu.matmul %54, %63, %cst_45 {dimension_numbers = #tpu.dot_dimension_numbers<[1], [0], [0], [1], [0, 0, 1, 1], [], []>} : vector<2x16xf32>, vector<16x16xf32>, vector<2x16xf32> -> vector<2x16xf32>
    %c1_46 = arith.constant 1 : index
    %c0_47 = arith.constant 0 : index
    %c0_48 = arith.constant 0 : index
    %65 = vector.load %arg5[%c1_46, %c0_47, %c0_48] : memref<3x1x16xf32, #tpu.memory_space<vmem>>, vector<1x1x16xf32>
    %66 = vector.shape_cast %65 : vector<1x1x16xf32> to vector<1x16xf32>
    %67 = vector.broadcast %66 : vector<1x16xf32> to vector<2x16xf32>
    %68 = arith.addf %64, %67 : vector<2x16xf32>
    %c2_49 = arith.constant 2 : index
    %c0_50 = arith.constant 0 : index
    %c0_51 = arith.constant 0 : index
    %69 = vector.load %arg4[%c2_49, %c0_50, %c0_51] : memref<3x16x16xf32, #tpu.memory_space<vmem>>, vector<1x16x16xf32>
    %70 = vector.shape_cast %69 : vector<1x16x16xf32> to vector<16x16xf32>
    %cst_52 = arith.constant dense<0.000000e+00> : vector<2x16xf32>
    %71 = tpu.matmul %54, %70, %cst_52 {dimension_numbers = #tpu.dot_dimension_numbers<[1], [0], [0], [1], [0, 0, 1, 1], [], []>} : vector<2x16xf32>, vector<16x16xf32>, vector<2x16xf32> -> vector<2x16xf32>
    %c2_53 = arith.constant 2 : index
    %c0_54 = arith.constant 0 : index
    %c0_55 = arith.constant 0 : index
    %72 = vector.load %arg5[%c2_53, %c0_54, %c0_55] : memref<3x1x16xf32, #tpu.memory_space<vmem>>, vector<1x1x16xf32>
    %73 = vector.shape_cast %72 : vector<1x1x16xf32> to vector<1x16xf32>
    %74 = vector.broadcast %73 : vector<1x16xf32> to vector<2x16xf32>
    %75 = arith.addf %71, %74 : vector<2x16xf32>
    %c0_56 = arith.constant 0 : index
    %c0_57 = arith.constant 0 : index
    %c0_58 = arith.constant 0 : index
    %76 = vector.load %arg6[%c0_56, %c0_57, %c0_58] : memref<3x16x16xf32, #tpu.memory_space<vmem>>, vector<1x16x16xf32>
    %77 = vector.shape_cast %76 : vector<1x16x16xf32> to vector<16x16xf32>
    %cst_59 = arith.constant dense<0.000000e+00> : vector<2x16xf32>
    %78 = tpu.matmul %4, %77, %cst_59 {dimension_numbers = #tpu.dot_dimension_numbers<[1], [0], [0], [1], [0, 0, 1, 1], [], []>} : vector<2x16xf32>, vector<16x16xf32>, vector<2x16xf32> -> vector<2x16xf32>
    %c0_60 = arith.constant 0 : index
    %c0_61 = arith.constant 0 : index
    %c0_62 = arith.constant 0 : index
    %79 = vector.load %arg7[%c0_60, %c0_61, %c0_62] : memref<3x1x16xf32, #tpu.memory_space<vmem>>, vector<1x1x16xf32>
    %80 = vector.shape_cast %79 : vector<1x1x16xf32> to vector<1x16xf32>
    %81 = vector.broadcast %80 : vector<1x16xf32> to vector<2x16xf32>
    %82 = arith.addf %78, %81 : vector<2x16xf32>
    %c1_63 = arith.constant 1 : index
    %c0_64 = arith.constant 0 : index
    %c0_65 = arith.constant 0 : index
    %83 = vector.load %arg6[%c1_63, %c0_64, %c0_65] : memref<3x16x16xf32, #tpu.memory_space<vmem>>, vector<1x16x16xf32>
    %84 = vector.shape_cast %83 : vector<1x16x16xf32> to vector<16x16xf32>
    %cst_66 = arith.constant dense<0.000000e+00> : vector<2x16xf32>
    %85 = tpu.matmul %4, %84, %cst_66 {dimension_numbers = #tpu.dot_dimension_numbers<[1], [0], [0], [1], [0, 0, 1, 1], [], []>} : vector<2x16xf32>, vector<16x16xf32>, vector<2x16xf32> -> vector<2x16xf32>
    %c1_67 = arith.constant 1 : index
    %c0_68 = arith.constant 0 : index
    %c0_69 = arith.constant 0 : index
    %86 = vector.load %arg7[%c1_67, %c0_68, %c0_69] : memref<3x1x16xf32, #tpu.memory_space<vmem>>, vector<1x1x16xf32>
    %87 = vector.shape_cast %86 : vector<1x1x16xf32> to vector<1x16xf32>
    %88 = vector.broadcast %87 : vector<1x16xf32> to vector<2x16xf32>
    %89 = arith.addf %85, %88 : vector<2x16xf32>
    %c2_70 = arith.constant 2 : index
    %c0_71 = arith.constant 0 : index
    %c0_72 = arith.constant 0 : index
    %90 = vector.load %arg6[%c2_70, %c0_71, %c0_72] : memref<3x16x16xf32, #tpu.memory_space<vmem>>, vector<1x16x16xf32>
    %91 = vector.shape_cast %90 : vector<1x16x16xf32> to vector<16x16xf32>
    %cst_73 = arith.constant dense<0.000000e+00> : vector<2x16xf32>
    %92 = tpu.matmul %4, %91, %cst_73 {dimension_numbers = #tpu.dot_dimension_numbers<[1], [0], [0], [1], [0, 0, 1, 1], [], []>} : vector<2x16xf32>, vector<16x16xf32>, vector<2x16xf32> -> vector<2x16xf32>
    %c2_74 = arith.constant 2 : index
    %c0_75 = arith.constant 0 : index
    %c0_76 = arith.constant 0 : index
    %93 = vector.load %arg7[%c2_74, %c0_75, %c0_76] : memref<3x1x16xf32, #tpu.memory_space<vmem>>, vector<1x1x16xf32>
    %94 = vector.shape_cast %93 : vector<1x1x16xf32> to vector<1x16xf32>
    %95 = vector.broadcast %94 : vector<1x16xf32> to vector<2x16xf32>
    %96 = arith.addf %92, %95 : vector<2x16xf32>
    %97 = arith.addf %61, %82 : vector<2x16xf32>
    %98 = arith.negf %97 : vector<2x16xf32>
    %99 = math.exp %98 : vector<2x16xf32>
    %cst_77 = arith.constant 1.000000e+00 : f32
    %100 = vector.broadcast %cst_77 : f32 to vector<2x16xf32>
    %101 = arith.addf %100, %99 : vector<2x16xf32>
    %102 = arith.divf %100, %101 : vector<2x16xf32>
    %103 = arith.addf %68, %89 : vector<2x16xf32>
    %104 = arith.negf %103 : vector<2x16xf32>
    %105 = math.exp %104 : vector<2x16xf32>
    %cst_78 = arith.constant 1.000000e+00 : f32
    %106 = vector.broadcast %cst_78 : f32 to vector<2x16xf32>
    %107 = arith.addf %106, %105 : vector<2x16xf32>
    %108 = arith.divf %106, %107 : vector<2x16xf32>
    %109 = arith.mulf %102, %96 : vector<2x16xf32>
    %110 = arith.addf %75, %109 : vector<2x16xf32>
    %111 = math.tanh %110 : vector<2x16xf32>
    %cst_79 = arith.constant 1.000000e+00 : f32
    %112 = vector.broadcast %cst_79 : f32 to vector<2x16xf32>
    %113 = arith.subf %112, %108 : vector<2x16xf32>
    %114 = arith.mulf %113, %111 : vector<2x16xf32>
    %115 = arith.mulf %108, %4 : vector<2x16xf32>
    %116 = arith.addf %114, %115 : vector<2x16xf32>
    %117 = arith.index_cast %c0_i32_4 : i32 to index
    %c0_80 = arith.constant 0 : index
    %c0_81 = arith.constant 0 : index
    %118 = vector.load %arg8[%117, %c0_80, %c0_81] : memref<8x2x16xf32, #tpu.memory_space<vmem>>, vector<1x2x16xf32>
    %119 = vector.shape_cast %118 : vector<1x2x16xf32> to vector<2x16xf32>
    %120 = vector.shape_cast %116 : vector<2x16xf32> to vector<1x2x16xf32>
    tpu.vector_store %arg8[%117, %c0_80, %c0_81], %120 {strides = array<i32>} : memref<8x2x16xf32, #tpu.memory_space<vmem>>, vector<1x2x16xf32>,
    %c1_i32 = arith.constant 1 : i32
    %c0_82 = arith.constant 0 : index
    %121 = arith.index_cast %c1_i32 : i32 to index
    %c0_83 = arith.constant 0 : index
    %c0_84 = arith.constant 0 : index
    %122 = vector.load %arg1[%c0_82, %121, %c0_83, %c0_84] : memref<3x8x2x16xf32, #tpu.memory_space<vmem>>, vector<1x1x2x16xf32>
    %123 = vector.shape_cast %122 : vector<1x1x2x16xf32> to vector<2x16xf32>
    %c1_85 = arith.constant 1 : index
    %124 = arith.index_cast %c1_i32 : i32 to index
    %c0_86 = arith.constant 0 : index
    %c0_87 = arith.constant 0 : index
    %125 = vector.load %arg1[%c1_85, %124, %c0_86, %c0_87] : memref<3x8x2x16xf32, #tpu.memory_space<vmem>>, vector<1x1x2x16xf32>
    %126 = vector.shape_cast %125 : vector<1x1x2x16xf32> to vector<2x16xf32>
    %c2_88 = arith.constant 2 : index
    %127 = arith.index_cast %c1_i32 : i32 to index
    %c0_89 = arith.constant 0 : index
    %c0_90 = arith.constant 0 : index
    %128 = vector.load %arg1[%c2_88, %127, %c0_89, %c0_90] : memref<3x8x2x16xf32, #tpu.memory_space<vmem>>, vector<1x1x2x16xf32>
    %129 = vector.shape_cast %128 : vector<1x1x2x16xf32> to vector<2x16xf32>
    %c0_91 = arith.constant 0 : index
    %c0_92 = arith.constant 0 : index
    %c0_93 = arith.constant 0 : index
    %130 = vector.load %arg2[%c0_91, %c0_92, %c0_93] : memref<3x16x16xf32, #tpu.memory_space<vmem>>, vector<1x16x16xf32>
    %131 = vector.shape_cast %130 : vector<1x16x16xf32> to vector<16x16xf32>
    %cst_94 = arith.constant dense<0.000000e+00> : vector<2x16xf32>
    %132 = tpu.matmul %54, %131, %cst_94 {dimension_numbers = #tpu.dot_dimension_numbers<[1], [0], [0], [1], [0, 0, 1, 1], [], []>} : vector<2x16xf32>, vector<16x16xf32>, vector<2x16xf32> -> vector<2x16xf32>
    %c0_95 = arith.constant 0 : index
    %c0_96 = arith.constant 0 : index
    %c0_97 = arith.constant 0 : index
    %133 = vector.load %arg3[%c0_95, %c0_96, %c0_97] : memref<3x1x16xf32, #tpu.memory_space<vmem>>, vector<1x1x16xf32>
    %134 = vector.shape_cast %133 : vector<1x1x16xf32> to vector<1x16xf32>
    %135 = vector.broadcast %134 : vector<1x16xf32> to vector<2x16xf32>
    %136 = arith.addf %132, %135 : vector<2x16xf32>
    %c1_98 = arith.constant 1 : index
    %c0_99 = arith.constant 0 : index
    %c0_100 = arith.constant 0 : index
    %137 = vector.load %arg2[%c1_98, %c0_99, %c0_100] : memref<3x16x16xf32, #tpu.memory_space<vmem>>, vector<1x16x16xf32>
    %138 = vector.shape_cast %137 : vector<1x16x16xf32> to vector<16x16xf32>
    %cst_101 = arith.constant dense<0.000000e+00> : vector<2x16xf32>
    %139 = tpu.matmul %54, %138, %cst_101 {dimension_numbers = #tpu.dot_dimension_numbers<[1], [0], [0], [1], [0, 0, 1, 1], [], []>} : vector<2x16xf32>, vector<16x16xf32>, vector<2x16xf32> -> vector<2x16xf32>
    %c1_102 = arith.constant 1 : index
    %c0_103 = arith.constant 0 : index
    %c0_104 = arith.constant 0 : index
    %140 = vector.load %arg3[%c1_102, %c0_103, %c0_104] : memref<3x1x16xf32, #tpu.memory_space<vmem>>, vector<1x1x16xf32>
    %141 = vector.shape_cast %140 : vector<1x1x16xf32> to vector<1x16xf32>
    %142 = vector.broadcast %141 : vector<1x16xf32> to vector<2x16xf32>
    %143 = arith.addf %139, %142 : vector<2x16xf32>
    %c2_105 = arith.constant 2 : index
    %c0_106 = arith.constant 0 : index
    %c0_107 = arith.constant 0 : index
    %144 = vector.load %arg2[%c2_105, %c0_106, %c0_107] : memref<3x16x16xf32, #tpu.memory_space<vmem>>, vector<1x16x16xf32>
    %145 = vector.shape_cast %144 : vector<1x16x16xf32> to vector<16x16xf32>
    %cst_108 = arith.constant dense<0.000000e+00> : vector<2x16xf32>
    %146 = tpu.matmul %54, %145, %cst_108 {dimension_numbers = #tpu.dot_dimension_numbers<[1], [0], [0], [1], [0, 0, 1, 1], [], []>} : vector<2x16xf32>, vector<16x16xf32>, vector<2x16xf32> -> vector<2x16xf32>
    %c2_109 = arith.constant 2 : index
    %c0_110 = arith.constant 0 : index
    %c0_111 = arith.constant 0 : index
    %147 = vector.load %arg3[%c2_109, %c0_110, %c0_111] : memref<3x1x16xf32, #tpu.memory_space<vmem>>, vector<1x1x16xf32>
    %148 = vector.shape_cast %147 : vector<1x1x16xf32> to vector<1x16xf32>
    %149 = vector.broadcast %148 : vector<1x16xf32> to vector<2x16xf32>
    %150 = arith.addf %146, %149 : vector<2x16xf32>
    %151 = arith.addf %123, %136 : vector<2x16xf32>
    %152 = arith.negf %151 : vector<2x16xf32>
    %153 = math.exp %152 : vector<2x16xf32>
    %cst_112 = arith.constant 1.000000e+00 : f32
    %154 = vector.broadcast %cst_112 : f32 to vector<2x16xf32>
    %155 = arith.addf %154, %153 : vector<2x16xf32>
    %156 = arith.divf %154, %155 : vector<2x16xf32>
    %157 = arith.addf %126, %143 : vector<2x16xf32>
    %158 = arith.negf %157 : vector<2x16xf32>
    %159 = math.exp %158 : vector<2x16xf32>
    %cst_113 = arith.constant 1.000000e+00 : f32
    %160 = vector.broadcast %cst_113 : f32 to vector<2x16xf32>
    %161 = arith.addf %160, %159 : vector<2x16xf32>
    %162 = arith.divf %160, %161 : vector<2x16xf32>
    %163 = arith.mulf %156, %150 : vector<2x16xf32>
    %164 = arith.addf %129, %163 : vector<2x16xf32>
    %165 = math.tanh %164 : vector<2x16xf32>
    %cst_114 = arith.constant 1.000000e+00 : f32
    %166 = vector.broadcast %cst_114 : f32 to vector<2x16xf32>
    %167 = arith.subf %166, %162 : vector<2x16xf32>
    %168 = arith.mulf %167, %165 : vector<2x16xf32>
    %169 = arith.mulf %162, %54 : vector<2x16xf32>
    %170 = arith.addf %168, %169 : vector<2x16xf32>
    %c0_115 = arith.constant 0 : index
    %c0_116 = arith.constant 0 : index
    %c0_117 = arith.constant 0 : index
    %171 = vector.load %arg4[%c0_115, %c0_116, %c0_117] : memref<3x16x16xf32, #tpu.memory_space<vmem>>, vector<1x16x16xf32>
    %172 = vector.shape_cast %171 : vector<1x16x16xf32> to vector<16x16xf32>
    %cst_118 = arith.constant dense<0.000000e+00> : vector<2x16xf32>
    %173 = tpu.matmul %170, %172, %cst_118 {dimension_numbers = #tpu.dot_dimension_numbers<[1], [0], [0], [1], [0, 0, 1, 1], [], []>} : vector<2x16xf32>, vector<16x16xf32>, vector<2x16xf32> -> vector<2x16xf32>
    %c0_119 = arith.constant 0 : index
    %c0_120 = arith.constant 0 : index
    %c0_121 = arith.constant 0 : index
    %174 = vector.load %arg5[%c0_119, %c0_120, %c0_121] : memref<3x1x16xf32, #tpu.memory_space<vmem>>, vector<1x1x16xf32>
    %175 = vector.shape_cast %174 : vector<1x1x16xf32> to vector<1x16xf32>
    %176 = vector.broadcast %175 : vector<1x16xf32> to vector<2x16xf32>
    %177 = arith.addf %173, %176 : vector<2x16xf32>
    %c1_122 = arith.constant 1 : index
    %c0_123 = arith.constant 0 : index
    %c0_124 = arith.constant 0 : index
    %178 = vector.load %arg4[%c1_122, %c0_123, %c0_124] : memref<3x16x16xf32, #tpu.memory_space<vmem>>, vector<1x16x16xf32>
    %179 = vector.shape_cast %178 : vector<1x16x16xf32> to vector<16x16xf32>
    %cst_125 = arith.constant dense<0.000000e+00> : vector<2x16xf32>
    %180 = tpu.matmul %170, %179, %cst_125 {dimension_numbers = #tpu.dot_dimension_numbers<[1], [0], [0], [1], [0, 0, 1, 1], [], []>} : vector<2x16xf32>, vector<16x16xf32>, vector<2x16xf32> -> vector<2x16xf32>
    %c1_126 = arith.constant 1 : index
    %c0_127 = arith.constant 0 : index
    %c0_128 = arith.constant 0 : index
    %181 = vector.load %arg5[%c1_126, %c0_127, %c0_128] : memref<3x1x16xf32, #tpu.memory_space<vmem>>, vector<1x1x16xf32>
    %182 = vector.shape_cast %181 : vector<1x1x16xf32> to vector<1x16xf32>
    %183 = vector.broadcast %182 : vector<1x16xf32> to vector<2x16xf32>
    %184 = arith.addf %180, %183 : vector<2x16xf32>
    %c2_129 = arith.constant 2 : index
    %c0_130 = arith.constant 0 : index
    %c0_131 = arith.constant 0 : index
    %185 = vector.load %arg4[%c2_129, %c0_130, %c0_131] : memref<3x16x16xf32, #tpu.memory_space<vmem>>, vector<1x16x16xf32>
    %186 = vector.shape_cast %185 : vector<1x16x16xf32> to vector<16x16xf32>
    %cst_132 = arith.constant dense<0.000000e+00> : vector<2x16xf32>
    %187 = tpu.matmul %170, %186, %cst_132 {dimension_numbers = #tpu.dot_dimension_numbers<[1], [0], [0], [1], [0, 0, 1, 1], [], []>} : vector<2x16xf32>, vector<16x16xf32>, vector<2x16xf32> -> vector<2x16xf32>
    %c2_133 = arith.constant 2 : index
    %c0_134 = arith.constant 0 : index
    %c0_135 = arith.constant 0 : index
    %188 = vector.load %arg5[%c2_133, %c0_134, %c0_135] : memref<3x1x16xf32, #tpu.memory_space<vmem>>, vector<1x1x16xf32>
    %189 = vector.shape_cast %188 : vector<1x1x16xf32> to vector<1x16xf32>
    %190 = vector.broadcast %189 : vector<1x16xf32> to vector<2x16xf32>
    %191 = arith.addf %187, %190 : vector<2x16xf32>
    %c0_136 = arith.constant 0 : index
    %c0_137 = arith.constant 0 : index
    %c0_138 = arith.constant 0 : index
    %192 = vector.load %arg6[%c0_136, %c0_137, %c0_138] : memref<3x16x16xf32, #tpu.memory_space<vmem>>, vector<1x16x16xf32>
    %193 = vector.shape_cast %192 : vector<1x16x16xf32> to vector<16x16xf32>
    %cst_139 = arith.constant dense<0.000000e+00> : vector<2x16xf32>
    %194 = tpu.matmul %116, %193, %cst_139 {dimension_numbers = #tpu.dot_dimension_numbers<[1], [0], [0], [1], [0, 0, 1, 1], [], []>} : vector<2x16xf32>, vector<16x16xf32>, vector<2x16xf32> -> vector<2x16xf32>
    %c0_140 = arith.constant 0 : index
    %c0_141 = arith.constant 0 : index
    %c0_142 = arith.constant 0 : index
    %195 = vector.load %arg7[%c0_140, %c0_141, %c0_142] : memref<3x1x16xf32, #tpu.memory_space<vmem>>, vector<1x1x16xf32>
    %196 = vector.shape_cast %195 : vector<1x1x16xf32> to vector<1x16xf32>
    %197 = vector.broadcast %196 : vector<1x16xf32> to vector<2x16xf32>
    %198 = arith.addf %194, %197 : vector<2x16xf32>
    %c1_143 = arith.constant 1 : index
    %c0_144 = arith.constant 0 : index
    %c0_145 = arith.constant 0 : index
    %199 = vector.load %arg6[%c1_143, %c0_144, %c0_145] : memref<3x16x16xf32, #tpu.memory_space<vmem>>, vector<1x16x16xf32>
    %200 = vector.shape_cast %199 : vector<1x16x16xf32> to vector<16x16xf32>
    %cst_146 = arith.constant dense<0.000000e+00> : vector<2x16xf32>
    %201 = tpu.matmul %116, %200, %cst_146 {dimension_numbers = #tpu.dot_dimension_numbers<[1], [0], [0], [1], [0, 0, 1, 1], [], []>} : vector<2x16xf32>, vector<16x16xf32>, vector<2x16xf32> -> vector<2x16xf32>
    %c1_147 = arith.constant 1 : index
    %c0_148 = arith.constant 0 : index
    %c0_149 = arith.constant 0 : index
    %202 = vector.load %arg7[%c1_147, %c0_148, %c0_149] : memref<3x1x16xf32, #tpu.memory_space<vmem>>, vector<1x1x16xf32>
    %203 = vector.shape_cast %202 : vector<1x1x16xf32> to vector<1x16xf32>
    %204 = vector.broadcast %203 : vector<1x16xf32> to vector<2x16xf32>
    %205 = arith.addf %201, %204 : vector<2x16xf32>
    %c2_150 = arith.constant 2 : index
    %c0_151 = arith.constant 0 : index
    %c0_152 = arith.constant 0 : index
    %206 = vector.load %arg6[%c2_150, %c0_151, %c0_152] : memref<3x16x16xf32, #tpu.memory_space<vmem>>, vector<1x16x16xf32>
    %207 = vector.shape_cast %206 : vector<1x16x16xf32> to vector<16x16xf32>
    %cst_153 = arith.constant dense<0.000000e+00> : vector<2x16xf32>
    %208 = tpu.matmul %116, %207, %cst_153 {dimension_numbers = #tpu.dot_dimension_numbers<[1], [0], [0], [1], [0, 0, 1, 1], [], []>} : vector<2x16xf32>, vector<16x16xf32>, vector<2x16xf32> -> vector<2x16xf32>
    %c2_154 = arith.constant 2 : index
    %c0_155 = arith.constant 0 : index
    %c0_156 = arith.constant 0 : index
    %209 = vector.load %arg7[%c2_154, %c0_155, %c0_156] : memref<3x1x16xf32, #tpu.memory_space<vmem>>, vector<1x1x16xf32>
    %210 = vector.shape_cast %209 : vector<1x1x16xf32> to vector<1x16xf32>
    %211 = vector.broadcast %210 : vector<1x16xf32> to vector<2x16xf32>
    %212 = arith.addf %208, %211 : vector<2x16xf32>
    %213 = arith.addf %177, %198 : vector<2x16xf32>
    %214 = arith.negf %213 : vector<2x16xf32>
    %215 = math.exp %214 : vector<2x16xf32>
    %cst_157 = arith.constant 1.000000e+00 : f32
    %216 = vector.broadcast %cst_157 : f32 to vector<2x16xf32>
    %217 = arith.addf %216, %215 : vector<2x16xf32>
    %218 = arith.divf %216, %217 : vector<2x16xf32>
    %219 = arith.addf %184, %205 : vector<2x16xf32>
    %220 = arith.negf %219 : vector<2x16xf32>
    %221 = math.exp %220 : vector<2x16xf32>
    %cst_158 = arith.constant 1.000000e+00 : f32
    %222 = vector.broadcast %cst_158 : f32 to vector<2x16xf32>
    %223 = arith.addf %222, %221 : vector<2x16xf32>
    %224 = arith.divf %222, %223 : vector<2x16xf32>
    %225 = arith.mulf %218, %212 : vector<2x16xf32>
    %226 = arith.addf %191, %225 : vector<2x16xf32>
    %227 = math.tanh %226 : vector<2x16xf32>
    %cst_159 = arith.constant 1.000000e+00 : f32
    %228 = vector.broadcast %cst_159 : f32 to vector<2x16xf32>
    %229 = arith.subf %228, %224 : vector<2x16xf32>
    %230 = arith.mulf %229, %227 : vector<2x16xf32>
    %231 = arith.mulf %224, %116 : vector<2x16xf32>
    %232 = arith.addf %230, %231 : vector<2x16xf32>
    %233 = arith.index_cast %c1_i32 : i32 to index
    %c0_160 = arith.constant 0 : index
    %c0_161 = arith.constant 0 : index
    %234 = vector.load %arg8[%233, %c0_160, %c0_161] : memref<8x2x16xf32, #tpu.memory_space<vmem>>, vector<1x2x16xf32>
    %235 = vector.shape_cast %234 : vector<1x2x16xf32> to vector<2x16xf32>
    %236 = vector.shape_cast %232 : vector<2x16xf32> to vector<1x2x16xf32>
    tpu.vector_store %arg8[%233, %c0_160, %c0_161], %236 {strides = array<i32>} : memref<8x2x16xf32, #tpu.memory_space<vmem>>, vector<1x2x16xf32>,
    %c2_i32 = arith.constant 2 : i32
    %c0_162 = arith.constant 0 : index
    %237 = arith.index_cast %c2_i32 : i32 to index
    %c0_163 = arith.constant 0 : index
    %c0_164 = arith.constant 0 : index
    %238 = vector.load %arg1[%c0_162, %237, %c0_163, %c0_164] : memref<3x8x2x16xf32, #tpu.memory_space<vmem>>, vector<1x1x2x16xf32>
    %239 = vector.shape_cast %238 : vector<1x1x2x16xf32> to vector<2x16xf32>
    %c1_165 = arith.constant 1 : index
    %240 = arith.index_cast %c2_i32 : i32 to index
    %c0_166 = arith.constant 0 : index
    %c0_167 = arith.constant 0 : index
    %241 = vector.load %arg1[%c1_165, %240, %c0_166, %c0_167] : memref<3x8x2x16xf32, #tpu.memory_space<vmem>>, vector<1x1x2x16xf32>
    %242 = vector.shape_cast %241 : vector<1x1x2x16xf32> to vector<2x16xf32>
    %c2_168 = arith.constant 2 : index
    %243 = arith.index_cast %c2_i32 : i32 to index
    %c0_169 = arith.constant 0 : index
    %c0_170 = arith.constant 0 : index
    %244 = vector.load %arg1[%c2_168, %243, %c0_169, %c0_170] : memref<3x8x2x16xf32, #tpu.memory_space<vmem>>, vector<1x1x2x16xf32>
    %245 = vector.shape_cast %244 : vector<1x1x2x16xf32> to vector<2x16xf32>
    %c0_171 = arith.constant 0 : index
    %c0_172 = arith.constant 0 : index
    %c0_173 = arith.constant 0 : index
    %246 = vector.load %arg2[%c0_171, %c0_172, %c0_173] : memref<3x16x16xf32, #tpu.memory_space<vmem>>, vector<1x16x16xf32>
    %247 = vector.shape_cast %246 : vector<1x16x16xf32> to vector<16x16xf32>
    %cst_174 = arith.constant dense<0.000000e+00> : vector<2x16xf32>
    %248 = tpu.matmul %170, %247, %cst_174 {dimension_numbers = #tpu.dot_dimension_numbers<[1], [0], [0], [1], [0, 0, 1, 1], [], []>} : vector<2x16xf32>, vector<16x16xf32>, vector<2x16xf32> -> vector<2x16xf32>
    %c0_175 = arith.constant 0 : index
    %c0_176 = arith.constant 0 : index
    %c0_177 = arith.constant 0 : index
    %249 = vector.load %arg3[%c0_175, %c0_176, %c0_177] : memref<3x1x16xf32, #tpu.memory_space<vmem>>, vector<1x1x16xf32>
    %250 = vector.shape_cast %249 : vector<1x1x16xf32> to vector<1x16xf32>
    %251 = vector.broadcast %250 : vector<1x16xf32> to vector<2x16xf32>
    %252 = arith.addf %248, %251 : vector<2x16xf32>
    %c1_178 = arith.constant 1 : index
    %c0_179 = arith.constant 0 : index
    %c0_180 = arith.constant 0 : index
    %253 = vector.load %arg2[%c1_178, %c0_179, %c0_180] : memref<3x16x16xf32, #tpu.memory_space<vmem>>, vector<1x16x16xf32>
    %254 = vector.shape_cast %253 : vector<1x16x16xf32> to vector<16x16xf32>
    %cst_181 = arith.constant dense<0.000000e+00> : vector<2x16xf32>
    %255 = tpu.matmul %170, %254, %cst_181 {dimension_numbers = #tpu.dot_dimension_numbers<[1], [0], [0], [1], [0, 0, 1, 1], [], []>} : vector<2x16xf32>, vector<16x16xf32>, vector<2x16xf32> -> vector<2x16xf32>
    %c1_182 = arith.constant 1 : index
    %c0_183 = arith.constant 0 : index
    %c0_184 = arith.constant 0 : index
    %256 = vector.load %arg3[%c1_182, %c0_183, %c0_184] : memref<3x1x16xf32, #tpu.memory_space<vmem>>, vector<1x1x16xf32>
    %257 = vector.shape_cast %256 : vector<1x1x16xf32> to vector<1x16xf32>
    %258 = vector.broadcast %257 : vector<1x16xf32> to vector<2x16xf32>
    %259 = arith.addf %255, %258 : vector<2x16xf32>
    %c2_185 = arith.constant 2 : index
    %c0_186 = arith.constant 0 : index
    %c0_187 = arith.constant 0 : index
    %260 = vector.load %arg2[%c2_185, %c0_186, %c0_187] : memref<3x16x16xf32, #tpu.memory_space<vmem>>, vector<1x16x16xf32>
    %261 = vector.shape_cast %260 : vector<1x16x16xf32> to vector<16x16xf32>
    %cst_188 = arith.constant dense<0.000000e+00> : vector<2x16xf32>
    %262 = tpu.matmul %170, %261, %cst_188 {dimension_numbers = #tpu.dot_dimension_numbers<[1], [0], [0], [1], [0, 0, 1, 1], [], []>} : vector<2x16xf32>, vector<16x16xf32>, vector<2x16xf32> -> vector<2x16xf32>
    %c2_189 = arith.constant 2 : index
    %c0_190 = arith.constant 0 : index
    %c0_191 = arith.constant 0 : index
    %263 = vector.load %arg3[%c2_189, %c0_190, %c0_191] : memref<3x1x16xf32, #tpu.memory_space<vmem>>, vector<1x1x16xf32>
    %264 = vector.shape_cast %263 : vector<1x1x16xf32> to vector<1x16xf32>
    %265 = vector.broadcast %264 : vector<1x16xf32> to vector<2x16xf32>
    %266 = arith.addf %262, %265 : vector<2x16xf32>
    %267 = arith.addf %239, %252 : vector<2x16xf32>
    %268 = arith.negf %267 : vector<2x16xf32>
    %269 = math.exp %268 : vector<2x16xf32>
    %cst_192 = arith.constant 1.000000e+00 : f32
    %270 = vector.broadcast %cst_192 : f32 to vector<2x16xf32>
    %271 = arith.addf %270, %269 : vector<2x16xf32>
    %272 = arith.divf %270, %271 : vector<2x16xf32>
    %273 = arith.addf %242, %259 : vector<2x16xf32>
    %274 = arith.negf %273 : vector<2x16xf32>
    %275 = math.exp %274 : vector<2x16xf32>
    %cst_193 = arith.constant 1.000000e+00 : f32
    %276 = vector.broadcast %cst_193 : f32 to vector<2x16xf32>
    %277 = arith.addf %276, %275 : vector<2x16xf32>
    %278 = arith.divf %276, %277 : vector<2x16xf32>
    %279 = arith.mulf %272, %266 : vector<2x16xf32>
    %280 = arith.addf %245, %279 : vector<2x16xf32>
    %281 = math.tanh %280 : vector<2x16xf32>
    %cst_194 = arith.constant 1.000000e+00 : f32
    %282 = vector.broadcast %cst_194 : f32 to vector<2x16xf32>
    %283 = arith.subf %282, %278 : vector<2x16xf32>
    %284 = arith.mulf %283, %281 : vector<2x16xf32>
    %285 = arith.mulf %278, %170 : vector<2x16xf32>
    %286 = arith.addf %284, %285 : vector<2x16xf32>
    %c0_195 = arith.constant 0 : index
    %c0_196 = arith.constant 0 : index
    %c0_197 = arith.constant 0 : index
    %287 = vector.load %arg4[%c0_195, %c0_196, %c0_197] : memref<3x16x16xf32, #tpu.memory_space<vmem>>, vector<1x16x16xf32>
    %288 = vector.shape_cast %287 : vector<1x16x16xf32> to vector<16x16xf32>
    %cst_198 = arith.constant dense<0.000000e+00> : vector<2x16xf32>
    %289 = tpu.matmul %286, %288, %cst_198 {dimension_numbers = #tpu.dot_dimension_numbers<[1], [0], [0], [1], [0, 0, 1, 1], [], []>} : vector<2x16xf32>, vector<16x16xf32>, vector<2x16xf32> -> vector<2x16xf32>
    %c0_199 = arith.constant 0 : index
    %c0_200 = arith.constant 0 : index
    %c0_201 = arith.constant 0 : index
    %290 = vector.load %arg5[%c0_199, %c0_200, %c0_201] : memref<3x1x16xf32, #tpu.memory_space<vmem>>, vector<1x1x16xf32>
    %291 = vector.shape_cast %290 : vector<1x1x16xf32> to vector<1x16xf32>
    %292 = vector.broadcast %291 : vector<1x16xf32> to vector<2x16xf32>
    %293 = arith.addf %289, %292 : vector<2x16xf32>
    %c1_202 = arith.constant 1 : index
    %c0_203 = arith.constant 0 : index
    %c0_204 = arith.constant 0 : index
    %294 = vector.load %arg4[%c1_202, %c0_203, %c0_204] : memref<3x16x16xf32, #tpu.memory_space<vmem>>, vector<1x16x16xf32>
    %295 = vector.shape_cast %294 : vector<1x16x16xf32> to vector<16x16xf32>
    %cst_205 = arith.constant dense<0.000000e+00> : vector<2x16xf32>
    %296 = tpu.matmul %286, %295, %cst_205 {dimension_numbers = #tpu.dot_dimension_numbers<[1], [0], [0], [1], [0, 0, 1, 1], [], []>} : vector<2x16xf32>, vector<16x16xf32>, vector<2x16xf32> -> vector<2x16xf32>
    %c1_206 = arith.constant 1 : index
    %c0_207 = arith.constant 0 : index
    %c0_208 = arith.constant 0 : index
    %297 = vector.load %arg5[%c1_206, %c0_207, %c0_208] : memref<3x1x16xf32, #tpu.memory_space<vmem>>, vector<1x1x16xf32>
    %298 = vector.shape_cast %297 : vector<1x1x16xf32> to vector<1x16xf32>
    %299 = vector.broadcast %298 : vector<1x16xf32> to vector<2x16xf32>
    %300 = arith.addf %296, %299 : vector<2x16xf32>
    %c2_209 = arith.constant 2 : index
    %c0_210 = arith.constant 0 : index
    %c0_211 = arith.constant 0 : index
    %301 = vector.load %arg4[%c2_209, %c0_210, %c0_211] : memref<3x16x16xf32, #tpu.memory_space<vmem>>, vector<1x16x16xf32>
    %302 = vector.shape_cast %301 : vector<1x16x16xf32> to vector<16x16xf32>
    %cst_212 = arith.constant dense<0.000000e+00> : vector<2x16xf32>
    %303 = tpu.matmul %286, %302, %cst_212 {dimension_numbers = #tpu.dot_dimension_numbers<[1], [0], [0], [1], [0, 0, 1, 1], [], []>} : vector<2x16xf32>, vector<16x16xf32>, vector<2x16xf32> -> vector<2x16xf32>
    %c2_213 = arith.constant 2 : index
    %c0_214 = arith.constant 0 : index
    %c0_215 = arith.constant 0 : index
    %304 = vector.load %arg5[%c2_213, %c0_214, %c0_215] : memref<3x1x16xf32, #tpu.memory_space<vmem>>, vector<1x1x16xf32>
    %305 = vector.shape_cast %304 : vector<1x1x16xf32> to vector<1x16xf32>
    %306 = vector.broadcast %305 : vector<1x16xf32> to vector<2x16xf32>
    %307 = arith.addf %303, %306 : vector<2x16xf32>
    %c0_216 = arith.constant 0 : index
    %c0_217 = arith.constant 0 : index
    %c0_218 = arith.constant 0 : index
    %308 = vector.load %arg6[%c0_216, %c0_217, %c0_218] : memref<3x16x16xf32, #tpu.memory_space<vmem>>, vector<1x16x16xf32>
    %309 = vector.shape_cast %308 : vector<1x16x16xf32> to vector<16x16xf32>
    %cst_219 = arith.constant dense<0.000000e+00> : vector<2x16xf32>
    %310 = tpu.matmul %232, %309, %cst_219 {dimension_numbers = #tpu.dot_dimension_numbers<[1], [0], [0], [1], [0, 0, 1, 1], [], []>} : vector<2x16xf32>, vector<16x16xf32>, vector<2x16xf32> -> vector<2x16xf32>
    %c0_220 = arith.constant 0 : index
    %c0_221 = arith.constant 0 : index
    %c0_222 = arith.constant 0 : index
    %311 = vector.load %arg7[%c0_220, %c0_221, %c0_222] : memref<3x1x16xf32, #tpu.memory_space<vmem>>, vector<1x1x16xf32>
    %312 = vector.shape_cast %311 : vector<1x1x16xf32> to vector<1x16xf32>
    %313 = vector.broadcast %312 : vector<1x16xf32> to vector<2x16xf32>
    %314 = arith.addf %310, %313 : vector<2x16xf32>
    %c1_223 = arith.constant 1 : index
    %c0_224 = arith.constant 0 : index
    %c0_225 = arith.constant 0 : index
    %315 = vector.load %arg6[%c1_223, %c0_224, %c0_225] : memref<3x16x16xf32, #tpu.memory_space<vmem>>, vector<1x16x16xf32>
    %316 = vector.shape_cast %315 : vector<1x16x16xf32> to vector<16x16xf32>
    %cst_226 = arith.constant dense<0.000000e+00> : vector<2x16xf32>
    %317 = tpu.matmul %232, %316, %cst_226 {dimension_numbers = #tpu.dot_dimension_numbers<[1], [0], [0], [1], [0, 0, 1, 1], [], []>} : vector<2x16xf32>, vector<16x16xf32>, vector<2x16xf32> -> vector<2x16xf32>
    %c1_227 = arith.constant 1 : index
    %c0_228 = arith.constant 0 : index
    %c0_229 = arith.constant 0 : index
    %318 = vector.load %arg7[%c1_227, %c0_228, %c0_229] : memref<3x1x16xf32, #tpu.memory_space<vmem>>, vector<1x1x16xf32>
    %319 = vector.shape_cast %318 : vector<1x1x16xf32> to vector<1x16xf32>
    %320 = vector.broadcast %319 : vector<1x16xf32> to vector<2x16xf32>
    %321 = arith.addf %317, %320 : vector<2x16xf32>
    %c2_230 = arith.constant 2 : index
    %c0_231 = arith.constant 0 : index
    %c0_232 = arith.constant 0 : index
    %322 = vector.load %arg6[%c2_230, %c0_231, %c0_232] : memref<3x16x16xf32, #tpu.memory_space<vmem>>, vector<1x16x16xf32>
    %323 = vector.shape_cast %322 : vector<1x16x16xf32> to vector<16x16xf32>
    %cst_233 = arith.constant dense<0.000000e+00> : vector<2x16xf32>
    %324 = tpu.matmul %232, %323, %cst_233 {dimension_numbers = #tpu.dot_dimension_numbers<[1], [0], [0], [1], [0, 0, 1, 1], [], []>} : vector<2x16xf32>, vector<16x16xf32>, vector<2x16xf32> -> vector<2x16xf32>
    %c2_234 = arith.constant 2 : index
    %c0_235 = arith.constant 0 : index
    %c0_236 = arith.constant 0 : index
    %325 = vector.load %arg7[%c2_234, %c0_235, %c0_236] : memref<3x1x16xf32, #tpu.memory_space<vmem>>, vector<1x1x16xf32>
    %326 = vector.shape_cast %325 : vector<1x1x16xf32> to vector<1x16xf32>
    %327 = vector.broadcast %326 : vector<1x16xf32> to vector<2x16xf32>
    %328 = arith.addf %324, %327 : vector<2x16xf32>
    %329 = arith.addf %293, %314 : vector<2x16xf32>
    %330 = arith.negf %329 : vector<2x16xf32>
    %331 = math.exp %330 : vector<2x16xf32>
    %cst_237 = arith.constant 1.000000e+00 : f32
    %332 = vector.broadcast %cst_237 : f32 to vector<2x16xf32>
    %333 = arith.addf %332, %331 : vector<2x16xf32>
    %334 = arith.divf %332, %333 : vector<2x16xf32>
    %335 = arith.addf %300, %321 : vector<2x16xf32>
    %336 = arith.negf %335 : vector<2x16xf32>
    %337 = math.exp %336 : vector<2x16xf32>
    %cst_238 = arith.constant 1.000000e+00 : f32
    %338 = vector.broadcast %cst_238 : f32 to vector<2x16xf32>
    %339 = arith.addf %338, %337 : vector<2x16xf32>
    %340 = arith.divf %338, %339 : vector<2x16xf32>
    %341 = arith.mulf %334, %328 : vector<2x16xf32>
    %342 = arith.addf %307, %341 : vector<2x16xf32>
    %343 = math.tanh %342 : vector<2x16xf32>
    %cst_239 = arith.constant 1.000000e+00 : f32
    %344 = vector.broadcast %cst_239 : f32 to vector<2x16xf32>
    %345 = arith.subf %344, %340 : vector<2x16xf32>
    %346 = arith.mulf %345, %343 : vector<2x16xf32>
    %347 = arith.mulf %340, %232 : vector<2x16xf32>
    %348 = arith.addf %346, %347 : vector<2x16xf32>
    %349 = arith.index_cast %c2_i32 : i32 to index
    %c0_240 = arith.constant 0 : index
    %c0_241 = arith.constant 0 : index
    %350 = vector.load %arg8[%349, %c0_240, %c0_241] : memref<8x2x16xf32, #tpu.memory_space<vmem>>, vector<1x2x16xf32>
    %351 = vector.shape_cast %350 : vector<1x2x16xf32> to vector<2x16xf32>
    %352 = vector.shape_cast %348 : vector<2x16xf32> to vector<1x2x16xf32>
    tpu.vector_store %arg8[%349, %c0_240, %c0_241], %352 {strides = array<i32>} : memref<8x2x16xf32, #tpu.memory_space<vmem>>, vector<1x2x16xf32>,
    %c3_i32 = arith.constant 3 : i32
    %c0_242 = arith.constant 0 : index
    %353 = arith.index_cast %c3_i32 : i32 to index
    %c0_243 = arith.constant 0 : index
    %c0_244 = arith.constant 0 : index
    %354 = vector.load %arg1[%c0_242, %353, %c0_243, %c0_244] : memref<3x8x2x16xf32, #tpu.memory_space<vmem>>, vector<1x1x2x16xf32>
    %355 = vector.shape_cast %354 : vector<1x1x2x16xf32> to vector<2x16xf32>
    %c1_245 = arith.constant 1 : index
    %356 = arith.index_cast %c3_i32 : i32 to index
    %c0_246 = arith.constant 0 : index
    %c0_247 = arith.constant 0 : index
    %357 = vector.load %arg1[%c1_245, %356, %c0_246, %c0_247] : memref<3x8x2x16xf32, #tpu.memory_space<vmem>>, vector<1x1x2x16xf32>
    %358 = vector.shape_cast %357 : vector<1x1x2x16xf32> to vector<2x16xf32>
    %c2_248 = arith.constant 2 : index
    %359 = arith.index_cast %c3_i32 : i32 to index
    %c0_249 = arith.constant 0 : index
    %c0_250 = arith.constant 0 : index
    %360 = vector.load %arg1[%c2_248, %359, %c0_249, %c0_250] : memref<3x8x2x16xf32, #tpu.memory_space<vmem>>, vector<1x1x2x16xf32>
    %361 = vector.shape_cast %360 : vector<1x1x2x16xf32> to vector<2x16xf32>
    %c0_251 = arith.constant 0 : index
    %c0_252 = arith.constant 0 : index
    %c0_253 = arith.constant 0 : index
    %362 = vector.load %arg2[%c0_251, %c0_252, %c0_253] : memref<3x16x16xf32, #tpu.memory_space<vmem>>, vector<1x16x16xf32>
    %363 = vector.shape_cast %362 : vector<1x16x16xf32> to vector<16x16xf32>
    %cst_254 = arith.constant dense<0.000000e+00> : vector<2x16xf32>
    %364 = tpu.matmul %286, %363, %cst_254 {dimension_numbers = #tpu.dot_dimension_numbers<[1], [0], [0], [1], [0, 0, 1, 1], [], []>} : vector<2x16xf32>, vector<16x16xf32>, vector<2x16xf32> -> vector<2x16xf32>
    %c0_255 = arith.constant 0 : index
    %c0_256 = arith.constant 0 : index
    %c0_257 = arith.constant 0 : index
    %365 = vector.load %arg3[%c0_255, %c0_256, %c0_257] : memref<3x1x16xf32, #tpu.memory_space<vmem>>, vector<1x1x16xf32>
    %366 = vector.shape_cast %365 : vector<1x1x16xf32> to vector<1x16xf32>
    %367 = vector.broadcast %366 : vector<1x16xf32> to vector<2x16xf32>
    %368 = arith.addf %364, %367 : vector<2x16xf32>
    %c1_258 = arith.constant 1 : index
    %c0_259 = arith.constant 0 : index
    %c0_260 = arith.constant 0 : index
    %369 = vector.load %arg2[%c1_258, %c0_259, %c0_260] : memref<3x16x16xf32, #tpu.memory_space<vmem>>, vector<1x16x16xf32>
    %370 = vector.shape_cast %369 : vector<1x16x16xf32> to vector<16x16xf32>
    %cst_261 = arith.constant dense<0.000000e+00> : vector<2x16xf32>
    %371 = tpu.matmul %286, %370, %cst_261 {dimension_numbers = #tpu.dot_dimension_numbers<[1], [0], [0], [1], [0, 0, 1, 1], [], []>} : vector<2x16xf32>, vector<16x16xf32>, vector<2x16xf32> -> vector<2x16xf32>
    %c1_262 = arith.constant 1 : index
    %c0_263 = arith.constant 0 : index
    %c0_264 = arith.constant 0 : index
    %372 = vector.load %arg3[%c1_262, %c0_263, %c0_264] : memref<3x1x16xf32, #tpu.memory_space<vmem>>, vector<1x1x16xf32>
    %373 = vector.shape_cast %372 : vector<1x1x16xf32> to vector<1x16xf32>
    %374 = vector.broadcast %373 : vector<1x16xf32> to vector<2x16xf32>
    %375 = arith.addf %371, %374 : vector<2x16xf32>
    %c2_265 = arith.constant 2 : index
    %c0_266 = arith.constant 0 : index
    %c0_267 = arith.constant 0 : index
    %376 = vector.load %arg2[%c2_265, %c0_266, %c0_267] : memref<3x16x16xf32, #tpu.memory_space<vmem>>, vector<1x16x16xf32>
    %377 = vector.shape_cast %376 : vector<1x16x16xf32> to vector<16x16xf32>
    %cst_268 = arith.constant dense<0.000000e+00> : vector<2x16xf32>
    %378 = tpu.matmul %286, %377, %cst_268 {dimension_numbers = #tpu.dot_dimension_numbers<[1], [0], [0], [1], [0, 0, 1, 1], [], []>} : vector<2x16xf32>, vector<16x16xf32>, vector<2x16xf32> -> vector<2x16xf32>
    %c2_269 = arith.constant 2 : index
    %c0_270 = arith.constant 0 : index
    %c0_271 = arith.constant 0 : index
    %379 = vector.load %arg3[%c2_269, %c0_270, %c0_271] : memref<3x1x16xf32, #tpu.memory_space<vmem>>, vector<1x1x16xf32>
    %380 = vector.shape_cast %379 : vector<1x1x16xf32> to vector<1x16xf32>
    %381 = vector.broadcast %380 : vector<1x16xf32> to vector<2x16xf32>
    %382 = arith.addf %378, %381 : vector<2x16xf32>
    %383 = arith.addf %355, %368 : vector<2x16xf32>
    %384 = arith.negf %383 : vector<2x16xf32>
    %385 = math.exp %384 : vector<2x16xf32>
    %cst_272 = arith.constant 1.000000e+00 : f32
    %386 = vector.broadcast %cst_272 : f32 to vector<2x16xf32>
    %387 = arith.addf %386, %385 : vector<2x16xf32>
    %388 = arith.divf %386, %387 : vector<2x16xf32>
    %389 = arith.addf %358, %375 : vector<2x16xf32>
    %390 = arith.negf %389 : vector<2x16xf32>
    %391 = math.exp %390 : vector<2x16xf32>
    %cst_273 = arith.constant 1.000000e+00 : f32
    %392 = vector.broadcast %cst_273 : f32 to vector<2x16xf32>
    %393 = arith.addf %392, %391 : vector<2x16xf32>
    %394 = arith.divf %392, %393 : vector<2x16xf32>
    %395 = arith.mulf %388, %382 : vector<2x16xf32>
    %396 = arith.addf %361, %395 : vector<2x16xf32>
    %397 = math.tanh %396 : vector<2x16xf32>
    %cst_274 = arith.constant 1.000000e+00 : f32
    %398 = vector.broadcast %cst_274 : f32 to vector<2x16xf32>
    %399 = arith.subf %398, %394 : vector<2x16xf32>
    %400 = arith.mulf %399, %397 : vector<2x16xf32>
    %401 = arith.mulf %394, %286 : vector<2x16xf32>
    %402 = arith.addf %400, %401 : vector<2x16xf32>
    %c0_275 = arith.constant 0 : index
    %c0_276 = arith.constant 0 : index
    %c0_277 = arith.constant 0 : index
    %403 = vector.load %arg4[%c0_275, %c0_276, %c0_277] : memref<3x16x16xf32, #tpu.memory_space<vmem>>, vector<1x16x16xf32>
    %404 = vector.shape_cast %403 : vector<1x16x16xf32> to vector<16x16xf32>
    %cst_278 = arith.constant dense<0.000000e+00> : vector<2x16xf32>
    %405 = tpu.matmul %402, %404, %cst_278 {dimension_numbers = #tpu.dot_dimension_numbers<[1], [0], [0], [1], [0, 0, 1, 1], [], []>} : vector<2x16xf32>, vector<16x16xf32>, vector<2x16xf32> -> vector<2x16xf32>
    %c0_279 = arith.constant 0 : index
    %c0_280 = arith.constant 0 : index
    %c0_281 = arith.constant 0 : index
    %406 = vector.load %arg5[%c0_279, %c0_280, %c0_281] : memref<3x1x16xf32, #tpu.memory_space<vmem>>, vector<1x1x16xf32>
    %407 = vector.shape_cast %406 : vector<1x1x16xf32> to vector<1x16xf32>
    %408 = vector.broadcast %407 : vector<1x16xf32> to vector<2x16xf32>
    %409 = arith.addf %405, %408 : vector<2x16xf32>
    %c1_282 = arith.constant 1 : index
    %c0_283 = arith.constant 0 : index
    %c0_284 = arith.constant 0 : index
    %410 = vector.load %arg4[%c1_282, %c0_283, %c0_284] : memref<3x16x16xf32, #tpu.memory_space<vmem>>, vector<1x16x16xf32>
    %411 = vector.shape_cast %410 : vector<1x16x16xf32> to vector<16x16xf32>
    %cst_285 = arith.constant dense<0.000000e+00> : vector<2x16xf32>
    %412 = tpu.matmul %402, %411, %cst_285 {dimension_numbers = #tpu.dot_dimension_numbers<[1], [0], [0], [1], [0, 0, 1, 1], [], []>} : vector<2x16xf32>, vector<16x16xf32>, vector<2x16xf32> -> vector<2x16xf32>
    %c1_286 = arith.constant 1 : index
    %c0_287 = arith.constant 0 : index
    %c0_288 = arith.constant 0 : index
    %413 = vector.load %arg5[%c1_286, %c0_287, %c0_288] : memref<3x1x16xf32, #tpu.memory_space<vmem>>, vector<1x1x16xf32>
    %414 = vector.shape_cast %413 : vector<1x1x16xf32> to vector<1x16xf32>
    %415 = vector.broadcast %414 : vector<1x16xf32> to vector<2x16xf32>
    %416 = arith.addf %412, %415 : vector<2x16xf32>
    %c2_289 = arith.constant 2 : index
    %c0_290 = arith.constant 0 : index
    %c0_291 = arith.constant 0 : index
    %417 = vector.load %arg4[%c2_289, %c0_290, %c0_291] : memref<3x16x16xf32, #tpu.memory_space<vmem>>, vector<1x16x16xf32>
    %418 = vector.shape_cast %417 : vector<1x16x16xf32> to vector<16x16xf32>
    %cst_292 = arith.constant dense<0.000000e+00> : vector<2x16xf32>
    %419 = tpu.matmul %402, %418, %cst_292 {dimension_numbers = #tpu.dot_dimension_numbers<[1], [0], [0], [1], [0, 0, 1, 1], [], []>} : vector<2x16xf32>, vector<16x16xf32>, vector<2x16xf32> -> vector<2x16xf32>
    %c2_293 = arith.constant 2 : index
    %c0_294 = arith.constant 0 : index
    %c0_295 = arith.constant 0 : index
    %420 = vector.load %arg5[%c2_293, %c0_294, %c0_295] : memref<3x1x16xf32, #tpu.memory_space<vmem>>, vector<1x1x16xf32>
    %421 = vector.shape_cast %420 : vector<1x1x16xf32> to vector<1x16xf32>
    %422 = vector.broadcast %421 : vector<1x16xf32> to vector<2x16xf32>
    %423 = arith.addf %419, %422 : vector<2x16xf32>
    %c0_296 = arith.constant 0 : index
    %c0_297 = arith.constant 0 : index
    %c0_298 = arith.constant 0 : index
    %424 = vector.load %arg6[%c0_296, %c0_297, %c0_298] : memref<3x16x16xf32, #tpu.memory_space<vmem>>, vector<1x16x16xf32>
    %425 = vector.shape_cast %424 : vector<1x16x16xf32> to vector<16x16xf32>
    %cst_299 = arith.constant dense<0.000000e+00> : vector<2x16xf32>
    %426 = tpu.matmul %348, %425, %cst_299 {dimension_numbers = #tpu.dot_dimension_numbers<[1], [0], [0], [1], [0, 0, 1, 1], [], []>} : vector<2x16xf32>, vector<16x16xf32>, vector<2x16xf32> -> vector<2x16xf32>
    %c0_300 = arith.constant 0 : index
    %c0_301 = arith.constant 0 : index
    %c0_302 = arith.constant 0 : index
    %427 = vector.load %arg7[%c0_300, %c0_301, %c0_302] : memref<3x1x16xf32, #tpu.memory_space<vmem>>, vector<1x1x16xf32>
    %428 = vector.shape_cast %427 : vector<1x1x16xf32> to vector<1x16xf32>
    %429 = vector.broadcast %428 : vector<1x16xf32> to vector<2x16xf32>
    %430 = arith.addf %426, %429 : vector<2x16xf32>
    %c1_303 = arith.constant 1 : index
    %c0_304 = arith.constant 0 : index
    %c0_305 = arith.constant 0 : index
    %431 = vector.load %arg6[%c1_303, %c0_304, %c0_305] : memref<3x16x16xf32, #tpu.memory_space<vmem>>, vector<1x16x16xf32>
    %432 = vector.shape_cast %431 : vector<1x16x16xf32> to vector<16x16xf32>
    %cst_306 = arith.constant dense<0.000000e+00> : vector<2x16xf32>
    %433 = tpu.matmul %348, %432, %cst_306 {dimension_numbers = #tpu.dot_dimension_numbers<[1], [0], [0], [1], [0, 0, 1, 1], [], []>} : vector<2x16xf32>, vector<16x16xf32>, vector<2x16xf32> -> vector<2x16xf32>
    %c1_307 = arith.constant 1 : index
    %c0_308 = arith.constant 0 : index
    %c0_309 = arith.constant 0 : index
    %434 = vector.load %arg7[%c1_307, %c0_308, %c0_309] : memref<3x1x16xf32, #tpu.memory_space<vmem>>, vector<1x1x16xf32>
    %435 = vector.shape_cast %434 : vector<1x1x16xf32> to vector<1x16xf32>
    %436 = vector.broadcast %435 : vector<1x16xf32> to vector<2x16xf32>
    %437 = arith.addf %433, %436 : vector<2x16xf32>
    %c2_310 = arith.constant 2 : index
    %c0_311 = arith.constant 0 : index
    %c0_312 = arith.constant 0 : index
    %438 = vector.load %arg6[%c2_310, %c0_311, %c0_312] : memref<3x16x16xf32, #tpu.memory_space<vmem>>, vector<1x16x16xf32>
    %439 = vector.shape_cast %438 : vector<1x16x16xf32> to vector<16x16xf32>
    %cst_313 = arith.constant dense<0.000000e+00> : vector<2x16xf32>
    %440 = tpu.matmul %348, %439, %cst_313 {dimension_numbers = #tpu.dot_dimension_numbers<[1], [0], [0], [1], [0, 0, 1, 1], [], []>} : vector<2x16xf32>, vector<16x16xf32>, vector<2x16xf32> -> vector<2x16xf32>
    %c2_314 = arith.constant 2 : index
    %c0_315 = arith.constant 0 : index
    %c0_316 = arith.constant 0 : index
    %441 = vector.load %arg7[%c2_314, %c0_315, %c0_316] : memref<3x1x16xf32, #tpu.memory_space<vmem>>, vector<1x1x16xf32>
    %442 = vector.shape_cast %441 : vector<1x1x16xf32> to vector<1x16xf32>
    %443 = vector.broadcast %442 : vector<1x16xf32> to vector<2x16xf32>
    %444 = arith.addf %440, %443 : vector<2x16xf32>
    %445 = arith.addf %409, %430 : vector<2x16xf32>
    %446 = arith.negf %445 : vector<2x16xf32>
    %447 = math.exp %446 : vector<2x16xf32>
    %cst_317 = arith.constant 1.000000e+00 : f32
    %448 = vector.broadcast %cst_317 : f32 to vector<2x16xf32>
    %449 = arith.addf %448, %447 : vector<2x16xf32>
    %450 = arith.divf %448, %449 : vector<2x16xf32>
    %451 = arith.addf %416, %437 : vector<2x16xf32>
    %452 = arith.negf %451 : vector<2x16xf32>
    %453 = math.exp %452 : vector<2x16xf32>
    %cst_318 = arith.constant 1.000000e+00 : f32
    %454 = vector.broadcast %cst_318 : f32 to vector<2x16xf32>
    %455 = arith.addf %454, %453 : vector<2x16xf32>
    %456 = arith.divf %454, %455 : vector<2x16xf32>
    %457 = arith.mulf %450, %444 : vector<2x16xf32>
    %458 = arith.addf %423, %457 : vector<2x16xf32>
    %459 = math.tanh %458 : vector<2x16xf32>
    %cst_319 = arith.constant 1.000000e+00 : f32
    %460 = vector.broadcast %cst_319 : f32 to vector<2x16xf32>
    %461 = arith.subf %460, %456 : vector<2x16xf32>
    %462 = arith.mulf %461, %459 : vector<2x16xf32>
    %463 = arith.mulf %456, %348 : vector<2x16xf32>
    %464 = arith.addf %462, %463 : vector<2x16xf32>
    %465 = arith.index_cast %c3_i32 : i32 to index
    %c0_320 = arith.constant 0 : index
    %c0_321 = arith.constant 0 : index
    %466 = vector.load %arg8[%465, %c0_320, %c0_321] : memref<8x2x16xf32, #tpu.memory_space<vmem>>, vector<1x2x16xf32>
    %467 = vector.shape_cast %466 : vector<1x2x16xf32> to vector<2x16xf32>
    %468 = vector.shape_cast %464 : vector<2x16xf32> to vector<1x2x16xf32>
    tpu.vector_store %arg8[%465, %c0_320, %c0_321], %468 {strides = array<i32>} : memref<8x2x16xf32, #tpu.memory_space<vmem>>, vector<1x2x16xf32>,
    %c4_i32 = arith.constant 4 : i32
    %c0_322 = arith.constant 0 : index
    %469 = arith.index_cast %c4_i32 : i32 to index
    %c0_323 = arith.constant 0 : index
    %c0_324 = arith.constant 0 : index
    %470 = vector.load %arg1[%c0_322, %469, %c0_323, %c0_324] : memref<3x8x2x16xf32, #tpu.memory_space<vmem>>, vector<1x1x2x16xf32>
    %471 = vector.shape_cast %470 : vector<1x1x2x16xf32> to vector<2x16xf32>
    %c1_325 = arith.constant 1 : index
    %472 = arith.index_cast %c4_i32 : i32 to index
    %c0_326 = arith.constant 0 : index
    %c0_327 = arith.constant 0 : index
    %473 = vector.load %arg1[%c1_325, %472, %c0_326, %c0_327] : memref<3x8x2x16xf32, #tpu.memory_space<vmem>>, vector<1x1x2x16xf32>
    %474 = vector.shape_cast %473 : vector<1x1x2x16xf32> to vector<2x16xf32>
    %c2_328 = arith.constant 2 : index
    %475 = arith.index_cast %c4_i32 : i32 to index
    %c0_329 = arith.constant 0 : index
    %c0_330 = arith.constant 0 : index
    %476 = vector.load %arg1[%c2_328, %475, %c0_329, %c0_330] : memref<3x8x2x16xf32, #tpu.memory_space<vmem>>, vector<1x1x2x16xf32>
    %477 = vector.shape_cast %476 : vector<1x1x2x16xf32> to vector<2x16xf32>
    %c0_331 = arith.constant 0 : index
    %c0_332 = arith.constant 0 : index
    %c0_333 = arith.constant 0 : index
    %478 = vector.load %arg2[%c0_331, %c0_332, %c0_333] : memref<3x16x16xf32, #tpu.memory_space<vmem>>, vector<1x16x16xf32>
    %479 = vector.shape_cast %478 : vector<1x16x16xf32> to vector<16x16xf32>
    %cst_334 = arith.constant dense<0.000000e+00> : vector<2x16xf32>
    %480 = tpu.matmul %402, %479, %cst_334 {dimension_numbers = #tpu.dot_dimension_numbers<[1], [0], [0], [1], [0, 0, 1, 1], [], []>} : vector<2x16xf32>, vector<16x16xf32>, vector<2x16xf32> -> vector<2x16xf32>
    %c0_335 = arith.constant 0 : index
    %c0_336 = arith.constant 0 : index
    %c0_337 = arith.constant 0 : index
    %481 = vector.load %arg3[%c0_335, %c0_336, %c0_337] : memref<3x1x16xf32, #tpu.memory_space<vmem>>, vector<1x1x16xf32>
    %482 = vector.shape_cast %481 : vector<1x1x16xf32> to vector<1x16xf32>
    %483 = vector.broadcast %482 : vector<1x16xf32> to vector<2x16xf32>
    %484 = arith.addf %480, %483 : vector<2x16xf32>
    %c1_338 = arith.constant 1 : index
    %c0_339 = arith.constant 0 : index
    %c0_340 = arith.constant 0 : index
    %485 = vector.load %arg2[%c1_338, %c0_339, %c0_340] : memref<3x16x16xf32, #tpu.memory_space<vmem>>, vector<1x16x16xf32>
    %486 = vector.shape_cast %485 : vector<1x16x16xf32> to vector<16x16xf32>
    %cst_341 = arith.constant dense<0.000000e+00> : vector<2x16xf32>
    %487 = tpu.matmul %402, %486, %cst_341 {dimension_numbers = #tpu.dot_dimension_numbers<[1], [0], [0], [1], [0, 0, 1, 1], [], []>} : vector<2x16xf32>, vector<16x16xf32>, vector<2x16xf32> -> vector<2x16xf32>
    %c1_342 = arith.constant 1 : index
    %c0_343 = arith.constant 0 : index
    %c0_344 = arith.constant 0 : index
    %488 = vector.load %arg3[%c1_342, %c0_343, %c0_344] : memref<3x1x16xf32, #tpu.memory_space<vmem>>, vector<1x1x16xf32>
    %489 = vector.shape_cast %488 : vector<1x1x16xf32> to vector<1x16xf32>
    %490 = vector.broadcast %489 : vector<1x16xf32> to vector<2x16xf32>
    %491 = arith.addf %487, %490 : vector<2x16xf32>
    %c2_345 = arith.constant 2 : index
    %c0_346 = arith.constant 0 : index
    %c0_347 = arith.constant 0 : index
    %492 = vector.load %arg2[%c2_345, %c0_346, %c0_347] : memref<3x16x16xf32, #tpu.memory_space<vmem>>, vector<1x16x16xf32>
    %493 = vector.shape_cast %492 : vector<1x16x16xf32> to vector<16x16xf32>
    %cst_348 = arith.constant dense<0.000000e+00> : vector<2x16xf32>
    %494 = tpu.matmul %402, %493, %cst_348 {dimension_numbers = #tpu.dot_dimension_numbers<[1], [0], [0], [1], [0, 0, 1, 1], [], []>} : vector<2x16xf32>, vector<16x16xf32>, vector<2x16xf32> -> vector<2x16xf32>
    %c2_349 = arith.constant 2 : index
    %c0_350 = arith.constant 0 : index
    %c0_351 = arith.constant 0 : index
    %495 = vector.load %arg3[%c2_349, %c0_350, %c0_351] : memref<3x1x16xf32, #tpu.memory_space<vmem>>, vector<1x1x16xf32>
    %496 = vector.shape_cast %495 : vector<1x1x16xf32> to vector<1x16xf32>
    %497 = vector.broadcast %496 : vector<1x16xf32> to vector<2x16xf32>
    %498 = arith.addf %494, %497 : vector<2x16xf32>
    %499 = arith.addf %471, %484 : vector<2x16xf32>
    %500 = arith.negf %499 : vector<2x16xf32>
    %501 = math.exp %500 : vector<2x16xf32>
    %cst_352 = arith.constant 1.000000e+00 : f32
    %502 = vector.broadcast %cst_352 : f32 to vector<2x16xf32>
    %503 = arith.addf %502, %501 : vector<2x16xf32>
    %504 = arith.divf %502, %503 : vector<2x16xf32>
    %505 = arith.addf %474, %491 : vector<2x16xf32>
    %506 = arith.negf %505 : vector<2x16xf32>
    %507 = math.exp %506 : vector<2x16xf32>
    %cst_353 = arith.constant 1.000000e+00 : f32
    %508 = vector.broadcast %cst_353 : f32 to vector<2x16xf32>
    %509 = arith.addf %508, %507 : vector<2x16xf32>
    %510 = arith.divf %508, %509 : vector<2x16xf32>
    %511 = arith.mulf %504, %498 : vector<2x16xf32>
    %512 = arith.addf %477, %511 : vector<2x16xf32>
    %513 = math.tanh %512 : vector<2x16xf32>
    %cst_354 = arith.constant 1.000000e+00 : f32
    %514 = vector.broadcast %cst_354 : f32 to vector<2x16xf32>
    %515 = arith.subf %514, %510 : vector<2x16xf32>
    %516 = arith.mulf %515, %513 : vector<2x16xf32>
    %517 = arith.mulf %510, %402 : vector<2x16xf32>
    %518 = arith.addf %516, %517 : vector<2x16xf32>
    %c0_355 = arith.constant 0 : index
    %c0_356 = arith.constant 0 : index
    %c0_357 = arith.constant 0 : index
    %519 = vector.load %arg4[%c0_355, %c0_356, %c0_357] : memref<3x16x16xf32, #tpu.memory_space<vmem>>, vector<1x16x16xf32>
    %520 = vector.shape_cast %519 : vector<1x16x16xf32> to vector<16x16xf32>
    %cst_358 = arith.constant dense<0.000000e+00> : vector<2x16xf32>
    %521 = tpu.matmul %518, %520, %cst_358 {dimension_numbers = #tpu.dot_dimension_numbers<[1], [0], [0], [1], [0, 0, 1, 1], [], []>} : vector<2x16xf32>, vector<16x16xf32>, vector<2x16xf32> -> vector<2x16xf32>
    %c0_359 = arith.constant 0 : index
    %c0_360 = arith.constant 0 : index
    %c0_361 = arith.constant 0 : index
    %522 = vector.load %arg5[%c0_359, %c0_360, %c0_361] : memref<3x1x16xf32, #tpu.memory_space<vmem>>, vector<1x1x16xf32>
    %523 = vector.shape_cast %522 : vector<1x1x16xf32> to vector<1x16xf32>
    %524 = vector.broadcast %523 : vector<1x16xf32> to vector<2x16xf32>
    %525 = arith.addf %521, %524 : vector<2x16xf32>
    %c1_362 = arith.constant 1 : index
    %c0_363 = arith.constant 0 : index
    %c0_364 = arith.constant 0 : index
    %526 = vector.load %arg4[%c1_362, %c0_363, %c0_364] : memref<3x16x16xf32, #tpu.memory_space<vmem>>, vector<1x16x16xf32>
    %527 = vector.shape_cast %526 : vector<1x16x16xf32> to vector<16x16xf32>
    %cst_365 = arith.constant dense<0.000000e+00> : vector<2x16xf32>
    %528 = tpu.matmul %518, %527, %cst_365 {dimension_numbers = #tpu.dot_dimension_numbers<[1], [0], [0], [1], [0, 0, 1, 1], [], []>} : vector<2x16xf32>, vector<16x16xf32>, vector<2x16xf32> -> vector<2x16xf32>
    %c1_366 = arith.constant 1 : index
    %c0_367 = arith.constant 0 : index
    %c0_368 = arith.constant 0 : index
    %529 = vector.load %arg5[%c1_366, %c0_367, %c0_368] : memref<3x1x16xf32, #tpu.memory_space<vmem>>, vector<1x1x16xf32>
    %530 = vector.shape_cast %529 : vector<1x1x16xf32> to vector<1x16xf32>
    %531 = vector.broadcast %530 : vector<1x16xf32> to vector<2x16xf32>
    %532 = arith.addf %528, %531 : vector<2x16xf32>
    %c2_369 = arith.constant 2 : index
    %c0_370 = arith.constant 0 : index
    %c0_371 = arith.constant 0 : index
    %533 = vector.load %arg4[%c2_369, %c0_370, %c0_371] : memref<3x16x16xf32, #tpu.memory_space<vmem>>, vector<1x16x16xf32>
    %534 = vector.shape_cast %533 : vector<1x16x16xf32> to vector<16x16xf32>
    %cst_372 = arith.constant dense<0.000000e+00> : vector<2x16xf32>
    %535 = tpu.matmul %518, %534, %cst_372 {dimension_numbers = #tpu.dot_dimension_numbers<[1], [0], [0], [1], [0, 0, 1, 1], [], []>} : vector<2x16xf32>, vector<16x16xf32>, vector<2x16xf32> -> vector<2x16xf32>
    %c2_373 = arith.constant 2 : index
    %c0_374 = arith.constant 0 : index
    %c0_375 = arith.constant 0 : index
    %536 = vector.load %arg5[%c2_373, %c0_374, %c0_375] : memref<3x1x16xf32, #tpu.memory_space<vmem>>, vector<1x1x16xf32>
    %537 = vector.shape_cast %536 : vector<1x1x16xf32> to vector<1x16xf32>
    %538 = vector.broadcast %537 : vector<1x16xf32> to vector<2x16xf32>
    %539 = arith.addf %535, %538 : vector<2x16xf32>
    %c0_376 = arith.constant 0 : index
    %c0_377 = arith.constant 0 : index
    %c0_378 = arith.constant 0 : index
    %540 = vector.load %arg6[%c0_376, %c0_377, %c0_378] : memref<3x16x16xf32, #tpu.memory_space<vmem>>, vector<1x16x16xf32>
    %541 = vector.shape_cast %540 : vector<1x16x16xf32> to vector<16x16xf32>
    %cst_379 = arith.constant dense<0.000000e+00> : vector<2x16xf32>
    %542 = tpu.matmul %464, %541, %cst_379 {dimension_numbers = #tpu.dot_dimension_numbers<[1], [0], [0], [1], [0, 0, 1, 1], [], []>} : vector<2x16xf32>, vector<16x16xf32>, vector<2x16xf32> -> vector<2x16xf32>
    %c0_380 = arith.constant 0 : index
    %c0_381 = arith.constant 0 : index
    %c0_382 = arith.constant 0 : index
    %543 = vector.load %arg7[%c0_380, %c0_381, %c0_382] : memref<3x1x16xf32, #tpu.memory_space<vmem>>, vector<1x1x16xf32>
    %544 = vector.shape_cast %543 : vector<1x1x16xf32> to vector<1x16xf32>
    %545 = vector.broadcast %544 : vector<1x16xf32> to vector<2x16xf32>
    %546 = arith.addf %542, %545 : vector<2x16xf32>
    %c1_383 = arith.constant 1 : index
    %c0_384 = arith.constant 0 : index
    %c0_385 = arith.constant 0 : index
    %547 = vector.load %arg6[%c1_383, %c0_384, %c0_385] : memref<3x16x16xf32, #tpu.memory_space<vmem>>, vector<1x16x16xf32>
    %548 = vector.shape_cast %547 : vector<1x16x16xf32> to vector<16x16xf32>
    %cst_386 = arith.constant dense<0.000000e+00> : vector<2x16xf32>
    %549 = tpu.matmul %464, %548, %cst_386 {dimension_numbers = #tpu.dot_dimension_numbers<[1], [0], [0], [1], [0, 0, 1, 1], [], []>} : vector<2x16xf32>, vector<16x16xf32>, vector<2x16xf32> -> vector<2x16xf32>
    %c1_387 = arith.constant 1 : index
    %c0_388 = arith.constant 0 : index
    %c0_389 = arith.constant 0 : index
    %550 = vector.load %arg7[%c1_387, %c0_388, %c0_389] : memref<3x1x16xf32, #tpu.memory_space<vmem>>, vector<1x1x16xf32>
    %551 = vector.shape_cast %550 : vector<1x1x16xf32> to vector<1x16xf32>
    %552 = vector.broadcast %551 : vector<1x16xf32> to vector<2x16xf32>
    %553 = arith.addf %549, %552 : vector<2x16xf32>
    %c2_390 = arith.constant 2 : index
    %c0_391 = arith.constant 0 : index
    %c0_392 = arith.constant 0 : index
    %554 = vector.load %arg6[%c2_390, %c0_391, %c0_392] : memref<3x16x16xf32, #tpu.memory_space<vmem>>, vector<1x16x16xf32>
    %555 = vector.shape_cast %554 : vector<1x16x16xf32> to vector<16x16xf32>
    %cst_393 = arith.constant dense<0.000000e+00> : vector<2x16xf32>
    %556 = tpu.matmul %464, %555, %cst_393 {dimension_numbers = #tpu.dot_dimension_numbers<[1], [0], [0], [1], [0, 0, 1, 1], [], []>} : vector<2x16xf32>, vector<16x16xf32>, vector<2x16xf32> -> vector<2x16xf32>
    %c2_394 = arith.constant 2 : index
    %c0_395 = arith.constant 0 : index
    %c0_396 = arith.constant 0 : index
    %557 = vector.load %arg7[%c2_394, %c0_395, %c0_396] : memref<3x1x16xf32, #tpu.memory_space<vmem>>, vector<1x1x16xf32>
    %558 = vector.shape_cast %557 : vector<1x1x16xf32> to vector<1x16xf32>
    %559 = vector.broadcast %558 : vector<1x16xf32> to vector<2x16xf32>
    %560 = arith.addf %556, %559 : vector<2x16xf32>
    %561 = arith.addf %525, %546 : vector<2x16xf32>
    %562 = arith.negf %561 : vector<2x16xf32>
    %563 = math.exp %562 : vector<2x16xf32>
    %cst_397 = arith.constant 1.000000e+00 : f32
    %564 = vector.broadcast %cst_397 : f32 to vector<2x16xf32>
    %565 = arith.addf %564, %563 : vector<2x16xf32>
    %566 = arith.divf %564, %565 : vector<2x16xf32>
    %567 = arith.addf %532, %553 : vector<2x16xf32>
    %568 = arith.negf %567 : vector<2x16xf32>
    %569 = math.exp %568 : vector<2x16xf32>
    %cst_398 = arith.constant 1.000000e+00 : f32
    %570 = vector.broadcast %cst_398 : f32 to vector<2x16xf32>
    %571 = arith.addf %570, %569 : vector<2x16xf32>
    %572 = arith.divf %570, %571 : vector<2x16xf32>
    %573 = arith.mulf %566, %560 : vector<2x16xf32>
    %574 = arith.addf %539, %573 : vector<2x16xf32>
    %575 = math.tanh %574 : vector<2x16xf32>
    %cst_399 = arith.constant 1.000000e+00 : f32
    %576 = vector.broadcast %cst_399 : f32 to vector<2x16xf32>
    %577 = arith.subf %576, %572 : vector<2x16xf32>
    %578 = arith.mulf %577, %575 : vector<2x16xf32>
    %579 = arith.mulf %572, %464 : vector<2x16xf32>
    %580 = arith.addf %578, %579 : vector<2x16xf32>
    %581 = arith.index_cast %c4_i32 : i32 to index
    %c0_400 = arith.constant 0 : index
    %c0_401 = arith.constant 0 : index
    %582 = vector.load %arg8[%581, %c0_400, %c0_401] : memref<8x2x16xf32, #tpu.memory_space<vmem>>, vector<1x2x16xf32>
    %583 = vector.shape_cast %582 : vector<1x2x16xf32> to vector<2x16xf32>
    %584 = vector.shape_cast %580 : vector<2x16xf32> to vector<1x2x16xf32>
    tpu.vector_store %arg8[%581, %c0_400, %c0_401], %584 {strides = array<i32>} : memref<8x2x16xf32, #tpu.memory_space<vmem>>, vector<1x2x16xf32>,
    %c5_i32 = arith.constant 5 : i32
    %c0_402 = arith.constant 0 : index
    %585 = arith.index_cast %c5_i32 : i32 to index
    %c0_403 = arith.constant 0 : index
    %c0_404 = arith.constant 0 : index
    %586 = vector.load %arg1[%c0_402, %585, %c0_403, %c0_404] : memref<3x8x2x16xf32, #tpu.memory_space<vmem>>, vector<1x1x2x16xf32>
    %587 = vector.shape_cast %586 : vector<1x1x2x16xf32> to vector<2x16xf32>
    %c1_405 = arith.constant 1 : index
    %588 = arith.index_cast %c5_i32 : i32 to index
    %c0_406 = arith.constant 0 : index
    %c0_407 = arith.constant 0 : index
    %589 = vector.load %arg1[%c1_405, %588, %c0_406, %c0_407] : memref<3x8x2x16xf32, #tpu.memory_space<vmem>>, vector<1x1x2x16xf32>
    %590 = vector.shape_cast %589 : vector<1x1x2x16xf32> to vector<2x16xf32>
    %c2_408 = arith.constant 2 : index
    %591 = arith.index_cast %c5_i32 : i32 to index
    %c0_409 = arith.constant 0 : index
    %c0_410 = arith.constant 0 : index
    %592 = vector.load %arg1[%c2_408, %591, %c0_409, %c0_410] : memref<3x8x2x16xf32, #tpu.memory_space<vmem>>, vector<1x1x2x16xf32>
    %593 = vector.shape_cast %592 : vector<1x1x2x16xf32> to vector<2x16xf32>
    %c0_411 = arith.constant 0 : index
    %c0_412 = arith.constant 0 : index
    %c0_413 = arith.constant 0 : index
    %594 = vector.load %arg2[%c0_411, %c0_412, %c0_413] : memref<3x16x16xf32, #tpu.memory_space<vmem>>, vector<1x16x16xf32>
    %595 = vector.shape_cast %594 : vector<1x16x16xf32> to vector<16x16xf32>
    %cst_414 = arith.constant dense<0.000000e+00> : vector<2x16xf32>
    %596 = tpu.matmul %518, %595, %cst_414 {dimension_numbers = #tpu.dot_dimension_numbers<[1], [0], [0], [1], [0, 0, 1, 1], [], []>} : vector<2x16xf32>, vector<16x16xf32>, vector<2x16xf32> -> vector<2x16xf32>
    %c0_415 = arith.constant 0 : index
    %c0_416 = arith.constant 0 : index
    %c0_417 = arith.constant 0 : index
    %597 = vector.load %arg3[%c0_415, %c0_416, %c0_417] : memref<3x1x16xf32, #tpu.memory_space<vmem>>, vector<1x1x16xf32>
    %598 = vector.shape_cast %597 : vector<1x1x16xf32> to vector<1x16xf32>
    %599 = vector.broadcast %598 : vector<1x16xf32> to vector<2x16xf32>
    %600 = arith.addf %596, %599 : vector<2x16xf32>
    %c1_418 = arith.constant 1 : index
    %c0_419 = arith.constant 0 : index
    %c0_420 = arith.constant 0 : index
    %601 = vector.load %arg2[%c1_418, %c0_419, %c0_420] : memref<3x16x16xf32, #tpu.memory_space<vmem>>, vector<1x16x16xf32>
    %602 = vector.shape_cast %601 : vector<1x16x16xf32> to vector<16x16xf32>
    %cst_421 = arith.constant dense<0.000000e+00> : vector<2x16xf32>
    %603 = tpu.matmul %518, %602, %cst_421 {dimension_numbers = #tpu.dot_dimension_numbers<[1], [0], [0], [1], [0, 0, 1, 1], [], []>} : vector<2x16xf32>, vector<16x16xf32>, vector<2x16xf32> -> vector<2x16xf32>
    %c1_422 = arith.constant 1 : index
    %c0_423 = arith.constant 0 : index
    %c0_424 = arith.constant 0 : index
    %604 = vector.load %arg3[%c1_422, %c0_423, %c0_424] : memref<3x1x16xf32, #tpu.memory_space<vmem>>, vector<1x1x16xf32>
    %605 = vector.shape_cast %604 : vector<1x1x16xf32> to vector<1x16xf32>
    %606 = vector.broadcast %605 : vector<1x16xf32> to vector<2x16xf32>
    %607 = arith.addf %603, %606 : vector<2x16xf32>
    %c2_425 = arith.constant 2 : index
    %c0_426 = arith.constant 0 : index
    %c0_427 = arith.constant 0 : index
    %608 = vector.load %arg2[%c2_425, %c0_426, %c0_427] : memref<3x16x16xf32, #tpu.memory_space<vmem>>, vector<1x16x16xf32>
    %609 = vector.shape_cast %608 : vector<1x16x16xf32> to vector<16x16xf32>
    %cst_428 = arith.constant dense<0.000000e+00> : vector<2x16xf32>
    %610 = tpu.matmul %518, %609, %cst_428 {dimension_numbers = #tpu.dot_dimension_numbers<[1], [0], [0], [1], [0, 0, 1, 1], [], []>} : vector<2x16xf32>, vector<16x16xf32>, vector<2x16xf32> -> vector<2x16xf32>
    %c2_429 = arith.constant 2 : index
    %c0_430 = arith.constant 0 : index
    %c0_431 = arith.constant 0 : index
    %611 = vector.load %arg3[%c2_429, %c0_430, %c0_431] : memref<3x1x16xf32, #tpu.memory_space<vmem>>, vector<1x1x16xf32>
    %612 = vector.shape_cast %611 : vector<1x1x16xf32> to vector<1x16xf32>
    %613 = vector.broadcast %612 : vector<1x16xf32> to vector<2x16xf32>
    %614 = arith.addf %610, %613 : vector<2x16xf32>
    %615 = arith.addf %587, %600 : vector<2x16xf32>
    %616 = arith.negf %615 : vector<2x16xf32>
    %617 = math.exp %616 : vector<2x16xf32>
    %cst_432 = arith.constant 1.000000e+00 : f32
    %618 = vector.broadcast %cst_432 : f32 to vector<2x16xf32>
    %619 = arith.addf %618, %617 : vector<2x16xf32>
    %620 = arith.divf %618, %619 : vector<2x16xf32>
    %621 = arith.addf %590, %607 : vector<2x16xf32>
    %622 = arith.negf %621 : vector<2x16xf32>
    %623 = math.exp %622 : vector<2x16xf32>
    %cst_433 = arith.constant 1.000000e+00 : f32
    %624 = vector.broadcast %cst_433 : f32 to vector<2x16xf32>
    %625 = arith.addf %624, %623 : vector<2x16xf32>
    %626 = arith.divf %624, %625 : vector<2x16xf32>
    %627 = arith.mulf %620, %614 : vector<2x16xf32>
    %628 = arith.addf %593, %627 : vector<2x16xf32>
    %629 = math.tanh %628 : vector<2x16xf32>
    %cst_434 = arith.constant 1.000000e+00 : f32
    %630 = vector.broadcast %cst_434 : f32 to vector<2x16xf32>
    %631 = arith.subf %630, %626 : vector<2x16xf32>
    %632 = arith.mulf %631, %629 : vector<2x16xf32>
    %633 = arith.mulf %626, %518 : vector<2x16xf32>
    %634 = arith.addf %632, %633 : vector<2x16xf32>
    %c0_435 = arith.constant 0 : index
    %c0_436 = arith.constant 0 : index
    %c0_437 = arith.constant 0 : index
    %635 = vector.load %arg4[%c0_435, %c0_436, %c0_437] : memref<3x16x16xf32, #tpu.memory_space<vmem>>, vector<1x16x16xf32>
    %636 = vector.shape_cast %635 : vector<1x16x16xf32> to vector<16x16xf32>
    %cst_438 = arith.constant dense<0.000000e+00> : vector<2x16xf32>
    %637 = tpu.matmul %634, %636, %cst_438 {dimension_numbers = #tpu.dot_dimension_numbers<[1], [0], [0], [1], [0, 0, 1, 1], [], []>} : vector<2x16xf32>, vector<16x16xf32>, vector<2x16xf32> -> vector<2x16xf32>
    %c0_439 = arith.constant 0 : index
    %c0_440 = arith.constant 0 : index
    %c0_441 = arith.constant 0 : index
    %638 = vector.load %arg5[%c0_439, %c0_440, %c0_441] : memref<3x1x16xf32, #tpu.memory_space<vmem>>, vector<1x1x16xf32>
    %639 = vector.shape_cast %638 : vector<1x1x16xf32> to vector<1x16xf32>
    %640 = vector.broadcast %639 : vector<1x16xf32> to vector<2x16xf32>
    %641 = arith.addf %637, %640 : vector<2x16xf32>
    %c1_442 = arith.constant 1 : index
    %c0_443 = arith.constant 0 : index
    %c0_444 = arith.constant 0 : index
    %642 = vector.load %arg4[%c1_442, %c0_443, %c0_444] : memref<3x16x16xf32, #tpu.memory_space<vmem>>, vector<1x16x16xf32>
    %643 = vector.shape_cast %642 : vector<1x16x16xf32> to vector<16x16xf32>
    %cst_445 = arith.constant dense<0.000000e+00> : vector<2x16xf32>
    %644 = tpu.matmul %634, %643, %cst_445 {dimension_numbers = #tpu.dot_dimension_numbers<[1], [0], [0], [1], [0, 0, 1, 1], [], []>} : vector<2x16xf32>, vector<16x16xf32>, vector<2x16xf32> -> vector<2x16xf32>
    %c1_446 = arith.constant 1 : index
    %c0_447 = arith.constant 0 : index
    %c0_448 = arith.constant 0 : index
    %645 = vector.load %arg5[%c1_446, %c0_447, %c0_448] : memref<3x1x16xf32, #tpu.memory_space<vmem>>, vector<1x1x16xf32>
    %646 = vector.shape_cast %645 : vector<1x1x16xf32> to vector<1x16xf32>
    %647 = vector.broadcast %646 : vector<1x16xf32> to vector<2x16xf32>
    %648 = arith.addf %644, %647 : vector<2x16xf32>
    %c2_449 = arith.constant 2 : index
    %c0_450 = arith.constant 0 : index
    %c0_451 = arith.constant 0 : index
    %649 = vector.load %arg4[%c2_449, %c0_450, %c0_451] : memref<3x16x16xf32, #tpu.memory_space<vmem>>, vector<1x16x16xf32>
    %650 = vector.shape_cast %649 : vector<1x16x16xf32> to vector<16x16xf32>
    %cst_452 = arith.constant dense<0.000000e+00> : vector<2x16xf32>
    %651 = tpu.matmul %634, %650, %cst_452 {dimension_numbers = #tpu.dot_dimension_numbers<[1], [0], [0], [1], [0, 0, 1, 1], [], []>} : vector<2x16xf32>, vector<16x16xf32>, vector<2x16xf32> -> vector<2x16xf32>
    %c2_453 = arith.constant 2 : index
    %c0_454 = arith.constant 0 : index
    %c0_455 = arith.constant 0 : index
    %652 = vector.load %arg5[%c2_453, %c0_454, %c0_455] : memref<3x1x16xf32, #tpu.memory_space<vmem>>, vector<1x1x16xf32>
    %653 = vector.shape_cast %652 : vector<1x1x16xf32> to vector<1x16xf32>
    %654 = vector.broadcast %653 : vector<1x16xf32> to vector<2x16xf32>
    %655 = arith.addf %651, %654 : vector<2x16xf32>
    %c0_456 = arith.constant 0 : index
    %c0_457 = arith.constant 0 : index
    %c0_458 = arith.constant 0 : index
    %656 = vector.load %arg6[%c0_456, %c0_457, %c0_458] : memref<3x16x16xf32, #tpu.memory_space<vmem>>, vector<1x16x16xf32>
    %657 = vector.shape_cast %656 : vector<1x16x16xf32> to vector<16x16xf32>
    %cst_459 = arith.constant dense<0.000000e+00> : vector<2x16xf32>
    %658 = tpu.matmul %580, %657, %cst_459 {dimension_numbers = #tpu.dot_dimension_numbers<[1], [0], [0], [1], [0, 0, 1, 1], [], []>} : vector<2x16xf32>, vector<16x16xf32>, vector<2x16xf32> -> vector<2x16xf32>
    %c0_460 = arith.constant 0 : index
    %c0_461 = arith.constant 0 : index
    %c0_462 = arith.constant 0 : index
    %659 = vector.load %arg7[%c0_460, %c0_461, %c0_462] : memref<3x1x16xf32, #tpu.memory_space<vmem>>, vector<1x1x16xf32>
    %660 = vector.shape_cast %659 : vector<1x1x16xf32> to vector<1x16xf32>
    %661 = vector.broadcast %660 : vector<1x16xf32> to vector<2x16xf32>
    %662 = arith.addf %658, %661 : vector<2x16xf32>
    %c1_463 = arith.constant 1 : index
    %c0_464 = arith.constant 0 : index
    %c0_465 = arith.constant 0 : index
    %663 = vector.load %arg6[%c1_463, %c0_464, %c0_465] : memref<3x16x16xf32, #tpu.memory_space<vmem>>, vector<1x16x16xf32>
    %664 = vector.shape_cast %663 : vector<1x16x16xf32> to vector<16x16xf32>
    %cst_466 = arith.constant dense<0.000000e+00> : vector<2x16xf32>
    %665 = tpu.matmul %580, %664, %cst_466 {dimension_numbers = #tpu.dot_dimension_numbers<[1], [0], [0], [1], [0, 0, 1, 1], [], []>} : vector<2x16xf32>, vector<16x16xf32>, vector<2x16xf32> -> vector<2x16xf32>
    %c1_467 = arith.constant 1 : index
    %c0_468 = arith.constant 0 : index
    %c0_469 = arith.constant 0 : index
    %666 = vector.load %arg7[%c1_467, %c0_468, %c0_469] : memref<3x1x16xf32, #tpu.memory_space<vmem>>, vector<1x1x16xf32>
    %667 = vector.shape_cast %666 : vector<1x1x16xf32> to vector<1x16xf32>
    %668 = vector.broadcast %667 : vector<1x16xf32> to vector<2x16xf32>
    %669 = arith.addf %665, %668 : vector<2x16xf32>
    %c2_470 = arith.constant 2 : index
    %c0_471 = arith.constant 0 : index
    %c0_472 = arith.constant 0 : index
    %670 = vector.load %arg6[%c2_470, %c0_471, %c0_472] : memref<3x16x16xf32, #tpu.memory_space<vmem>>, vector<1x16x16xf32>
    %671 = vector.shape_cast %670 : vector<1x16x16xf32> to vector<16x16xf32>
    %cst_473 = arith.constant dense<0.000000e+00> : vector<2x16xf32>
    %672 = tpu.matmul %580, %671, %cst_473 {dimension_numbers = #tpu.dot_dimension_numbers<[1], [0], [0], [1], [0, 0, 1, 1], [], []>} : vector<2x16xf32>, vector<16x16xf32>, vector<2x16xf32> -> vector<2x16xf32>
    %c2_474 = arith.constant 2 : index
    %c0_475 = arith.constant 0 : index
    %c0_476 = arith.constant 0 : index
    %673 = vector.load %arg7[%c2_474, %c0_475, %c0_476] : memref<3x1x16xf32, #tpu.memory_space<vmem>>, vector<1x1x16xf32>
    %674 = vector.shape_cast %673 : vector<1x1x16xf32> to vector<1x16xf32>
    %675 = vector.broadcast %674 : vector<1x16xf32> to vector<2x16xf32>
    %676 = arith.addf %672, %675 : vector<2x16xf32>
    %677 = arith.addf %641, %662 : vector<2x16xf32>
    %678 = arith.negf %677 : vector<2x16xf32>
    %679 = math.exp %678 : vector<2x16xf32>
    %cst_477 = arith.constant 1.000000e+00 : f32
    %680 = vector.broadcast %cst_477 : f32 to vector<2x16xf32>
    %681 = arith.addf %680, %679 : vector<2x16xf32>
    %682 = arith.divf %680, %681 : vector<2x16xf32>
    %683 = arith.addf %648, %669 : vector<2x16xf32>
    %684 = arith.negf %683 : vector<2x16xf32>
    %685 = math.exp %684 : vector<2x16xf32>
    %cst_478 = arith.constant 1.000000e+00 : f32
    %686 = vector.broadcast %cst_478 : f32 to vector<2x16xf32>
    %687 = arith.addf %686, %685 : vector<2x16xf32>
    %688 = arith.divf %686, %687 : vector<2x16xf32>
    %689 = arith.mulf %682, %676 : vector<2x16xf32>
    %690 = arith.addf %655, %689 : vector<2x16xf32>
    %691 = math.tanh %690 : vector<2x16xf32>
    %cst_479 = arith.constant 1.000000e+00 : f32
    %692 = vector.broadcast %cst_479 : f32 to vector<2x16xf32>
    %693 = arith.subf %692, %688 : vector<2x16xf32>
    %694 = arith.mulf %693, %691 : vector<2x16xf32>
    %695 = arith.mulf %688, %580 : vector<2x16xf32>
    %696 = arith.addf %694, %695 : vector<2x16xf32>
    %697 = arith.index_cast %c5_i32 : i32 to index
    %c0_480 = arith.constant 0 : index
    %c0_481 = arith.constant 0 : index
    %698 = vector.load %arg8[%697, %c0_480, %c0_481] : memref<8x2x16xf32, #tpu.memory_space<vmem>>, vector<1x2x16xf32>
    %699 = vector.shape_cast %698 : vector<1x2x16xf32> to vector<2x16xf32>
    %700 = vector.shape_cast %696 : vector<2x16xf32> to vector<1x2x16xf32>
    tpu.vector_store %arg8[%697, %c0_480, %c0_481], %700 {strides = array<i32>} : memref<8x2x16xf32, #tpu.memory_space<vmem>>, vector<1x2x16xf32>,
    %c6_i32 = arith.constant 6 : i32
    %c0_482 = arith.constant 0 : index
    %701 = arith.index_cast %c6_i32 : i32 to index
    %c0_483 = arith.constant 0 : index
    %c0_484 = arith.constant 0 : index
    %702 = vector.load %arg1[%c0_482, %701, %c0_483, %c0_484] : memref<3x8x2x16xf32, #tpu.memory_space<vmem>>, vector<1x1x2x16xf32>
    %703 = vector.shape_cast %702 : vector<1x1x2x16xf32> to vector<2x16xf32>
    %c1_485 = arith.constant 1 : index
    %704 = arith.index_cast %c6_i32 : i32 to index
    %c0_486 = arith.constant 0 : index
    %c0_487 = arith.constant 0 : index
    %705 = vector.load %arg1[%c1_485, %704, %c0_486, %c0_487] : memref<3x8x2x16xf32, #tpu.memory_space<vmem>>, vector<1x1x2x16xf32>
    %706 = vector.shape_cast %705 : vector<1x1x2x16xf32> to vector<2x16xf32>
    %c2_488 = arith.constant 2 : index
    %707 = arith.index_cast %c6_i32 : i32 to index
    %c0_489 = arith.constant 0 : index
    %c0_490 = arith.constant 0 : index
    %708 = vector.load %arg1[%c2_488, %707, %c0_489, %c0_490] : memref<3x8x2x16xf32, #tpu.memory_space<vmem>>, vector<1x1x2x16xf32>
    %709 = vector.shape_cast %708 : vector<1x1x2x16xf32> to vector<2x16xf32>
    %c0_491 = arith.constant 0 : index
    %c0_492 = arith.constant 0 : index
    %c0_493 = arith.constant 0 : index
    %710 = vector.load %arg2[%c0_491, %c0_492, %c0_493] : memref<3x16x16xf32, #tpu.memory_space<vmem>>, vector<1x16x16xf32>
    %711 = vector.shape_cast %710 : vector<1x16x16xf32> to vector<16x16xf32>
    %cst_494 = arith.constant dense<0.000000e+00> : vector<2x16xf32>
    %712 = tpu.matmul %634, %711, %cst_494 {dimension_numbers = #tpu.dot_dimension_numbers<[1], [0], [0], [1], [0, 0, 1, 1], [], []>} : vector<2x16xf32>, vector<16x16xf32>, vector<2x16xf32> -> vector<2x16xf32>
    %c0_495 = arith.constant 0 : index
    %c0_496 = arith.constant 0 : index
    %c0_497 = arith.constant 0 : index
    %713 = vector.load %arg3[%c0_495, %c0_496, %c0_497] : memref<3x1x16xf32, #tpu.memory_space<vmem>>, vector<1x1x16xf32>
    %714 = vector.shape_cast %713 : vector<1x1x16xf32> to vector<1x16xf32>
    %715 = vector.broadcast %714 : vector<1x16xf32> to vector<2x16xf32>
    %716 = arith.addf %712, %715 : vector<2x16xf32>
    %c1_498 = arith.constant 1 : index
    %c0_499 = arith.constant 0 : index
    %c0_500 = arith.constant 0 : index
    %717 = vector.load %arg2[%c1_498, %c0_499, %c0_500] : memref<3x16x16xf32, #tpu.memory_space<vmem>>, vector<1x16x16xf32>
    %718 = vector.shape_cast %717 : vector<1x16x16xf32> to vector<16x16xf32>
    %cst_501 = arith.constant dense<0.000000e+00> : vector<2x16xf32>
    %719 = tpu.matmul %634, %718, %cst_501 {dimension_numbers = #tpu.dot_dimension_numbers<[1], [0], [0], [1], [0, 0, 1, 1], [], []>} : vector<2x16xf32>, vector<16x16xf32>, vector<2x16xf32> -> vector<2x16xf32>
    %c1_502 = arith.constant 1 : index
    %c0_503 = arith.constant 0 : index
    %c0_504 = arith.constant 0 : index
    %720 = vector.load %arg3[%c1_502, %c0_503, %c0_504] : memref<3x1x16xf32, #tpu.memory_space<vmem>>, vector<1x1x16xf32>
    %721 = vector.shape_cast %720 : vector<1x1x16xf32> to vector<1x16xf32>
    %722 = vector.broadcast %721 : vector<1x16xf32> to vector<2x16xf32>
    %723 = arith.addf %719, %722 : vector<2x16xf32>
    %c2_505 = arith.constant 2 : index
    %c0_506 = arith.constant 0 : index
    %c0_507 = arith.constant 0 : index
    %724 = vector.load %arg2[%c2_505, %c0_506, %c0_507] : memref<3x16x16xf32, #tpu.memory_space<vmem>>, vector<1x16x16xf32>
    %725 = vector.shape_cast %724 : vector<1x16x16xf32> to vector<16x16xf32>
    %cst_508 = arith.constant dense<0.000000e+00> : vector<2x16xf32>
    %726 = tpu.matmul %634, %725, %cst_508 {dimension_numbers = #tpu.dot_dimension_numbers<[1], [0], [0], [1], [0, 0, 1, 1], [], []>} : vector<2x16xf32>, vector<16x16xf32>, vector<2x16xf32> -> vector<2x16xf32>
    %c2_509 = arith.constant 2 : index
    %c0_510 = arith.constant 0 : index
    %c0_511 = arith.constant 0 : index
    %727 = vector.load %arg3[%c2_509, %c0_510, %c0_511] : memref<3x1x16xf32, #tpu.memory_space<vmem>>, vector<1x1x16xf32>
    %728 = vector.shape_cast %727 : vector<1x1x16xf32> to vector<1x16xf32>
    %729 = vector.broadcast %728 : vector<1x16xf32> to vector<2x16xf32>
    %730 = arith.addf %726, %729 : vector<2x16xf32>
    %731 = arith.addf %703, %716 : vector<2x16xf32>
    %732 = arith.negf %731 : vector<2x16xf32>
    %733 = math.exp %732 : vector<2x16xf32>
    %cst_512 = arith.constant 1.000000e+00 : f32
    %734 = vector.broadcast %cst_512 : f32 to vector<2x16xf32>
    %735 = arith.addf %734, %733 : vector<2x16xf32>
    %736 = arith.divf %734, %735 : vector<2x16xf32>
    %737 = arith.addf %706, %723 : vector<2x16xf32>
    %738 = arith.negf %737 : vector<2x16xf32>
    %739 = math.exp %738 : vector<2x16xf32>
    %cst_513 = arith.constant 1.000000e+00 : f32
    %740 = vector.broadcast %cst_513 : f32 to vector<2x16xf32>
    %741 = arith.addf %740, %739 : vector<2x16xf32>
    %742 = arith.divf %740, %741 : vector<2x16xf32>
    %743 = arith.mulf %736, %730 : vector<2x16xf32>
    %744 = arith.addf %709, %743 : vector<2x16xf32>
    %745 = math.tanh %744 : vector<2x16xf32>
    %cst_514 = arith.constant 1.000000e+00 : f32
    %746 = vector.broadcast %cst_514 : f32 to vector<2x16xf32>
    %747 = arith.subf %746, %742 : vector<2x16xf32>
    %748 = arith.mulf %747, %745 : vector<2x16xf32>
    %749 = arith.mulf %742, %634 : vector<2x16xf32>
    %750 = arith.addf %748, %749 : vector<2x16xf32>
    %c0_515 = arith.constant 0 : index
    %c0_516 = arith.constant 0 : index
    %c0_517 = arith.constant 0 : index
    %751 = vector.load %arg4[%c0_515, %c0_516, %c0_517] : memref<3x16x16xf32, #tpu.memory_space<vmem>>, vector<1x16x16xf32>
    %752 = vector.shape_cast %751 : vector<1x16x16xf32> to vector<16x16xf32>
    %cst_518 = arith.constant dense<0.000000e+00> : vector<2x16xf32>
    %753 = tpu.matmul %750, %752, %cst_518 {dimension_numbers = #tpu.dot_dimension_numbers<[1], [0], [0], [1], [0, 0, 1, 1], [], []>} : vector<2x16xf32>, vector<16x16xf32>, vector<2x16xf32> -> vector<2x16xf32>
    %c0_519 = arith.constant 0 : index
    %c0_520 = arith.constant 0 : index
    %c0_521 = arith.constant 0 : index
    %754 = vector.load %arg5[%c0_519, %c0_520, %c0_521] : memref<3x1x16xf32, #tpu.memory_space<vmem>>, vector<1x1x16xf32>
    %755 = vector.shape_cast %754 : vector<1x1x16xf32> to vector<1x16xf32>
    %756 = vector.broadcast %755 : vector<1x16xf32> to vector<2x16xf32>
    %757 = arith.addf %753, %756 : vector<2x16xf32>
    %c1_522 = arith.constant 1 : index
    %c0_523 = arith.constant 0 : index
    %c0_524 = arith.constant 0 : index
    %758 = vector.load %arg4[%c1_522, %c0_523, %c0_524] : memref<3x16x16xf32, #tpu.memory_space<vmem>>, vector<1x16x16xf32>
    %759 = vector.shape_cast %758 : vector<1x16x16xf32> to vector<16x16xf32>
    %cst_525 = arith.constant dense<0.000000e+00> : vector<2x16xf32>
    %760 = tpu.matmul %750, %759, %cst_525 {dimension_numbers = #tpu.dot_dimension_numbers<[1], [0], [0], [1], [0, 0, 1, 1], [], []>} : vector<2x16xf32>, vector<16x16xf32>, vector<2x16xf32> -> vector<2x16xf32>
    %c1_526 = arith.constant 1 : index
    %c0_527 = arith.constant 0 : index
    %c0_528 = arith.constant 0 : index
    %761 = vector.load %arg5[%c1_526, %c0_527, %c0_528] : memref<3x1x16xf32, #tpu.memory_space<vmem>>, vector<1x1x16xf32>
    %762 = vector.shape_cast %761 : vector<1x1x16xf32> to vector<1x16xf32>
    %763 = vector.broadcast %762 : vector<1x16xf32> to vector<2x16xf32>
    %764 = arith.addf %760, %763 : vector<2x16xf32>
    %c2_529 = arith.constant 2 : index
    %c0_530 = arith.constant 0 : index
    %c0_531 = arith.constant 0 : index
    %765 = vector.load %arg4[%c2_529, %c0_530, %c0_531] : memref<3x16x16xf32, #tpu.memory_space<vmem>>, vector<1x16x16xf32>
    %766 = vector.shape_cast %765 : vector<1x16x16xf32> to vector<16x16xf32>
    %cst_532 = arith.constant dense<0.000000e+00> : vector<2x16xf32>
    %767 = tpu.matmul %750, %766, %cst_532 {dimension_numbers = #tpu.dot_dimension_numbers<[1], [0], [0], [1], [0, 0, 1, 1], [], []>} : vector<2x16xf32>, vector<16x16xf32>, vector<2x16xf32> -> vector<2x16xf32>
    %c2_533 = arith.constant 2 : index
    %c0_534 = arith.constant 0 : index
    %c0_535 = arith.constant 0 : index
    %768 = vector.load %arg5[%c2_533, %c0_534, %c0_535] : memref<3x1x16xf32, #tpu.memory_space<vmem>>, vector<1x1x16xf32>
    %769 = vector.shape_cast %768 : vector<1x1x16xf32> to vector<1x16xf32>
    %770 = vector.broadcast %769 : vector<1x16xf32> to vector<2x16xf32>
    %771 = arith.addf %767, %770 : vector<2x16xf32>
    %c0_536 = arith.constant 0 : index
    %c0_537 = arith.constant 0 : index
    %c0_538 = arith.constant 0 : index
    %772 = vector.load %arg6[%c0_536, %c0_537, %c0_538] : memref<3x16x16xf32, #tpu.memory_space<vmem>>, vector<1x16x16xf32>
    %773 = vector.shape_cast %772 : vector<1x16x16xf32> to vector<16x16xf32>
    %cst_539 = arith.constant dense<0.000000e+00> : vector<2x16xf32>
    %774 = tpu.matmul %696, %773, %cst_539 {dimension_numbers = #tpu.dot_dimension_numbers<[1], [0], [0], [1], [0, 0, 1, 1], [], []>} : vector<2x16xf32>, vector<16x16xf32>, vector<2x16xf32> -> vector<2x16xf32>
    %c0_540 = arith.constant 0 : index
    %c0_541 = arith.constant 0 : index
    %c0_542 = arith.constant 0 : index
    %775 = vector.load %arg7[%c0_540, %c0_541, %c0_542] : memref<3x1x16xf32, #tpu.memory_space<vmem>>, vector<1x1x16xf32>
    %776 = vector.shape_cast %775 : vector<1x1x16xf32> to vector<1x16xf32>
    %777 = vector.broadcast %776 : vector<1x16xf32> to vector<2x16xf32>
    %778 = arith.addf %774, %777 : vector<2x16xf32>
    %c1_543 = arith.constant 1 : index
    %c0_544 = arith.constant 0 : index
    %c0_545 = arith.constant 0 : index
    %779 = vector.load %arg6[%c1_543, %c0_544, %c0_545] : memref<3x16x16xf32, #tpu.memory_space<vmem>>, vector<1x16x16xf32>
    %780 = vector.shape_cast %779 : vector<1x16x16xf32> to vector<16x16xf32>
    %cst_546 = arith.constant dense<0.000000e+00> : vector<2x16xf32>
    %781 = tpu.matmul %696, %780, %cst_546 {dimension_numbers = #tpu.dot_dimension_numbers<[1], [0], [0], [1], [0, 0, 1, 1], [], []>} : vector<2x16xf32>, vector<16x16xf32>, vector<2x16xf32> -> vector<2x16xf32>
    %c1_547 = arith.constant 1 : index
    %c0_548 = arith.constant 0 : index
    %c0_549 = arith.constant 0 : index
    %782 = vector.load %arg7[%c1_547, %c0_548, %c0_549] : memref<3x1x16xf32, #tpu.memory_space<vmem>>, vector<1x1x16xf32>
    %783 = vector.shape_cast %782 : vector<1x1x16xf32> to vector<1x16xf32>
    %784 = vector.broadcast %783 : vector<1x16xf32> to vector<2x16xf32>
    %785 = arith.addf %781, %784 : vector<2x16xf32>
    %c2_550 = arith.constant 2 : index
    %c0_551 = arith.constant 0 : index
    %c0_552 = arith.constant 0 : index
    %786 = vector.load %arg6[%c2_550, %c0_551, %c0_552] : memref<3x16x16xf32, #tpu.memory_space<vmem>>, vector<1x16x16xf32>
    %787 = vector.shape_cast %786 : vector<1x16x16xf32> to vector<16x16xf32>
    %cst_553 = arith.constant dense<0.000000e+00> : vector<2x16xf32>
    %788 = tpu.matmul %696, %787, %cst_553 {dimension_numbers = #tpu.dot_dimension_numbers<[1], [0], [0], [1], [0, 0, 1, 1], [], []>} : vector<2x16xf32>, vector<16x16xf32>, vector<2x16xf32> -> vector<2x16xf32>
    %c2_554 = arith.constant 2 : index
    %c0_555 = arith.constant 0 : index
    %c0_556 = arith.constant 0 : index
    %789 = vector.load %arg7[%c2_554, %c0_555, %c0_556] : memref<3x1x16xf32, #tpu.memory_space<vmem>>, vector<1x1x16xf32>
    %790 = vector.shape_cast %789 : vector<1x1x16xf32> to vector<1x16xf32>
    %791 = vector.broadcast %790 : vector<1x16xf32> to vector<2x16xf32>
    %792 = arith.addf %788, %791 : vector<2x16xf32>
    %793 = arith.addf %757, %778 : vector<2x16xf32>
    %794 = arith.negf %793 : vector<2x16xf32>
    %795 = math.exp %794 : vector<2x16xf32>
    %cst_557 = arith.constant 1.000000e+00 : f32
    %796 = vector.broadcast %cst_557 : f32 to vector<2x16xf32>
    %797 = arith.addf %796, %795 : vector<2x16xf32>
    %798 = arith.divf %796, %797 : vector<2x16xf32>
    %799 = arith.addf %764, %785 : vector<2x16xf32>
    %800 = arith.negf %799 : vector<2x16xf32>
    %801 = math.exp %800 : vector<2x16xf32>
    %cst_558 = arith.constant 1.000000e+00 : f32
    %802 = vector.broadcast %cst_558 : f32 to vector<2x16xf32>
    %803 = arith.addf %802, %801 : vector<2x16xf32>
    %804 = arith.divf %802, %803 : vector<2x16xf32>
    %805 = arith.mulf %798, %792 : vector<2x16xf32>
    %806 = arith.addf %771, %805 : vector<2x16xf32>
    %807 = math.tanh %806 : vector<2x16xf32>
    %cst_559 = arith.constant 1.000000e+00 : f32
    %808 = vector.broadcast %cst_559 : f32 to vector<2x16xf32>
    %809 = arith.subf %808, %804 : vector<2x16xf32>
    %810 = arith.mulf %809, %807 : vector<2x16xf32>
    %811 = arith.mulf %804, %696 : vector<2x16xf32>
    %812 = arith.addf %810, %811 : vector<2x16xf32>
    %813 = arith.index_cast %c6_i32 : i32 to index
    %c0_560 = arith.constant 0 : index
    %c0_561 = arith.constant 0 : index
    %814 = vector.load %arg8[%813, %c0_560, %c0_561] : memref<8x2x16xf32, #tpu.memory_space<vmem>>, vector<1x2x16xf32>
    %815 = vector.shape_cast %814 : vector<1x2x16xf32> to vector<2x16xf32>
    %816 = vector.shape_cast %812 : vector<2x16xf32> to vector<1x2x16xf32>
    tpu.vector_store %arg8[%813, %c0_560, %c0_561], %816 {strides = array<i32>} : memref<8x2x16xf32, #tpu.memory_space<vmem>>, vector<1x2x16xf32>,
    %c7_i32 = arith.constant 7 : i32
    %c0_562 = arith.constant 0 : index
    %817 = arith.index_cast %c7_i32 : i32 to index
    %c0_563 = arith.constant 0 : index
    %c0_564 = arith.constant 0 : index
    %818 = vector.load %arg1[%c0_562, %817, %c0_563, %c0_564] : memref<3x8x2x16xf32, #tpu.memory_space<vmem>>, vector<1x1x2x16xf32>
    %819 = vector.shape_cast %818 : vector<1x1x2x16xf32> to vector<2x16xf32>
    %c1_565 = arith.constant 1 : index
    %820 = arith.index_cast %c7_i32 : i32 to index
    %c0_566 = arith.constant 0 : index
    %c0_567 = arith.constant 0 : index
    %821 = vector.load %arg1[%c1_565, %820, %c0_566, %c0_567] : memref<3x8x2x16xf32, #tpu.memory_space<vmem>>, vector<1x1x2x16xf32>
    %822 = vector.shape_cast %821 : vector<1x1x2x16xf32> to vector<2x16xf32>
    %c2_568 = arith.constant 2 : index
    %823 = arith.index_cast %c7_i32 : i32 to index
    %c0_569 = arith.constant 0 : index
    %c0_570 = arith.constant 0 : index
    %824 = vector.load %arg1[%c2_568, %823, %c0_569, %c0_570] : memref<3x8x2x16xf32, #tpu.memory_space<vmem>>, vector<1x1x2x16xf32>
    %825 = vector.shape_cast %824 : vector<1x1x2x16xf32> to vector<2x16xf32>
    %c0_571 = arith.constant 0 : index
    %c0_572 = arith.constant 0 : index
    %c0_573 = arith.constant 0 : index
    %826 = vector.load %arg2[%c0_571, %c0_572, %c0_573] : memref<3x16x16xf32, #tpu.memory_space<vmem>>, vector<1x16x16xf32>
    %827 = vector.shape_cast %826 : vector<1x16x16xf32> to vector<16x16xf32>
    %cst_574 = arith.constant dense<0.000000e+00> : vector<2x16xf32>
    %828 = tpu.matmul %750, %827, %cst_574 {dimension_numbers = #tpu.dot_dimension_numbers<[1], [0], [0], [1], [0, 0, 1, 1], [], []>} : vector<2x16xf32>, vector<16x16xf32>, vector<2x16xf32> -> vector<2x16xf32>
    %c0_575 = arith.constant 0 : index
    %c0_576 = arith.constant 0 : index
    %c0_577 = arith.constant 0 : index
    %829 = vector.load %arg3[%c0_575, %c0_576, %c0_577] : memref<3x1x16xf32, #tpu.memory_space<vmem>>, vector<1x1x16xf32>
    %830 = vector.shape_cast %829 : vector<1x1x16xf32> to vector<1x16xf32>
    %831 = vector.broadcast %830 : vector<1x16xf32> to vector<2x16xf32>
    %832 = arith.addf %828, %831 : vector<2x16xf32>
    %c1_578 = arith.constant 1 : index
    %c0_579 = arith.constant 0 : index
    %c0_580 = arith.constant 0 : index
    %833 = vector.load %arg2[%c1_578, %c0_579, %c0_580] : memref<3x16x16xf32, #tpu.memory_space<vmem>>, vector<1x16x16xf32>
    %834 = vector.shape_cast %833 : vector<1x16x16xf32> to vector<16x16xf32>
    %cst_581 = arith.constant dense<0.000000e+00> : vector<2x16xf32>
    %835 = tpu.matmul %750, %834, %cst_581 {dimension_numbers = #tpu.dot_dimension_numbers<[1], [0], [0], [1], [0, 0, 1, 1], [], []>} : vector<2x16xf32>, vector<16x16xf32>, vector<2x16xf32> -> vector<2x16xf32>
    %c1_582 = arith.constant 1 : index
    %c0_583 = arith.constant 0 : index
    %c0_584 = arith.constant 0 : index
    %836 = vector.load %arg3[%c1_582, %c0_583, %c0_584] : memref<3x1x16xf32, #tpu.memory_space<vmem>>, vector<1x1x16xf32>
    %837 = vector.shape_cast %836 : vector<1x1x16xf32> to vector<1x16xf32>
    %838 = vector.broadcast %837 : vector<1x16xf32> to vector<2x16xf32>
    %839 = arith.addf %835, %838 : vector<2x16xf32>
    %c2_585 = arith.constant 2 : index
    %c0_586 = arith.constant 0 : index
    %c0_587 = arith.constant 0 : index
    %840 = vector.load %arg2[%c2_585, %c0_586, %c0_587] : memref<3x16x16xf32, #tpu.memory_space<vmem>>, vector<1x16x16xf32>
    %841 = vector.shape_cast %840 : vector<1x16x16xf32> to vector<16x16xf32>
    %cst_588 = arith.constant dense<0.000000e+00> : vector<2x16xf32>
    %842 = tpu.matmul %750, %841, %cst_588 {dimension_numbers = #tpu.dot_dimension_numbers<[1], [0], [0], [1], [0, 0, 1, 1], [], []>} : vector<2x16xf32>, vector<16x16xf32>, vector<2x16xf32> -> vector<2x16xf32>
    %c2_589 = arith.constant 2 : index
    %c0_590 = arith.constant 0 : index
    %c0_591 = arith.constant 0 : index
    %843 = vector.load %arg3[%c2_589, %c0_590, %c0_591] : memref<3x1x16xf32, #tpu.memory_space<vmem>>, vector<1x1x16xf32>
    %844 = vector.shape_cast %843 : vector<1x1x16xf32> to vector<1x16xf32>
    %845 = vector.broadcast %844 : vector<1x16xf32> to vector<2x16xf32>
    %846 = arith.addf %842, %845 : vector<2x16xf32>
    %847 = arith.addf %819, %832 : vector<2x16xf32>
    %848 = arith.negf %847 : vector<2x16xf32>
    %849 = math.exp %848 : vector<2x16xf32>
    %cst_592 = arith.constant 1.000000e+00 : f32
    %850 = vector.broadcast %cst_592 : f32 to vector<2x16xf32>
    %851 = arith.addf %850, %849 : vector<2x16xf32>
    %852 = arith.divf %850, %851 : vector<2x16xf32>
    %853 = arith.addf %822, %839 : vector<2x16xf32>
    %854 = arith.negf %853 : vector<2x16xf32>
    %855 = math.exp %854 : vector<2x16xf32>
    %cst_593 = arith.constant 1.000000e+00 : f32
    %856 = vector.broadcast %cst_593 : f32 to vector<2x16xf32>
    %857 = arith.addf %856, %855 : vector<2x16xf32>
    %858 = arith.divf %856, %857 : vector<2x16xf32>
    %859 = arith.mulf %852, %846 : vector<2x16xf32>
    %860 = arith.addf %825, %859 : vector<2x16xf32>
    %861 = math.tanh %860 : vector<2x16xf32>
    %cst_594 = arith.constant 1.000000e+00 : f32
    %862 = vector.broadcast %cst_594 : f32 to vector<2x16xf32>
    %863 = arith.subf %862, %858 : vector<2x16xf32>
    %864 = arith.mulf %863, %861 : vector<2x16xf32>
    %865 = arith.mulf %858, %750 : vector<2x16xf32>
    %866 = arith.addf %864, %865 : vector<2x16xf32>
    %c0_595 = arith.constant 0 : index
    %c0_596 = arith.constant 0 : index
    %c0_597 = arith.constant 0 : index
    %867 = vector.load %arg4[%c0_595, %c0_596, %c0_597] : memref<3x16x16xf32, #tpu.memory_space<vmem>>, vector<1x16x16xf32>
    %868 = vector.shape_cast %867 : vector<1x16x16xf32> to vector<16x16xf32>
    %cst_598 = arith.constant dense<0.000000e+00> : vector<2x16xf32>
    %869 = tpu.matmul %866, %868, %cst_598 {dimension_numbers = #tpu.dot_dimension_numbers<[1], [0], [0], [1], [0, 0, 1, 1], [], []>} : vector<2x16xf32>, vector<16x16xf32>, vector<2x16xf32> -> vector<2x16xf32>
    %c0_599 = arith.constant 0 : index
    %c0_600 = arith.constant 0 : index
    %c0_601 = arith.constant 0 : index
    %870 = vector.load %arg5[%c0_599, %c0_600, %c0_601] : memref<3x1x16xf32, #tpu.memory_space<vmem>>, vector<1x1x16xf32>
    %871 = vector.shape_cast %870 : vector<1x1x16xf32> to vector<1x16xf32>
    %872 = vector.broadcast %871 : vector<1x16xf32> to vector<2x16xf32>
    %873 = arith.addf %869, %872 : vector<2x16xf32>
    %c1_602 = arith.constant 1 : index
    %c0_603 = arith.constant 0 : index
    %c0_604 = arith.constant 0 : index
    %874 = vector.load %arg4[%c1_602, %c0_603, %c0_604] : memref<3x16x16xf32, #tpu.memory_space<vmem>>, vector<1x16x16xf32>
    %875 = vector.shape_cast %874 : vector<1x16x16xf32> to vector<16x16xf32>
    %cst_605 = arith.constant dense<0.000000e+00> : vector<2x16xf32>
    %876 = tpu.matmul %866, %875, %cst_605 {dimension_numbers = #tpu.dot_dimension_numbers<[1], [0], [0], [1], [0, 0, 1, 1], [], []>} : vector<2x16xf32>, vector<16x16xf32>, vector<2x16xf32> -> vector<2x16xf32>
    %c1_606 = arith.constant 1 : index
    %c0_607 = arith.constant 0 : index
    %c0_608 = arith.constant 0 : index
    %877 = vector.load %arg5[%c1_606, %c0_607, %c0_608] : memref<3x1x16xf32, #tpu.memory_space<vmem>>, vector<1x1x16xf32>
    %878 = vector.shape_cast %877 : vector<1x1x16xf32> to vector<1x16xf32>
    %879 = vector.broadcast %878 : vector<1x16xf32> to vector<2x16xf32>
    %880 = arith.addf %876, %879 : vector<2x16xf32>
    %c2_609 = arith.constant 2 : index
    %c0_610 = arith.constant 0 : index
    %c0_611 = arith.constant 0 : index
    %881 = vector.load %arg4[%c2_609, %c0_610, %c0_611] : memref<3x16x16xf32, #tpu.memory_space<vmem>>, vector<1x16x16xf32>
    %882 = vector.shape_cast %881 : vector<1x16x16xf32> to vector<16x16xf32>
    %cst_612 = arith.constant dense<0.000000e+00> : vector<2x16xf32>
    %883 = tpu.matmul %866, %882, %cst_612 {dimension_numbers = #tpu.dot_dimension_numbers<[1], [0], [0], [1], [0, 0, 1, 1], [], []>} : vector<2x16xf32>, vector<16x16xf32>, vector<2x16xf32> -> vector<2x16xf32>
    %c2_613 = arith.constant 2 : index
    %c0_614 = arith.constant 0 : index
    %c0_615 = arith.constant 0 : index
    %884 = vector.load %arg5[%c2_613, %c0_614, %c0_615] : memref<3x1x16xf32, #tpu.memory_space<vmem>>, vector<1x1x16xf32>
    %885 = vector.shape_cast %884 : vector<1x1x16xf32> to vector<1x16xf32>
    %886 = vector.broadcast %885 : vector<1x16xf32> to vector<2x16xf32>
    %887 = arith.addf %883, %886 : vector<2x16xf32>
    %c0_616 = arith.constant 0 : index
    %c0_617 = arith.constant 0 : index
    %c0_618 = arith.constant 0 : index
    %888 = vector.load %arg6[%c0_616, %c0_617, %c0_618] : memref<3x16x16xf32, #tpu.memory_space<vmem>>, vector<1x16x16xf32>
    %889 = vector.shape_cast %888 : vector<1x16x16xf32> to vector<16x16xf32>
    %cst_619 = arith.constant dense<0.000000e+00> : vector<2x16xf32>
    %890 = tpu.matmul %812, %889, %cst_619 {dimension_numbers = #tpu.dot_dimension_numbers<[1], [0], [0], [1], [0, 0, 1, 1], [], []>} : vector<2x16xf32>, vector<16x16xf32>, vector<2x16xf32> -> vector<2x16xf32>
    %c0_620 = arith.constant 0 : index
    %c0_621 = arith.constant 0 : index
    %c0_622 = arith.constant 0 : index
    %891 = vector.load %arg7[%c0_620, %c0_621, %c0_622] : memref<3x1x16xf32, #tpu.memory_space<vmem>>, vector<1x1x16xf32>
    %892 = vector.shape_cast %891 : vector<1x1x16xf32> to vector<1x16xf32>
    %893 = vector.broadcast %892 : vector<1x16xf32> to vector<2x16xf32>
    %894 = arith.addf %890, %893 : vector<2x16xf32>
    %c1_623 = arith.constant 1 : index
    %c0_624 = arith.constant 0 : index
    %c0_625 = arith.constant 0 : index
    %895 = vector.load %arg6[%c1_623, %c0_624, %c0_625] : memref<3x16x16xf32, #tpu.memory_space<vmem>>, vector<1x16x16xf32>
    %896 = vector.shape_cast %895 : vector<1x16x16xf32> to vector<16x16xf32>
    %cst_626 = arith.constant dense<0.000000e+00> : vector<2x16xf32>
    %897 = tpu.matmul %812, %896, %cst_626 {dimension_numbers = #tpu.dot_dimension_numbers<[1], [0], [0], [1], [0, 0, 1, 1], [], []>} : vector<2x16xf32>, vector<16x16xf32>, vector<2x16xf32> -> vector<2x16xf32>
    %c1_627 = arith.constant 1 : index
    %c0_628 = arith.constant 0 : index
    %c0_629 = arith.constant 0 : index
    %898 = vector.load %arg7[%c1_627, %c0_628, %c0_629] : memref<3x1x16xf32, #tpu.memory_space<vmem>>, vector<1x1x16xf32>
    %899 = vector.shape_cast %898 : vector<1x1x16xf32> to vector<1x16xf32>
    %900 = vector.broadcast %899 : vector<1x16xf32> to vector<2x16xf32>
    %901 = arith.addf %897, %900 : vector<2x16xf32>
    %c2_630 = arith.constant 2 : index
    %c0_631 = arith.constant 0 : index
    %c0_632 = arith.constant 0 : index
    %902 = vector.load %arg6[%c2_630, %c0_631, %c0_632] : memref<3x16x16xf32, #tpu.memory_space<vmem>>, vector<1x16x16xf32>
    %903 = vector.shape_cast %902 : vector<1x16x16xf32> to vector<16x16xf32>
    %cst_633 = arith.constant dense<0.000000e+00> : vector<2x16xf32>
    %904 = tpu.matmul %812, %903, %cst_633 {dimension_numbers = #tpu.dot_dimension_numbers<[1], [0], [0], [1], [0, 0, 1, 1], [], []>} : vector<2x16xf32>, vector<16x16xf32>, vector<2x16xf32> -> vector<2x16xf32>
    %c2_634 = arith.constant 2 : index
    %c0_635 = arith.constant 0 : index
    %c0_636 = arith.constant 0 : index
    %905 = vector.load %arg7[%c2_634, %c0_635, %c0_636] : memref<3x1x16xf32, #tpu.memory_space<vmem>>, vector<1x1x16xf32>
    %906 = vector.shape_cast %905 : vector<1x1x16xf32> to vector<1x16xf32>
    %907 = vector.broadcast %906 : vector<1x16xf32> to vector<2x16xf32>
    %908 = arith.addf %904, %907 : vector<2x16xf32>
    %909 = arith.addf %873, %894 : vector<2x16xf32>
    %910 = arith.negf %909 : vector<2x16xf32>
    %911 = math.exp %910 : vector<2x16xf32>
    %cst_637 = arith.constant 1.000000e+00 : f32
    %912 = vector.broadcast %cst_637 : f32 to vector<2x16xf32>
    %913 = arith.addf %912, %911 : vector<2x16xf32>
    %914 = arith.divf %912, %913 : vector<2x16xf32>
    %915 = arith.addf %880, %901 : vector<2x16xf32>
    %916 = arith.negf %915 : vector<2x16xf32>
    %917 = math.exp %916 : vector<2x16xf32>
    %cst_638 = arith.constant 1.000000e+00 : f32
    %918 = vector.broadcast %cst_638 : f32 to vector<2x16xf32>
    %919 = arith.addf %918, %917 : vector<2x16xf32>
    %920 = arith.divf %918, %919 : vector<2x16xf32>
    %921 = arith.mulf %914, %908 : vector<2x16xf32>
    %922 = arith.addf %887, %921 : vector<2x16xf32>
    %923 = math.tanh %922 : vector<2x16xf32>
    %cst_639 = arith.constant 1.000000e+00 : f32
    %924 = vector.broadcast %cst_639 : f32 to vector<2x16xf32>
    %925 = arith.subf %924, %920 : vector<2x16xf32>
    %926 = arith.mulf %925, %923 : vector<2x16xf32>
    %927 = arith.mulf %920, %812 : vector<2x16xf32>
    %928 = arith.addf %926, %927 : vector<2x16xf32>
    %929 = arith.index_cast %c7_i32 : i32 to index
    %c0_640 = arith.constant 0 : index
    %c0_641 = arith.constant 0 : index
    %930 = vector.load %arg8[%929, %c0_640, %c0_641] : memref<8x2x16xf32, #tpu.memory_space<vmem>>, vector<1x2x16xf32>
    %931 = vector.shape_cast %930 : vector<1x2x16xf32> to vector<2x16xf32>
    %932 = vector.shape_cast %928 : vector<2x16xf32> to vector<1x2x16xf32>
    tpu.vector_store %arg8[%929, %c0_640, %c0_641], %932 {strides = array<i32>} : memref<8x2x16xf32, #tpu.memory_space<vmem>>, vector<1x2x16xf32>,
    %c8_i32 = arith.constant 8 : i32
    %c0_642 = arith.constant 0 : index
    %c0_643 = arith.constant 0 : index
    %933 = vector.load %arg9[%c0_642, %c0_643] : memref<2x16xf32, #tpu.memory_space<vmem>>, vector<2x16xf32>
    tpu.vector_store %arg9[%c0_642, %c0_643], %866 {strides = array<i32>} : memref<2x16xf32, #tpu.memory_space<vmem>>, vector<2x16xf32>,
    %c0_644 = arith.constant 0 : index
    %c0_645 = arith.constant 0 : index
    %934 = vector.load %arg10[%c0_644, %c0_645] : memref<2x16xf32, #tpu.memory_space<vmem>>, vector<2x16xf32>
    tpu.vector_store %arg10[%c0_644, %c0_645], %928 {strides = array<i32>} : memref<2x16xf32, #tpu.memory_space<vmem>>, vector<2x16xf32>,
    return
  }
  func.func @transform_0(%arg0: i32) -> (i32, i32, i32, i32) {
    %c0_i32 = arith.constant 0 : i32
    %c0_i32_0 = arith.constant 0 : i32
    %c0_i32_1 = arith.constant 0 : i32
    %c0_i32_2 = arith.constant 0 : i32
    return %c0_i32, %arg0, %c0_i32_0, %c0_i32_1 : i32, i32, i32, i32
  }
  func.func @transform_1(%arg0: i32) -> (i32, i32, i32) {
    %c0_i32 = arith.constant 0 : i32
    %c0_i32_0 = arith.constant 0 : i32
    %c0_i32_1 = arith.constant 0 : i32
    %c0_i32_2 = arith.constant 0 : i32
    return %c0_i32, %c0_i32_0, %c0_i32_1 : i32, i32, i32
  }
  func.func @transform_2(%arg0: i32) -> (i32, i32, i32) {
    %c0_i32 = arith.constant 0 : i32
    %c0_i32_0 = arith.constant 0 : i32
    %c0_i32_1 = arith.constant 0 : i32
    %c0_i32_2 = arith.constant 0 : i32
    return %c0_i32, %c0_i32_0, %c0_i32_1 : i32, i32, i32
  }
  func.func @transform_3(%arg0: i32) -> (i32, i32, i32) {
    %c0_i32 = arith.constant 0 : i32
    %c0_i32_0 = arith.constant 0 : i32
    %c0_i32_1 = arith.constant 0 : i32
    %c0_i32_2 = arith.constant 0 : i32
    return %c0_i32, %c0_i32_0, %c0_i32_1 : i32, i32, i32
  }
  func.func @transform_4(%arg0: i32) -> (i32, i32, i32) {
    %c0_i32 = arith.constant 0 : i32
    %c0_i32_0 = arith.constant 0 : i32
    %c0_i32_1 = arith.constant 0 : i32
    %c0_i32_2 = arith.constant 0 : i32
    return %c0_i32, %c0_i32_0, %c0_i32_1 : i32, i32, i32
  }
  func.func @transform_5(%arg0: i32) -> (i32, i32, i32) {
    %c0_i32 = arith.constant 0 : i32
    %c0_i32_0 = arith.constant 0 : i32
    %c0_i32_1 = arith.constant 0 : i32
    %c0_i32_2 = arith.constant 0 : i32
    return %c0_i32, %c0_i32_0, %c0_i32_1 : i32, i32, i32
  }
  func.func @transform_6(%arg0: i32) -> (i32, i32, i32) {
    %c0_i32 = arith.constant 0 : i32
    %c0_i32_0 = arith.constant 0 : i32
    %c0_i32_1 = arith.constant 0 : i32
    %c0_i32_2 = arith.constant 0 : i32
    return %c0_i32, %c0_i32_0, %c0_i32_1 : i32, i32, i32
  }
  func.func @transform_7(%arg0: i32) -> (i32, i32, i32) {
    %c0_i32 = arith.constant 0 : i32
    %c0_i32_0 = arith.constant 0 : i32
    %c0_i32_1 = arith.constant 0 : i32
    return %arg0, %c0_i32, %c0_i32_0 : i32, i32, i32
  }
}

</mosaic_0001>

<bundles_post_ra>
// kernel: residual_lstm_forward.3
= control target key start
LH: loop header
LB: loop body
LE: loop exit
PB: predicated region body
PF: predicated region fallthrough
CT: control target
= control target key end

     0   :  { %vm27_vm0 = vcmask 261120   ;;  %vm109_vm1 = vcmask 130048   ;;  %s497_s1 = inlined_call_operand.vmem [shape: f32[3,32,16], index: 1, kind: input, shape index: {}]   ;;  %s498_s0 = inlined_call_operand.vmem [shape: f32[16,32], index: 0, kind: input, shape index: {}]   ;;  %s499_s2 = inlined_call_operand.vmem [shape: f32[3,1,16], index: 2, kind: input, shape index: {}]   ;;  %s500_s3 = inlined_call_operand.vmem [shape: f32[3,16,16], index: 3, kind: output, shape index: {}]  }
   0x1   :  { %v16_v0 = vld [vmem:[%s497_s1] sm:$0xff]  ;;  %v17_v1 = vld [vmem:[%s497_s1 + $0x8] sm:$0xff]  ;;  %v18_v2 = vld [vmem:[%s497_s1 + $0x10] sm:$0xff] }
   0x2   :  { %v372_v3 = vpack.c.bf16 %v17_v1, %v16_v0  ;;  %v19_v4 = vld [vmem:[%s497_s1 + $0x18] sm:$0xff]  ;;  %v14_v5 = vld [vmem:[%s498_s0] sm:$0xff]  ;;  %v302_v8 = vld [vmem:[%s497_s1 + $0x28] sm:$0xff] }
   0x3   :  { %v301_v6 = vld [vmem:[%s497_s1 + $0x20] sm:$0xff]  ;;  %v376_v7 = vpack.c.bf16 %v19_v4, %v18_v2  ;;  %347 = vmatprep.mubr.msk.f32.mxu0 %vm27_vm0, %v14_v5  ;;  %358 = vmatprep.mubr.msk.f32.mxu1 %vm27_vm0, %v14_v5  ;;  %v312_v11 = vld [vmem:[%s497_s1 + $0x48] sm:$0xff]  ;;  %v303_v12 = vld [vmem:[%s497_s1 + $0x30] sm:$0xff] }
   0x4   :  { %v311_v9 = vld [vmem:[%s497_s1 + $0x40] sm:$0xff]  ;;  %373 = vmatprep.subr.bf16.mxu0 %v372_v3  ;;  %v380_v10 = vpack.c.bf16 %v302_v8, %v301_v6  ;;  %v304_v13 = vld [vmem:[%s497_s1 + $0x38] sm:$0xff]  ;;  %v313_v16 = vld [vmem:[%s497_s1 + $0x50] sm:$0xff] }
   0x5   :  { %375 = vmatpush3.bf16.msra.mxu0 %v372_v3  ;;  %v384_v14 = vpack.c.bf16 %v304_v13, %v303_v12  ;;  %v388_v15 = vpack.c.bf16 %v312_v11, %v311_v9  ;;  %v314_v17 = vld [vmem:[%s497_s1 + $0x58] sm:$0xff]  ;;  %v15_v18 = vld [vmem:[%s498_s0 + $0x8] sm:$0xff]  ;;  %v298_v20 = vld [vmem:[%s499_s2] ss:$0 sm:$0xff] }
   0x6   :  { %377 = vmatprep.subr.bf16.mxu0 %v376_v7  ;;  %381 = vmatprep.subr.bf16.mxu1 %v380_v10  ;;  %v392_v19 = vpack.c.bf16 %v314_v17, %v313_v16  ;;  %v306_v22 = vld [vmem:[%s499_s2 + $0x1] ss:$0 sm:$0xff]  ;;  %v316_v30 = vld [vmem:[%s499_s2 + $0x2] ss:$0 sm:$0xff] }
   0x7   :  { %383 = vmatpush3.bf16.msra.mxu1 %v380_v10 }
   0x8   :  { %385 = vmatprep.subr.bf16.mxu1 %v384_v14 }
   0x9   :  { %379 = vmatpush3.bf16.msra.mxu0 %v376_v7 }
   0xa   :  { %389 = vmatprep.subr.bf16.mxu0 %v388_v15 }
   0xb   :  { %387 = vmatpush3.bf16.msra.mxu1 %v384_v14 }
   0xc   :  { %348 = vmatmul.mubr.msk.f32.vlgmr.msra.gmra.mrb[0].mxu0 %vm27_vm0, %v15_v18 }
   0xd   :  { %391 = vmatpush3.bf16.msra.mxu0 %v388_v15  ;;  %369 = vmatprep.mubr.msk.f32.mxu0 %vm27_vm0, %v14_v5 }
   0xe   :  { %393 = vmatprep.subr.bf16.mxu0 %v392_v19  ;;  %359 = vmatmul.mubr.msk.f32.vlgmr.msra.gmra.mrb[0].mxu1 %vm27_vm0, %v15_v18 }
  0x11   :  { %395 = vmatpush3.bf16.msra.mxu0 %v392_v19 }
  0x14   :  { %370 = vmatmul.mubr.msk.f32.vlgmr.msra.gmra.mrb[2].mxu0 %vm27_vm0, %v15_v18 }
  0xdf   :  { %v349_v21 = vpop.f32.mrb[0].mxu0 }
  0xe0   :  { %v106_v23 = vadd.f32 %v349_v21, %v298_v20  ;;  %v100_v24 = vpop.f32.mrb[1].mxu0 }
  0xe1   :  { %v101_v25 = vadd.f32 %v298_v20, %v100_v24  ;;  %v360_v26 = vpop.f32.mrb[0].mxu1 }
  0xe2   :  { %111 = vst.msk [vmem:[%s500_s3 + $0x8] sm:$0xff] %vm109_vm1, %v106_v23  ;;  %v197_v27 = vadd.f32 %v360_v26, %v306_v22  ;;  %v191_v28 = vpop.f32.mrb[1].mxu1 }
  0xe3   :  { %110 = vst.msk [vmem:[%s500_s3] sm:$0xff] %vm109_vm1, %v101_v25  ;;  %v192_v29 = vadd.f32 %v306_v22, %v191_v28 }
  0xe4   :  { %310 = vst.msk [vmem:[%s500_s3 + $0x18] sm:$0xff] %vm109_vm1, %v197_v27 }
  0xe5   :  { %309 = vst.msk [vmem:[%s500_s3 + $0x10] sm:$0xff] %vm109_vm1, %v192_v29 }
  0xe7   :  { %v371_v31 = vpop.f32.mrb[2].mxu0 }
  0xe8   :  { %v288_v32 = vadd.f32 %v371_v31, %v316_v30  ;;  %v282_v33 = vpop.f32.mrb[3].mxu0 }
  0xe9   :  { %v283_v34 = vadd.f32 %v316_v30, %v282_v33 }
  0xea   :  { %320 = vst.msk [vmem:[%s500_s3 + $0x28] sm:$0xff] %vm109_vm1, %v288_v32 }
  0xeb   :  { %319 = vst.msk [vmem:[%s500_s3 + $0x20] sm:$0xff] %vm109_vm1, %v283_v34 }

// kernel: residual_lstm_forward.5
= control target key start
LH: loop header
LB: loop body
LE: loop exit
PB: predicated region body
PF: predicated region fallthrough
CT: control target
= control target key end

     0   :  { %vm38_vm0 = vcmask 130048   ;;  %s651_s0 = inlined_call_operand.vmem [shape: f32[16,16], index: 0, kind: input, shape index: {}]   ;;  %s652_s1 = inlined_call_operand.vmem [shape: f32[16,32], index: 1, kind: input, shape index: {}]   ;;  %s653_s2 = inlined_call_operand.vmem [shape: f32[1,16], index: 2, kind: input, shape index: {}]   ;;  %s654_s3 = inlined_call_operand.vmem [shape: f32[1,16], index: 3, kind: input, shape index: {}]   ;;  %s655_s4 = inlined_call_operand.vmem [shape: f32[16,128], index: 4, kind: input, shape index: {}]   ;;  %s656_s5 = inlined_call_operand.vmem [shape: f32[1,128], index: 5, kind: input, shape index: {}]   ;;  %s657_s6 = inlined_call_operand.vmem [shape: f32[128,32], index: 6, kind: input, shape index: {}]   ;;  %s658_s7 = inlined_call_operand.vmem [shape: f32[1,32], index: 7, kind: input, shape index: {}]   ;;  %s659_s8 = inlined_call_operand.vmem [shape: f32[1,32], index: 8, kind: input, shape index: {}]   ;;  %s660_s9 = inlined_call_operand.vmem [shape: f32[1,32], index: 9, kind: input, shape index: {}]   ;;  %s661_s10 = inlined_call_operand.hbm [shape: f32[16,32], index: 10, kind: output, shape index: {}]  }
   0x1   :  { %v36_v0 = vld [vmem:[%s651_s0] sm:$0xff]  ;;  %v37_v1 = vld [vmem:[%s651_s0 + $0x8] sm:$0xff] }
   0x2   :  { %15 = vsyncpa [#allocation3], 0  ;;  %v39_v2 = vsel %vm38_vm0, %v36_v0, 0.0  ;;  %v42_v3 = vsel %vm38_vm0, %v37_v1, 0.0  ;;  %v84_v14 = vld [vmem:[%s655_s4] sm:$0xff]  ;;  %v85_v15 = vld [vmem:[%s655_s4 + $0x8] sm:$0xff] }
   0x3   :  { %40 = vadd.xlane.f32.xlu0 %v39_v2  ;;  %v414_v16 = vpack.c.bf16 %v85_v15, %v84_v14  ;;  %v176_v17 = vld [vmem:[%s657_s6] sm:$0xff]  ;;  %v177_v18 = vld [vmem:[%s657_s6 + $0x8] sm:$0xff]  ;;  %v178_v19 = vld [vmem:[%s657_s6 + $0x10] sm:$0xff]  ;;  %vm278_vm1 = vcmask 261120   ;;  %s485_s18 = smov [#allocation2]  }
   0x4   :  { %v418_v20 = vpack.c.bf16 %v177_v18, %v176_v17  ;;  %v179_v21 = vld [vmem:[%s657_s6 + $0x18] sm:$0xff]  ;;  %v180_v23 = vld [vmem:[%s657_s6 + $0x20] sm:$0xff]  ;;  %v181_v24 = vld [vmem:[%s657_s6 + $0x28] sm:$0xff]  ;;  %s331_s19 = sshll.u32 %s485_s18, 4  ;;  %s332_s19 = int_to_ptr.vmem [resolvable:$true] %s331_s19 }
   0x5   :  { %415 = vmatprep.subr.bf16.mxu0 %v414_v16  ;;  %v422_v22 = vpack.c.bf16 %v179_v21, %v178_v19  ;;  %v426_v25 = vpack.c.bf16 %v181_v24, %v180_v23  ;;  %v182_v26 = vld [vmem:[%s657_s6 + $0x30] sm:$0xff]  ;;  %v183_v27 = vld [vmem:[%s657_s6 + $0x38] sm:$0xff]  ;;  %v184_v29 = vld [vmem:[%s657_s6 + $0x40] sm:$0xff]  ;;  %s461_s20 = scalar_lea.vmem %s332_s19, 256  ;;  %p466_p1 = scmp.lt.s32.totalorder %s332_s19, %s332_s19 }
   0x6   :  { %417 = vmatpush3.bf16.msra.mxu0 %v414_v16  ;;  %419 = vmatprep.subr.bf16.mxu1 %v418_v20  ;;  %v430_v28 = vpack.c.bf16 %v183_v27, %v182_v26  ;;  %v185_v30 = vld [vmem:[%s657_s6 + $0x48] sm:$0xff]  ;;  %v186_v32 = vld [vmem:[%s657_s6 + $0x50] sm:$0xff]  ;;  %v187_v33 = vld [vmem:[%s657_s6 + $0x58] sm:$0xff]  ;;  %p462_p0 = scmp.ne.s32.totalorder %s332_s19, %s461_s20  ;;  %p467_p2 = scmp.lt.s32.totalorder %s461_s20, %s461_s20 }
   0x7   :  { %43 = vadd.xlane.f32.xlu0 %v42_v3  ;;  %421 = vmatpush3.bf16.msra.mxu1 %v418_v20  ;;  %v434_v31 = vpack.c.bf16 %v185_v30, %v184_v29  ;;  %v438_v34 = vpack.c.bf16 %v187_v33, %v186_v32  ;;  %v188_v35 = vld [vmem:[%s657_s6 + $0x60] sm:$0xff]  ;;  %v189_v36 = vld [vmem:[%s657_s6 + $0x68] sm:$0xff]  ;;  %v190_v54 = vld [vmem:[%s657_s6 + $0x70] sm:$0xff] }
   0x8   :  { %423 = vmatprep.subr.bf16.mxu1 %v422_v22  ;;  %v442_v37 = vpack.c.bf16 %v189_v36, %v188_v35  ;;  %v342_v45 = vld [vmem:[%s653_s2] ss:$0 sm:$0xff]  ;;  %v191_v55 = vld [vmem:[%s657_s6 + $0x78] sm:$0xff]  ;;  %v275_v2 = vld [vmem:[%s652_s1 + $0x8] sm:$0xff]  ;;  %p468_p3 = por %p467_p2, %p466_p1 }
   0x9   :  { %v343_v47 = vld [vmem:[%s654_s3] ss:$0 sm:$0xff]  ;;  %v446_v56 = vpack.c.bf16 %v191_v55, %v190_v54 }
   0xa   :  { %v344_v57 = vld [vmem:[%s656_s5] ss:$0 sm:$0xff]  ;;  %p469_p4 = pnand %p468_p3, %p462_p0 }
   0xb   :  { %425 = vmatpush3.bf16.msra.mxu1 %v422_v22  ;;  %v349_v32 = vld [vmem:[%s660_s9] ss:$0 sm:$0xff] }
   0xc   :  { %427 = vmatprep.subr.bf16.mxu1 %v426_v25 }
   0xf   :  { %429 = vmatpush3.bf16.msra.mxu1 %v426_v25 }
  0x10   :  { %431 = vmatprep.subr.bf16.mxu1 %v430_v28 }
  0x13   :  { %433 = vmatpush3.bf16.msra.mxu1 %v430_v28  ;;  %v348_v28 = vld [vmem:[%s659_s8] ss:$0 sm:$0xff] }
  0x14   :  { %435 = vmatprep.subr.bf16.mxu1 %v434_v31 }
  0x17   :  { %437 = vmatpush3.bf16.msra.mxu1 %v434_v31 }
  0x18   :  { %439 = vmatprep.subr.bf16.mxu1 %v438_v34 }
  0x1b   :  { %441 = vmatpush3.bf16.msra.mxu1 %v438_v34 }
  0x1c   :  { %443 = vmatprep.subr.bf16.mxu1 %v442_v37 }
  0x1f   :  { %445 = vmatpush3.bf16.msra.mxu1 %v442_v37 }
  0x20   :  { %447 = vmatprep.subr.bf16.mxu1 %v446_v56 }
  0x23   :  { %449 = vmatpush3.bf16.msra.mxu1 %v446_v56 }
  0x90   :  { %v41_v4 = vpop.xlane.xlu0 %40 }
  0x91   :  { %v46_v5 = vmul.f32 0.0625, %v41_v4 }
  0x93   :  { %v48_v6 = vsub.f32 %v36_v0, %v46_v5  ;;  %v347_v0 = vld [vmem:[%s658_s7] ss:$0 sm:$0xff] }
  0x94   :  { %v44_v7 = vpop.xlane.xlu0 %43  ;;  %v274_v5 = vld [vmem:[%s652_s1] sm:$0xff] }
  0x95   :  { %v47_v8 = vmul.f32 0.0625, %v44_v7  ;;  %v50_v9 = vmul.f32 %v48_v6, %v48_v6 }
  0x97   :  { %v49_v10 = vsub.f32 %v37_v1, %v47_v8  ;;  %v52_v11 = vsel %vm38_vm0, %v50_v9, 0.0 }
  0x98   :  { %53 = vadd.xlane.f32.xlu1 %v52_v11 }
  0x99   :  { %v51_v12 = vmul.f32 %v49_v10, %v49_v10 }
  0x9b   :  { %v55_v13 = vsel %vm38_vm0, %v51_v12, 0.0 }
  0x9c   :  { %56 = vadd.xlane.f32.xlu1 %v55_v13 }
 0x125   :  { %v54_v38 = vpop.xlane.xlu1 %53 }
 0x126   :  { %v58_v39 = vmul.f32 0.0625, %v54_v38 }
 0x128   :  { %v60_v40 = vadd.f32 1e-05, %v58_v39 }
 0x129   :  { %v57_v41 = vpop.xlane.xlu1 %56 }
 0x12a   :  { %453 = vrsqrt.f32 %v60_v40  ;;  %v59_v42 = vmul.f32 0.0625, %v57_v41 }
 0x12c   :  { %v61_v43 = vadd.f32 1e-05, %v59_v42 }
 0x12e   :  { %455 = vrsqrt.f32 %v61_v43 }
 0x134   :  { %v454_v44 = vpop.eup %453 }
 0x135   :  { %v64_v46 = vmul.f32 %v454_v44, %v48_v6 }
 0x137   :  { %v73_v48 = vmul.f32 %v342_v45, %v64_v46 }
 0x138   :  { %v456_v49 = vpop.eup %455 }
 0x139   :  { %v65_v50 = vmul.f32 %v456_v49, %v49_v10  ;;  %v82_v51 = vadd.f32 %v343_v47, %v73_v48 }
 0x13b   :  { %v74_v52 = vmul.f32 %v342_v45, %v65_v50  ;;  %376 = vmatprep.mubr.msk.f32.mxu0 %vm38_vm0, %v82_v51 }
 0x13d   :  { %v83_v53 = vadd.f32 %v343_v47, %v74_v52 }
 0x13f   :  { %377 = vmatmul.mubr.msk.f32.vlgmr.msra.gmra.mrb[0].mxu0 %vm38_vm0, %v83_v53 }
 0x212   :  { %v378_v58 = vpop.f32.mrb[0].mxu0 }
 0x213   :  { %v171_v59 = vadd.f32 %v378_v58, %v344_v57  ;;  %v165_v60 = vpop.f32.mrb[1].mxu0 }
 0x214   :  { %v166_v61 = vadd.f32 %v344_v57, %v165_v60 }
 0x215   :  { %v175_v63 = vmax.f32 %v171_v59, 0.0 }
 0x216   :  { %v174_v62 = vmax.f32 %v166_v61, 0.0 }
 0x218   :  { %411 = vmatprep.mubr.f32.mxu1 %v174_v62 }
 0x219   :  { %412 = vmatmul.mubr.f32.vlgmr.msra.gmra.mrb[0].mxu1 %v175_v63 }
 0x2ec   :  { %v413_v1 = vpop.f32.mrb[0].mxu1 }
 0x2ed   :  { %v271_v3 = vadd.f32 %v413_v1, %v347_v0  ;;  %v265_v4 = vpop.f32.mrb[1].mxu1 }
 0x2ee   :  { %v266_v6 = vadd.f32 %v347_v0, %v265_v4 }
 0x2ef   :  { %v277_v7 = vadd.f32 %v275_v2, %v271_v3 }
 0x2f0   :  { %v276_v8 = vadd.f32 %v274_v5, %v266_v6 }
 0x2f1   :  { %v282_v9 = vsel %vm278_vm1, %v277_v7, 0.0 }
 0x2f2   :  { %283 = vadd.xlane.f32.xlu1 %v282_v9  ;;  %v279_v10 = vsel %vm278_vm1, %v276_v8, 0.0 }
 0x2f3   :  { %280 = vadd.xlane.f32.xlu0 %v279_v10 }
 0x37f   :  { %v284_v11 = vpop.xlane.xlu1 %283 }
 0x380   :  { %v287_v12 = vmul.f32 0.03125, %v284_v11  ;;  %v281_v13 = vpop.xlane.xlu0 %280 }
 0x381   :  { %v286_v14 = vmul.f32 0.03125, %v281_v13 }
 0x382   :  { %v289_v15 = vsub.f32 %v277_v7, %v287_v12 }
 0x383   :  { %v288_v16 = vsub.f32 %v276_v8, %v286_v14 }
 0x384   :  { %v291_v17 = vmul.f32 %v289_v15, %v289_v15 }
 0x385   :  { %v290_v18 = vmul.f32 %v288_v16, %v288_v16 }
 0x386   :  { %v295_v19 = vsel %vm278_vm1, %v291_v17, 0.0 }
 0x387   :  { %296 = vadd.xlane.f32.xlu1 %v295_v19  ;;  %v292_v20 = vsel %vm278_vm1, %v290_v18, 0.0 }
 0x388   :  { %293 = vadd.xlane.f32.xlu0 %v292_v20 }
 0x414   :  { %v297_v21 = vpop.xlane.xlu1 %296 }
 0x415   :  { %v299_v22 = vmul.f32 0.03125, %v297_v21  ;;  %v294_v23 = vpop.xlane.xlu0 %293 }
 0x416   :  { %v298_v24 = vmul.f32 0.03125, %v294_v23 }
 0x417   :  { %v301_v25 = vadd.f32 1e-05, %v299_v22 }
 0x418   :  { %v300_v26 = vadd.f32 1e-05, %v298_v24 }
 0x419   :  { %457 = vrsqrt.f32 %v301_v25 }
 0x41a   :  { %459 = vrsqrt.f32 %v300_v26 }
 0x423   :  { %v458_v27 = vpop.eup %457 }
 0x424   :  { %v460_v29 = vpop.eup %459  ;;  %v305_v30 = vmul.f32 %v458_v27, %v289_v15 }
 0x425   :  { %v304_v31 = vmul.f32 %v460_v29, %v288_v16 }
 0x426   :  { %v314_v33 = vmul.f32 %v348_v28, %v305_v30 }
 0x427   :  { %v313_v34 = vmul.f32 %v348_v28, %v304_v31 }
 0x428   :  { %v323_v35 = vadd.f32 %v349_v32, %v314_v33 }
 0x429   :  { %v322_v36 = vadd.f32 %v349_v32, %v313_v34 }
 0x42a   :  { %325 = vst.msk [vmem:[#allocation2 + $0x8] sm:$0xff] %vm278_vm1, %v323_v35 }
 0x42b   :  { %324 = vst.msk [vmem:[#allocation2] sm:$0xff] %vm278_vm1, %v322_v36 }
 0x42c   :  { %472 = shalt.err (!%p469_p4)
}
 0x42d   :  { %s473_s21 = scalar_lea.hbm %s661_s10, 256 }
 0x42e   :  { %p474_p5 = scmp.ne.s32.totalorder %s661_s10, %s473_s21  ;;  %p477_p6 = scmp.lt.u32.totalorder %s473_s21, %s661_s10 }
 0x430   :  { %p479_p7 = pnand %p477_p6, %p474_p5 }
 0x432   :  { %482 = shalt.err (!%p479_p7)
}
 0x433   :  { %s486_s26 = smov 128   ;;  %s487_s27 = smov 8  }
 0x434   :  { %337 = dma.vmem_to_hbm [thread:$0]  %s332_s19, 256, %s661_s10, [#allocation3], %s486_s26, %s486_s26, %s487_s27  }
 0x435   :  { %483 = dma.done.wait [#allocation3], 256  }
 0x436   :  { %484 = vsyncadd [#allocation3], 4294967040 }
 0x437   :  { %341 = vsyncpa [#allocation3], 1 }

// kernel: residual_lstm_forward.4
= control target key start
LH: loop header
LB: loop body
LE: loop exit
PB: predicated region body
PF: predicated region fallthrough
CT: control target
= control target key end

     0   :  { %vm30_vm0 = vcmask 123904   ;;  %v7705_v0 = vmov 0.0|0.0   ;;  %vm7706_vm1 = vmmov 0   ;;  %v7707_v3 = vmov 0.0   ;;  %s8611_s1 = inlined_call_operand.vmem [shape: f32[3,16,16], index: 1, kind: input, shape index: {}]   ;;  %s8612_s3 = inlined_call_operand.vmem [shape: f32[3,16,16], index: 3, kind: input, shape index: {}]   ;;  %s8613_s2 = inlined_call_operand.vmem [shape: f32[3,1,16], index: 2, kind: input, shape index: {}]   ;;  %s8614_s0 = inlined_call_operand.vmem [shape: f32[3,8,2,16], index: 0, kind: input, shape index: {}]   ;;  %s8615_s5 = inlined_call_operand.vmem [shape: f32[3,16,16], index: 5, kind: input, shape index: {}]   ;;  %s8616_s6 = inlined_call_operand.vmem [shape: f32[3,1,16], index: 6, kind: input, shape index: {}]   ;;  %s8617_s4 = inlined_call_operand.vmem [shape: f32[3,1,16], index: 4, kind: input, shape index: {}]   ;;  %s8618_s7 = inlined_call_operand.vmem [shape: f32[8,2,16], index: 7, kind: output, shape index: {}]  }
   0x1   :  { %7262 = vmatprep.subr.bf16.mxu0 %v7705_v0  ;;  %v40_v1 = vld [vmem:[%s8611_s1] sm:$0xff]  ;;  %v41_v2 = vld [vmem:[%s8611_s1 + $0x8] sm:$0xff]  ;;  %6762 = vmatprep.mubr.msk.f32.mxu0 %vm7706_vm1, %v7707_v3  ;;  %31 = vst.msk [vmem:[#allocation2] sm:$0x3] %vm30_vm0, %v7707_v3  ;;  %32 = vst.msk [vmem:[#allocation3] sm:$0x3] %vm30_vm0, %v7707_v3 }
   0x2   :  { %v6196_v4 = vld [vmem:[%s8611_s1 + $0x10] sm:$0xff]  ;;  %v7764_v5 = vpack.c.bf16 %v41_v2, %v40_v1  ;;  %7265 = vmatprep.subr.bf16.mxu1 %v7705_v0  ;;  %v6197_v6 = vld [vmem:[%s8611_s1 + $0x18] sm:$0xff]  ;;  %6769 = vmatprep.mubr.msk.f32.mxu1 %vm7706_vm1, %v7707_v3  ;;  %v6201_v8 = vld [vmem:[%s8611_s1 + $0x20] sm:$0xff]  ;;  %vm49_vm2 = vcmask 130048  }
   0x3   :  { %v7772_v7 = vpack.c.bf16 %v6197_v6, %v6196_v4  ;;  %v6202_v9 = vld [vmem:[%s8611_s1 + $0x28] sm:$0xff]  ;;  %v306_v12 = vld [vmem:[%s8612_s3] sm:$0xff]  ;;  %v6210_v14 = vld [vmem:[%s8612_s3 + $0x10] sm:$0xff] }
   0x4   :  { %7264 = vmatpush3.bf16.msra.mxu0 %v7764_v5  ;;  %v7783_v10 = vpack.c.bf16 %v6202_v9, %v6201_v8  ;;  %v307_v13 = vld [vmem:[%s8612_s3 + $0x8] sm:$0xff]  ;;  %v6211_v16 = vld [vmem:[%s8612_s3 + $0x18] sm:$0xff]  ;;  %v7820_v18 = vld [vmem:[%s8613_s2] ss:$0 sm:$0xff] }
   0x5   :  { %7267 = vmatpush3.bf16.msra.mxu1 %v7772_v7  ;;  %7268 = vmatprep.subr.bf16.mxu0 %v7705_v0  ;;  %v7806_v15 = vpack.c.bf16 %v307_v13, %v306_v12  ;;  %v7811_v17 = vpack.c.bf16 %v6211_v16, %v6210_v14  ;;  %v7825_v19 = vld [vmem:[%s8613_s2 + $0x1] ss:$0 sm:$0xff]  ;;  %v6192_v25 = vld [vmem:[%s8614_s0 + $0x10] sm:$0x3]  ;;  %v7838_v37 = vld [vmem:[%s8613_s2 + $0x2] ss:$0 sm:$0xff] }
   0x6   :  { %7271 = vmatprep.subr.bf16.mxu1 %v7705_v0  ;;  %v35_v20 = vld [vmem:[%s8614_s0] sm:$0x3]  ;;  %v6216_v47 = vld [vmem:[%s8612_s3 + $0x28] sm:$0xff]  ;;  %v6222_v49 = vld [vmem:[%s8615_s5 + $0x10] sm:$0xff] }
   0x7   :  { %v6193_v41 = vld [vmem:[%s8614_s0 + $0x20] sm:$0x3]  ;;  %v6223_v50 = vld [vmem:[%s8615_s5 + $0x18] sm:$0xff]  ;;  %v551_v56 = vld [vmem:[%s8615_s5 + $0x8] sm:$0xff] }
   0x8   :  { %v33_v11 = vld [vmem:[#allocation2] sm:$0x3]  ;;  %v7866_v57 = vpack.c.bf16 %v6223_v50, %v6222_v49  ;;  %v6228_v60 = vld [vmem:[%s8615_s5 + $0x28] sm:$0xff]  ;;  %v7893_v61 = vld [vmem:[#allocation3] sm:$0x3] }
   0x9   :  { %6763 = vmatmul.mubr.msk.f32.vlgmr.msra.gmra.mrb[0].mxu0 %vm49_vm2, %v33_v11  ;;  %6770 = vmatmul.mubr.msk.f32.vlgmr.msra.gmra.mrb[0].mxu1 %vm49_vm2, %v33_v11  ;;  %v6215_v46 = vld [vmem:[%s8612_s3 + $0x20] sm:$0xff] }
   0xa   :  { %7270 = vmatpush3.bf16.msra.mxu0 %v7783_v10  ;;  %6776 = vmatprep.mubr.msk.f32.mxu0 %vm7706_vm1, %v7707_v3  ;;  %v7856_v53 = vpack.c.bf16 %v6216_v47, %v6215_v46  ;;  %v550_v55 = vld [vmem:[%s8615_s5] sm:$0xff] }
   0xb   :  { %7274 = vmatprep.subr.bf16.mxu0 %v7705_v0  ;;  %6783 = vmatprep.mubr.msk.f32.mxu1 %vm7706_vm1, %v7707_v3  ;;  %v7875_v58 = vpack.c.bf16 %v551_v56, %v550_v55  ;;  %v6227_v59 = vld [vmem:[%s8615_s5 + $0x20] sm:$0xff] }
   0xc   :  { %7273 = vmatpush3.bf16.msra.mxu1 %v7806_v15  ;;  %v7895_v62 = vpack.c.bf16 %v6228_v60, %v6227_v59  ;;  %v6208_v63 = vld [vmem:[%s8617_s4] ss:$0 sm:$0xff]  ;;  %v6213_v8 = vld [vmem:[%s8617_s4 + $0x1] ss:$0 sm:$0xff]  ;;  %v7963_v46 = vld [vmem:[%s8616_s6 + $0x2] ss:$0 sm:$0xff] }
   0xd   :  { %6777 = vmatmul.mubr.msk.f32.vlgmr.msra.gmra.mrb[2].mxu0 %vm49_vm2, %v33_v11  ;;  %7277 = vmatprep.subr.bf16.mxu1 %v7705_v0  ;;  %v6220_v1 = vld [vmem:[%s8616_s6] ss:$0 sm:$0xff]  ;;  %v6225_v9 = vld [vmem:[%s8616_s6 + $0x1] ss:$0 sm:$0xff] }
   0xe   :  { %6790 = vmatprep.mubr.msk.f32.mxu0 %vm7706_vm1, %v7707_v3  ;;  %7276 = vmatpush3.bf16.msra.mxu0 %v7811_v17  ;;  %v7940_v6 = vadd.f32 %v6220_v1, %v6208_v63  ;;  %v7948_v13 = vadd.f32 %v6225_v9, %v6213_v8  ;;  %v6236_v1 = vld [vmem:[%s8614_s0 + $0x22] sm:$0x3] }
   0xf   :  { %7283 = vmatprep.subr.bf16.mxu0 %v7705_v0 }
  0xdc   :  { %v119_v21 = vpop.f32.mrb[0].mxu0  ;;  %v200_v22 = vpop.f32.mrb[0].mxu1 }
  0xdd   :  { %v120_v23 = vadd.f32 %v7820_v18, %v119_v21  ;;  %v6764_v24 = vpop.f32.mrb[1].mxu0  ;;  %v201_v26 = vadd.f32 %v7825_v19, %v200_v22  ;;  %v6771_v27 = vpop.f32.mrb[1].mxu1 }
  0xdf   :  { %v285_v28 = vadd.f32 %v120_v23, %v35_v20  ;;  %v292_v29 = vadd.f32 %v6192_v25, %v201_v26  ;;  %v6234_v23 = vld [vmem:[%s8614_s0 + $0x2] sm:$0x3] }
  0xe0   :  { %v281_v30 = vpop.f32.mrb[2].mxu0 }
  0xe1   :  { %v6206_v31 = vmul.f32 -1.442695, %v285_v28  ;;  %v6778_v32 = vpop.f32.mrb[3].mxu0  ;;  %v6207_v33 = vmul.f32 -1.442695, %v292_v29  ;;  %v282_v39 = vadd.f32 %v7838_v37, %v281_v30 }
  0xe3   :  { %7545 = vpow2.f32 %v6206_v31  ;;  %v6235_v31 = vld [vmem:[%s8614_s0 + $0x12] sm:$0x3] }
  0xe4   :  { %7547 = vpow2.f32 %v6207_v33 }
  0xed   :  { %v7546_v34 = vpop.eup %7545 }
  0xee   :  { %v289_v35 = vadd.f32 1.0, %v7546_v34  ;;  %v7548_v36 = vpop.eup %7547 }
  0xef   :  { %v296_v38 = vadd.f32 1.0, %v7548_v36 }
  0xf0   :  { %7549 = vrcp.f32 %v289_v35 }
  0xf1   :  { %7551 = vrcp.f32 %v296_v38 }
  0xfa   :  { %v7550_v40 = vpop.eup %7549 }
  0xfb   :  { %v299_v42 = vmul.f32 %v7550_v40, %v282_v39  ;;  %v7552_v44 = vpop.eup %7551 }
  0xfc   :  { %v302_v45 = vsub.f32 1.0, %v7552_v44  ;;  %v304_v51 = vmul.f32 %v7552_v44, %v33_v11 }
  0xfd   :  { %v300_v43 = vadd.f32 %v6193_v41, %v299_v42 }
  0xff   :  { %7553 = vtanh.f32 %v300_v43 }
 0x109   :  { %v7554_v48 = vpop.eup %7553 }
 0x10a   :  { %v303_v52 = vmul.f32 %v7554_v48, %v302_v45  ;;  %v7968_v48 = vld [vmem:[%s8617_s4 + $0x2] ss:$0 sm:$0xff] }
 0x10c   :  { %v7858_v54 = vadd.f32 %v304_v51, %v303_v52 }
 0x10e   :  { %6784 = vmatmul.mubr.msk.f32.vlgmr.msra.gmra.mrb[2].mxu1 %vm49_vm2, %v7858_v54  ;;  %6791 = vmatmul.mubr.msk.f32.vlgmr.msra.gmra.mrb[4].mxu0 %vm49_vm2, %v7858_v54 }
 0x10f   :  { %7279 = vmatpush3.bf16.msra.mxu1 %v7856_v53  ;;  %6797 = vmatprep.mubr.msk.f32.mxu1 %vm7706_vm1, %v7707_v3 }
 0x110   :  { %7280 = vmatprep.subr.bf16.mxu1 %v7705_v0  ;;  %7285 = vmatpush3.bf16.msra.mxu0 %v7866_v57 }
 0x111   :  { %6811 = vmatprep.mubr.msk.f32.mxu0 %vm7706_vm1, %v7707_v3  ;;  %7286 = vmatprep.subr.bf16.mxu0 %v7705_v0 }
 0x112   :  { %6798 = vmatmul.mubr.msk.f32.vlgmr.msra.gmra.mrb[4].mxu1 %vm49_vm2, %v7858_v54 }
 0x113   :  { %7282 = vmatpush3.bf16.msra.mxu1 %v7875_v58  ;;  %6804 = vmatprep.mubr.msk.f32.mxu1 %vm7706_vm1, %v7707_v3 }
 0x114   :  { %7289 = vmatprep.subr.bf16.mxu1 %v7705_v0 }
 0x116   :  { %6805 = vmatmul.mubr.msk.f32.vlgmr.msra.gmra.mrb[2].mxu1 %vm49_vm2, %v7893_v61  ;;  %6812 = vmatmul.mubr.msk.f32.vlgmr.msra.gmra.mrb[4].mxu0 %vm49_vm2, %v7893_v61 }
 0x117   :  { %7291 = vmatpush3.bf16.msra.mxu1 %v7764_v5  ;;  %7288 = vmatpush3.bf16.msra.mxu0 %v7895_v62 }
 0x118   :  { %6818 = vmatprep.mubr.msk.f32.mxu0 %vm7706_vm1, %v7707_v3  ;;  %6825 = vmatprep.mubr.msk.f32.mxu1 %vm7706_vm1, %v7707_v3 }
 0x119   :  { %7292 = vmatprep.subr.bf16.mxu0 %v7705_v0  ;;  %7295 = vmatprep.subr.bf16.mxu1 %v7705_v0 }
 0x11a   :  { %6819 = vmatmul.mubr.msk.f32.vlgmr.msra.gmra.mrb[6].mxu0 %vm49_vm2, %v7893_v61  ;;  %6826 = vmatmul.mubr.msk.f32.vlgmr.msra.gmra.mrb[6].mxu1 %vm49_vm2, %v7858_v54 }
 0x11b   :  { %7294 = vmatpush3.bf16.msra.mxu0 %v7772_v7  ;;  %7297 = vmatpush3.bf16.msra.mxu1 %v7783_v10 }
 0x11c   :  { %6832 = vmatprep.mubr.msk.f32.mxu0 %vm7706_vm1, %v7707_v3  ;;  %6839 = vmatprep.mubr.msk.f32.mxu1 %vm7706_vm1, %v7707_v3 }
 0x11d   :  { %7298 = vmatprep.subr.bf16.mxu0 %v7705_v0  ;;  %7301 = vmatprep.subr.bf16.mxu1 %v7705_v0 }
 0x11e   :  { %6833 = vmatmul.mubr.msk.f32.vlgmr.msra.gmra.mrb[8].mxu0 %vm49_vm2, %v7858_v54  ;;  %6840 = vmatmul.mubr.msk.f32.vlgmr.msra.gmra.mrb[8].mxu1 %vm49_vm2, %v7858_v54 }
 0x11f   :  { %7300 = vmatpush3.bf16.msra.mxu0 %v7806_v15  ;;  %7303 = vmatpush3.bf16.msra.mxu1 %v7811_v17 }
 0x120   :  { %6846 = vmatprep.mubr.msk.f32.mxu0 %vm7706_vm1, %v7707_v3  ;;  %6853 = vmatprep.mubr.msk.f32.mxu1 %vm7706_vm1, %v7707_v3 }
 0x121   :  { %7304 = vmatprep.subr.bf16.mxu0 %v7705_v0  ;;  %7310 = vmatprep.subr.bf16.mxu1 %v7705_v0 }
 0x1e5   :  { %v546_v2 = vpop.f32.mrb[4].mxu1 }
 0x1e6   :  { %v6799_v4 = vpop.f32.mrb[5].mxu1  ;;  %v547_v52 = vadd.f32 %v7968_v48, %v546_v2 }
 0x1e9   :  { %v628_v11 = vpop.f32.mrb[2].mxu1  ;;  %v709_v12 = vpop.f32.mrb[4].mxu0 }
 0x1ea   :  { %v7479_v14 = vadd.f32 %v7940_v6, %v628_v11  ;;  %v6806_v16 = vpop.f32.mrb[3].mxu1  ;;  %v6813_v20 = vpop.f32.mrb[5].mxu0  ;;  %v7481_v22 = vadd.f32 %v7948_v13, %v709_v12 }
 0x1ec   :  { %v6232_v21 = vmul.f32 -1.442695, %v7479_v14  ;;  %v6233_v30 = vmul.f32 -1.442695, %v7481_v22 }
 0x1ed   :  { %v898_v24 = vpop.f32.mrb[6].mxu1  ;;  %v790_v25 = vpop.f32.mrb[6].mxu0 }
 0x1ee   :  { %7555 = vpow2.f32 %v6232_v21  ;;  %v899_v26 = vadd.f32 %v7820_v18, %v898_v24  ;;  %v6827_v27 = vpop.f32.mrb[7].mxu1  ;;  %v6820_v28 = vpop.f32.mrb[7].mxu0  ;;  %v791_v50 = vadd.f32 %v7963_v46, %v790_v25 }
 0x1f0   :  { %v1060_v29 = vadd.f32 %v6234_v23, %v899_v26 }
 0x1f1   :  { %v977_v32 = vpop.f32.mrb[8].mxu0  ;;  %v1056_v33 = vpop.f32.mrb[8].mxu1 }
 0x1f2   :  { %v6249_v34 = vmul.f32 -1.442695, %v1060_v29  ;;  %v978_v35 = vadd.f32 %v7825_v19, %v977_v32  ;;  %v6834_v36 = vpop.f32.mrb[9].mxu0  ;;  %v6841_v38 = vpop.f32.mrb[9].mxu1  ;;  %v1057_v60 = vadd.f32 %v7838_v37, %v1056_v33 }
 0x1f4   :  { %7557 = vpow2.f32 %v6249_v34  ;;  %v1067_v39 = vadd.f32 %v6235_v31, %v978_v35  ;;  %v6278_v34 = vld [vmem:[%s8614_s0 + $0x4] sm:$0x3] }
 0x1f5   :  { %7559 = vpow2.f32 %v6233_v30 }
 0x1f6   :  { %v6250_v40 = vmul.f32 -1.442695, %v1067_v39 }
 0x1f8   :  { %v7556_v41 = vpop.eup %7555  ;;  %7561 = vpow2.f32 %v6250_v40 }
 0x1f9   :  { %v798_v42 = vadd.f32 1.0, %v7556_v41 }
 0x1fb   :  { %7563 = vrcp.f32 %v798_v42  ;;  %v6279_v42 = vld [vmem:[%s8614_s0 + $0x14] sm:$0x3] }
 0x1fe   :  { %v7558_v43 = vpop.eup %7557 }
 0x1ff   :  { %v7560_v44 = vpop.eup %7559  ;;  %v1064_v45 = vadd.f32 1.0, %v7558_v43 }
 0x200   :  { %v805_v47 = vadd.f32 1.0, %v7560_v44 }
 0x201   :  { %7565 = vrcp.f32 %v1064_v45 }
 0x202   :  { %v7562_v49 = vpop.eup %7561  ;;  %7567 = vrcp.f32 %v805_v47 }
 0x203   :  { %v1071_v59 = vadd.f32 1.0, %v7562_v49 }
 0x205   :  { %v7564_v51 = vpop.eup %7563 }
 0x206   :  { %v808_v55 = vmul.f32 %v7564_v51, %v791_v50 }
 0x208   :  { %v809_v56 = vadd.f32 %v808_v55, %v547_v52 }
 0x20a   :  { %7569 = vtanh.f32 %v809_v56 }
 0x20b   :  { %v7566_v63 = vpop.eup %7565  ;;  %7571 = vrcp.f32 %v1071_v59 }
 0x20c   :  { %v1074_v4 = vmul.f32 %v7566_v63, %v1057_v60  ;;  %v7568_v9 = vpop.eup %7567 }
 0x20d   :  { %v811_v11 = vsub.f32 1.0, %v7568_v9  ;;  %v813_v14 = vmul.f32 %v7568_v9, %v7893_v61 }
 0x20e   :  { %v1075_v8 = vadd.f32 %v6236_v1, %v1074_v4 }
 0x210   :  { %7573 = vtanh.f32 %v1075_v8 }
 0x214   :  { %v7570_v12 = vpop.eup %7569 }
 0x215   :  { %v812_v2 = vmul.f32 %v7570_v12, %v811_v11  ;;  %v7572_v16 = vpop.eup %7571 }
 0x216   :  { %v1077_v21 = vsub.f32 1.0, %v7572_v16  ;;  %v1079_v23 = vmul.f32 %v7572_v16, %v7858_v54 }
 0x217   :  { %v7977_v20 = vadd.f32 %v813_v14, %v812_v2 }
 0x219   :  { %816 = vst.msk [vmem:[%s8618_s7] sm:$0x3] %vm30_vm0, %v7977_v20 }
 0x21a   :  { %v7574_v22 = vpop.eup %7573 }
 0x21b   :  { %v1078_v24 = vmul.f32 %v7574_v22, %v1077_v21  ;;  %v6280_v22 = vld [vmem:[%s8614_s0 + $0x24] sm:$0x3] }
 0x21d   :  { %v7985_v25 = vadd.f32 %v1079_v23, %v1078_v24 }
 0x21f   :  { %6847 = vmatmul.mubr.msk.f32.vlgmr.msra.gmra.mrb[10].mxu0 %vm49_vm2, %v7985_v25  ;;  %6854 = vmatmul.mubr.msk.f32.vlgmr.msra.gmra.mrb[10].mxu1 %vm49_vm2, %v7985_v25 }
 0x220   :  { %7306 = vmatpush3.bf16.msra.mxu0 %v7856_v53  ;;  %6860 = vmatprep.mubr.msk.f32.mxu0 %vm7706_vm1, %v7707_v3 }
 0x221   :  { %7307 = vmatprep.subr.bf16.mxu0 %v7705_v0  ;;  %7312 = vmatpush3.bf16.msra.mxu1 %v7866_v57 }
 0x222   :  { %6874 = vmatprep.mubr.msk.f32.mxu1 %vm7706_vm1, %v7707_v3  ;;  %7313 = vmatprep.subr.bf16.mxu1 %v7705_v0 }
 0x223   :  { %6861 = vmatmul.mubr.msk.f32.vlgmr.msra.gmra.mrb[12].mxu0 %vm49_vm2, %v7985_v25 }
 0x224   :  { %7309 = vmatpush3.bf16.msra.mxu0 %v7875_v58  ;;  %6867 = vmatprep.mubr.msk.f32.mxu0 %vm7706_vm1, %v7707_v3 }
 0x225   :  { %7316 = vmatprep.subr.bf16.mxu0 %v7705_v0 }
 0x227   :  { %6868 = vmatmul.mubr.msk.f32.vlgmr.msra.gmra.mrb[10].mxu0 %vm49_vm2, %v7977_v20  ;;  %6875 = vmatmul.mubr.msk.f32.vlgmr.msra.gmra.mrb[10].mxu1 %vm49_vm2, %v7977_v20 }
 0x228   :  { %7318 = vmatpush3.bf16.msra.mxu0 %v7764_v5  ;;  %7315 = vmatpush3.bf16.msra.mxu1 %v7895_v62 }
 0x229   :  { %6881 = vmatprep.mubr.msk.f32.mxu1 %vm7706_vm1, %v7707_v3  ;;  %6888 = vmatprep.mubr.msk.f32.mxu0 %vm7706_vm1, %v7707_v3 }
 0x22a   :  { %7319 = vmatprep.subr.bf16.mxu1 %v7705_v0  ;;  %7322 = vmatprep.subr.bf16.mxu0 %v7705_v0 }
 0x22b   :  { %6882 = vmatmul.mubr.msk.f32.vlgmr.msra.gmra.mrb[12].mxu1 %vm49_vm2, %v7977_v20  ;;  %6889 = vmatmul.mubr.msk.f32.vlgmr.msra.gmra.mrb[14].mxu0 %vm49_vm2, %v7985_v25 }
 0x22c   :  { %7321 = vmatpush3.bf16.msra.mxu1 %v7772_v7  ;;  %7324 = vmatpush3.bf16.msra.mxu0 %v7783_v10 }
 0x22d   :  { %6895 = vmatprep.mubr.msk.f32.mxu1 %vm7706_vm1, %v7707_v3  ;;  %6902 = vmatprep.mubr.msk.f32.mxu0 %vm7706_vm1, %v7707_v3 }
 0x22e   :  { %7325 = vmatprep.subr.bf16.mxu1 %v7705_v0  ;;  %7328 = vmatprep.subr.bf16.mxu0 %v7705_v0 }
 0x22f   :  { %6896 = vmatmul.mubr.msk.f32.vlgmr.msra.gmra.mrb[14].mxu1 %vm49_vm2, %v7985_v25  ;;  %6903 = vmatmul.mubr.msk.f32.vlgmr.msra.gmra.mrb[16].mxu0 %vm49_vm2, %v7985_v25 }
 0x230   :  { %7327 = vmatpush3.bf16.msra.mxu1 %v7806_v15  ;;  %7330 = vmatpush3.bf16.msra.mxu0 %v7811_v17 }
 0x231   :  { %6909 = vmatprep.mubr.msk.f32.mxu1 %vm7706_vm1, %v7707_v3  ;;  %6916 = vmatprep.mubr.msk.f32.mxu0 %vm7706_vm1, %v7707_v3 }
 0x232   :  { %7331 = vmatprep.subr.bf16.mxu1 %v7705_v0  ;;  %7337 = vmatprep.subr.bf16.mxu0 %v7705_v0 }
 0x2f6   :  { %v1317_v54 = vpop.f32.mrb[12].mxu0 }
 0x2f7   :  { %v6862_v61 = vpop.f32.mrb[13].mxu0  ;;  %v1318_v11 = vadd.f32 %v7968_v48, %v1317_v54 }
 0x2fa   :  { %v1399_v26 = vpop.f32.mrb[10].mxu0  ;;  %v1478_v27 = vpop.f32.mrb[10].mxu1 }
 0x2fb   :  { %v7483_v28 = vadd.f32 %v7940_v6, %v1399_v26  ;;  %v6869_v29 = vpop.f32.mrb[11].mxu0  ;;  %v6876_v30 = vpop.f32.mrb[11].mxu1  ;;  %v7485_v32 = vadd.f32 %v7948_v13, %v1478_v27 }
 0x2fd   :  { %v6275_v31 = vmul.f32 -1.442695, %v7483_v28  ;;  %v6276_v41 = vmul.f32 -1.442695, %v7485_v32 }
 0x2fe   :  { %v1557_v33 = vpop.f32.mrb[12].mxu1  ;;  %v1665_v35 = vpop.f32.mrb[14].mxu0 }
 0x2ff   :  { %7575 = vpow2.f32 %v6275_v31  ;;  %v1666_v36 = vadd.f32 %v7820_v18, %v1665_v35  ;;  %v6883_v38 = vpop.f32.mrb[13].mxu1  ;;  %v6890_v39 = vpop.f32.mrb[15].mxu0  ;;  %v1558_v8 = vadd.f32 %v7963_v46, %v1557_v33 }
 0x301   :  { %v1827_v40 = vadd.f32 %v6278_v34, %v1666_v36 }
 0x302   :  { %v1744_v43 = vpop.f32.mrb[14].mxu1  ;;  %v1823_v44 = vpop.f32.mrb[16].mxu0 }
 0x303   :  { %v6293_v45 = vmul.f32 -1.442695, %v1827_v40  ;;  %v1745_v47 = vadd.f32 %v7825_v19, %v1744_v43  ;;  %v6897_v49 = vpop.f32.mrb[15].mxu1  ;;  %v6904_v50 = vpop.f32.mrb[17].mxu0  ;;  %v1824_v16 = vadd.f32 %v7838_v37, %v1823_v44  ;;  %v6322_v43 = vld [vmem:[%s8614_s0 + $0x6] sm:$0x3] }
 0x305   :  { %7577 = vpow2.f32 %v6293_v45  ;;  %v1834_v51 = vadd.f32 %v6279_v42, %v1745_v47 }
 0x306   :  { %7579 = vpow2.f32 %v6276_v41 }
 0x307   :  { %v6294_v52 = vmul.f32 -1.442695, %v1834_v51 }
 0x309   :  { %v7576_v55 = vpop.eup %7575  ;;  %7581 = vpow2.f32 %v6294_v52  ;;  %v6323_v52 = vld [vmem:[%s8614_s0 + $0x16] sm:$0x3] }
 0x30a   :  { %v1565_v56 = vadd.f32 1.0, %v7576_v55 }
 0x30c   :  { %7583 = vrcp.f32 %v1565_v56 }
 0x30f   :  { %v7578_v59 = vpop.eup %7577 }
 0x310   :  { %v7580_v60 = vpop.eup %7579  ;;  %v1831_v63 = vadd.f32 1.0, %v7578_v59 }
 0x311   :  { %v1572_v1 = vadd.f32 1.0, %v7580_v60 }
 0x312   :  { %7585 = vrcp.f32 %v1831_v63 }
 0x313   :  { %v7582_v4 = vpop.eup %7581  ;;  %7587 = vrcp.f32 %v1572_v1 }
 0x314   :  { %v1838_v14 = vadd.f32 1.0, %v7582_v4 }
 0x316   :  { %v7584_v9 = vpop.eup %7583 }
 0x317   :  { %v1575_v12 = vmul.f32 %v7584_v9, %v1558_v8 }
 0x319   :  { %v1576_v2 = vadd.f32 %v1575_v12, %v1318_v11 }
 0x31b   :  { %7589 = vtanh.f32 %v1576_v2 }
 0x31c   :  { %v7586_v21 = vpop.eup %7585  ;;  %7591 = vrcp.f32 %v1838_v14 }
 0x31d   :  { %v1841_v23 = vmul.f32 %v7586_v21, %v1824_v16  ;;  %v7588_v61 = vpop.eup %7587 }
 0x31e   :  { %v1578_v26 = vsub.f32 1.0, %v7588_v61  ;;  %v1580_v28 = vmul.f32 %v7588_v61, %v7977_v20 }
 0x31f   :  { %v1842_v24 = vadd.f32 %v6280_v22, %v1841_v23 }
 0x321   :  { %7593 = vtanh.f32 %v1842_v24 }
 0x325   :  { %v7590_v27 = vpop.eup %7589 }
 0x326   :  { %v1579_v54 = vmul.f32 %v7590_v27, %v1578_v26  ;;  %v7592_v29 = vpop.eup %7591 }
 0x327   :  { %v1844_v31 = vsub.f32 1.0, %v7592_v29  ;;  %v1846_v33 = vmul.f32 %v7592_v29, %v7985_v25 }
 0x328   :  { %v8058_v30 = vadd.f32 %v1580_v28, %v1579_v54  ;;  %v6324_v54 = vld [vmem:[%s8614_s0 + $0x26] sm:$0x3] }
 0x32a   :  { %6277 = vst.msk [vmem:[%s8618_s7 + $0x2] sm:$0x3] %vm30_vm0, %v8058_v30 }
 0x32b   :  { %v7594_v32 = vpop.eup %7593 }
 0x32c   :  { %v1845_v34 = vmul.f32 %v7594_v32, %v1844_v31 }
 0x32e   :  { %v8066_v35 = vadd.f32 %v1846_v33, %v1845_v34 }
 0x330   :  { %6910 = vmatmul.mubr.msk.f32.vlgmr.msra.gmra.mrb[16].mxu1 %vm49_vm2, %v8066_v35  ;;  %6917 = vmatmul.mubr.msk.f32.vlgmr.msra.gmra.mrb[18].mxu0 %vm49_vm2, %v8066_v35 }
 0x331   :  { %7333 = vmatpush3.bf16.msra.mxu1 %v7856_v53  ;;  %6923 = vmatprep.mubr.msk.f32.mxu1 %vm7706_vm1, %v7707_v3 }
 0x332   :  { %7334 = vmatprep.subr.bf16.mxu1 %v7705_v0  ;;  %7339 = vmatpush3.bf16.msra.mxu0 %v7866_v57 }
 0x333   :  { %6937 = vmatprep.mubr.msk.f32.mxu0 %vm7706_vm1, %v7707_v3  ;;  %7340 = vmatprep.subr.bf16.mxu0 %v7705_v0 }
 0x334   :  { %6924 = vmatmul.mubr.msk.f32.vlgmr.msra.gmra.mrb[18].mxu1 %vm49_vm2, %v8066_v35 }
 0x335   :  { %7336 = vmatpush3.bf16.msra.mxu1 %v7875_v58  ;;  %6930 = vmatprep.mubr.msk.f32.mxu1 %vm7706_vm1, %v7707_v3 }
 0x336   :  { %7343 = vmatprep.subr.bf16.mxu1 %v7705_v0 }
 0x338   :  { %6931 = vmatmul.mubr.msk.f32.vlgmr.msra.gmra.mrb[16].mxu1 %vm49_vm2, %v8058_v30  ;;  %6938 = vmatmul.mubr.msk.f32.vlgmr.msra.gmra.mrb[18].mxu0 %vm49_vm2, %v8058_v30 }
 0x339   :  { %7345 = vmatpush3.bf16.msra.mxu1 %v7764_v5  ;;  %7342 = vmatpush3.bf16.msra.mxu0 %v7895_v62 }
 0x33a   :  { %6944 = vmatprep.mubr.msk.f32.mxu0 %vm7706_vm1, %v7707_v3  ;;  %6951 = vmatprep.mubr.msk.f32.mxu1 %vm7706_vm1, %v7707_v3 }
 0x33b   :  { %7346 = vmatprep.subr.bf16.mxu0 %v7705_v0  ;;  %7349 = vmatprep.subr.bf16.mxu1 %v7705_v0 }
 0x33c   :  { %6945 = vmatmul.mubr.msk.f32.vlgmr.msra.gmra.mrb[20].mxu0 %vm49_vm2, %v8058_v30  ;;  %6952 = vmatmul.mubr.msk.f32.vlgmr.msra.gmra.mrb[20].mxu1 %vm49_vm2, %v8066_v35 }
 0x33d   :  { %7348 = vmatpush3.bf16.msra.mxu0 %v7772_v7  ;;  %7351 = vmatpush3.bf16.msra.mxu1 %v7783_v10 }
 0x33e   :  { %6958 = vmatprep.mubr.msk.f32.mxu0 %vm7706_vm1, %v7707_v3  ;;  %6965 = vmatprep.mubr.msk.f32.mxu1 %vm7706_vm1, %v7707_v3 }
 0x33f   :  { %7352 = vmatprep.subr.bf16.mxu0 %v7705_v0  ;;  %7355 = vmatprep.subr.bf16.mxu1 %v7705_v0 }
 0x340   :  { %6959 = vmatmul.mubr.msk.f32.vlgmr.msra.gmra.mrb[22].mxu0 %vm49_vm2, %v8066_v35  ;;  %6966 = vmatmul.mubr.msk.f32.vlgmr.msra.gmra.mrb[22].mxu1 %vm49_vm2, %v8066_v35 }
 0x341   :  { %7354 = vmatpush3.bf16.msra.mxu0 %v7806_v15  ;;  %7357 = vmatpush3.bf16.msra.mxu1 %v7811_v17 }
 0x342   :  { %6972 = vmatprep.mubr.msk.f32.mxu0 %vm7706_vm1, %v7707_v3  ;;  %6979 = vmatprep.mubr.msk.f32.mxu1 %vm7706_vm1, %v7707_v3 }
 0x343   :  { %7358 = vmatprep.subr.bf16.mxu0 %v7705_v0  ;;  %7364 = vmatprep.subr.bf16.mxu1 %v7705_v0 }
 0x407   :  { %v2084_v20 = vpop.f32.mrb[18].mxu1 }
 0x408   :  { %v6925_v25 = vpop.f32.mrb[19].mxu1 }
 0x40b   :  { %v2166_v36 = vpop.f32.mrb[16].mxu1  ;;  %v2245_v38 = vpop.f32.mrb[18].mxu0 }
 0x40c   :  { %v7487_v39 = vadd.f32 %v7940_v6, %v2166_v36  ;;  %v6932_v40 = vpop.f32.mrb[17].mxu1  ;;  %v6939_v15 = vpop.f32.mrb[19].mxu0  ;;  %v7489_v17 = vadd.f32 %v7948_v13, %v2245_v38 }
 0x40e   :  { %v6319_v41 = vmul.f32 -1.442695, %v7487_v39  ;;  %v6320_v51 = vmul.f32 -1.442695, %v7489_v17 }
 0x40f   :  { %v2324_v42 = vpop.f32.mrb[20].mxu0  ;;  %v2432_v44 = vpop.f32.mrb[20].mxu1 }
 0x410   :  { %7595 = vpow2.f32 %v6319_v41  ;;  %v2433_v45 = vadd.f32 %v7820_v18, %v2432_v44  ;;  %v6946_v47 = vpop.f32.mrb[21].mxu0  ;;  %v6953_v49 = vpop.f32.mrb[21].mxu1  ;;  %v2325_v21 = vadd.f32 %v7963_v46, %v2324_v42  ;;  %v8223_v44 = vld [vmem:[%s8613_s2] ss:$0 sm:$0xff] }
 0x412   :  { %v2594_v50 = vadd.f32 %v6322_v43, %v2433_v45 }
 0x413   :  { %v2511_v55 = vpop.f32.mrb[22].mxu0  ;;  %v2590_v56 = vpop.f32.mrb[22].mxu1 }
 0x414   :  { %v6337_v59 = vmul.f32 -1.442695, %v2594_v50  ;;  %v2512_v60 = vadd.f32 %v7825_v19, %v2511_v55  ;;  %v6960_v63 = vpop.f32.mrb[23].mxu0  ;;  %v6967_v1 = vpop.f32.mrb[23].mxu1  ;;  %v2085_v19 = vadd.f32 %v7968_v48, %v2084_v20  ;;  %v2591_v26 = vadd.f32 %v7838_v37, %v2590_v56  ;;  %v6366_v50 = vld [vmem:[%s8614_s0 + $0x8] sm:$0x3] }
 0x415   :  { %v8233_v56 = vld [vmem:[%s8613_s2 + $0x1] ss:$0 sm:$0xff] }
 0x416   :  { %7597 = vpow2.f32 %v6337_v59  ;;  %v2601_v4 = vadd.f32 %v6323_v52, %v2512_v60 }
 0x417   :  { %7599 = vpow2.f32 %v6320_v51 }
 0x418   :  { %v6338_v8 = vmul.f32 -1.442695, %v2601_v4 }
 0x41a   :  { %v7596_v18 = vpop.eup %7595  ;;  %7601 = vpow2.f32 %v6338_v8 }
 0x41b   :  { %v2332_v9 = vadd.f32 1.0, %v7596_v18 }
 0x41d   :  { %7603 = vrcp.f32 %v2332_v9 }
 0x420   :  { %v7598_v11 = vpop.eup %7597 }
 0x421   :  { %v7600_v12 = vpop.eup %7599  ;;  %v2598_v2 = vadd.f32 1.0, %v7598_v11 }
 0x422   :  { %v2339_v14 = vadd.f32 1.0, %v7600_v12 }
 0x423   :  { %7605 = vrcp.f32 %v2598_v2 }
 0x424   :  { %v7602_v16 = vpop.eup %7601  ;;  %7607 = vrcp.f32 %v2339_v14 }
 0x425   :  { %v2605_v61 = vadd.f32 1.0, %v7602_v16 }
 0x427   :  { %v7604_v22 = vpop.eup %7603 }
 0x428   :  { %v2342_v23 = vmul.f32 %v7604_v22, %v2325_v21 }
 0x42a   :  { %v2343_v24 = vadd.f32 %v2342_v23, %v2085_v19 }
 0x42c   :  { %7609 = vtanh.f32 %v2343_v24 }
 0x42d   :  { %v7606_v27 = vpop.eup %7605  ;;  %7611 = vrcp.f32 %v2605_v61 }
 0x42e   :  { %v2608_v28 = vmul.f32 %v7606_v27, %v2591_v26  ;;  %v7608_v31 = vpop.eup %7607 }
 0x42f   :  { %v2345_v32 = vsub.f32 1.0, %v7608_v31  ;;  %v2347_v20 = vmul.f32 %v7608_v31, %v8058_v30 }
 0x430   :  { %v2609_v29 = vadd.f32 %v6324_v54, %v2608_v28  ;;  %v8244_v54 = vld [vmem:[%s8613_s2 + $0x2] ss:$0 sm:$0xff] }
 0x432   :  { %7613 = vtanh.f32 %v2609_v29 }
 0x436   :  { %v7610_v33 = vpop.eup %7609 }
 0x437   :  { %v2346_v34 = vmul.f32 %v7610_v33, %v2345_v32  ;;  %v7612_v25 = vpop.eup %7611 }
 0x438   :  { %v2611_v38 = vsub.f32 1.0, %v7612_v25  ;;  %v2613_v39 = vmul.f32 %v7612_v25, %v8066_v35 }
 0x439   :  { %v8139_v36 = vadd.f32 %v2347_v20, %v2346_v34 }
 0x43b   :  { %6321 = vst.msk [vmem:[%s8618_s7 + $0x4] sm:$0x3] %vm30_vm0, %v8139_v36 }
 0x43c   :  { %v7614_v37 = vpop.eup %7613 }
 0x43d   :  { %v2612_v40 = vmul.f32 %v7614_v37, %v2611_v38 }
 0x43f   :  { %v8147_v15 = vadd.f32 %v2613_v39, %v2612_v40 }
 0x441   :  { %6973 = vmatmul.mubr.msk.f32.vlgmr.msra.gmra.mrb[24].mxu0 %vm49_vm2, %v8147_v15  ;;  %6980 = vmatmul.mubr.msk.f32.vlgmr.msra.gmra.mrb[24].mxu1 %vm49_vm2, %v8147_v15 }
 0x442   :  { %7360 = vmatpush3.bf16.msra.mxu0 %v7856_v53  ;;  %6986 = vmatprep.mubr.msk.f32.mxu0 %vm7706_vm1, %v7707_v3 }
 0x443   :  { %7361 = vmatprep.subr.bf16.mxu0 %v7705_v0  ;;  %7366 = vmatpush3.bf16.msra.mxu1 %v7866_v57  ;;  %v6386_v57 = vld [vmem:[%s8612_s3 + $0x18] sm:$0xff] }
 0x444   :  { %7000 = vmatprep.mubr.msk.f32.mxu1 %vm7706_vm1, %v7707_v3  ;;  %7367 = vmatprep.subr.bf16.mxu1 %v7705_v0 }
 0x445   :  { %6987 = vmatmul.mubr.msk.f32.vlgmr.msra.gmra.mrb[26].mxu0 %vm49_vm2, %v8147_v15 }
 0x446   :  { %7363 = vmatpush3.bf16.msra.mxu0 %v7875_v58  ;;  %6993 = vmatprep.mubr.msk.f32.mxu0 %vm7706_vm1, %v7707_v3 }
 0x447   :  { %7370 = vmatprep.subr.bf16.mxu0 %v7705_v0 }
 0x449   :  { %6994 = vmatmul.mubr.msk.f32.vlgmr.msra.gmra.mrb[24].mxu0 %vm49_vm2, %v8139_v36  ;;  %7001 = vmatmul.mubr.msk.f32.vlgmr.msra.gmra.mrb[24].mxu1 %vm49_vm2, %v8139_v36 }
 0x44a   :  { %7372 = vmatpush3.bf16.msra.mxu0 %v7764_v5  ;;  %7369 = vmatpush3.bf16.msra.mxu1 %v7895_v62  ;;  %v3382_v5 = vld [vmem:[%s8612_s3] sm:$0xff] }
 0x44b   :  { %7007 = vmatprep.mubr.msk.f32.mxu1 %vm7706_vm1, %v7707_v3  ;;  %7014 = vmatprep.mubr.msk.f32.mxu0 %vm7706_vm1, %v7707_v3 }
 0x44c   :  { %7373 = vmatprep.subr.bf16.mxu1 %v7705_v0  ;;  %7376 = vmatprep.subr.bf16.mxu0 %v7705_v0 }
 0x44d   :  { %7008 = vmatmul.mubr.msk.f32.vlgmr.msra.gmra.mrb[26].mxu1 %vm49_vm2, %v8139_v36  ;;  %7015 = vmatmul.mubr.msk.f32.vlgmr.msra.gmra.mrb[28].mxu0 %vm49_vm2, %v8147_v15 }
 0x44e   :  { %7375 = vmatpush3.bf16.msra.mxu1 %v7772_v7  ;;  %7378 = vmatpush3.bf16.msra.mxu0 %v7783_v10  ;;  %v3383_v7 = vld [vmem:[%s8612_s3 + $0x8] sm:$0xff]  ;;  %v6385_v10 = vld [vmem:[%s8612_s3 + $0x10] sm:$0xff] }
 0x44f   :  { %7021 = vmatprep.mubr.msk.f32.mxu1 %vm7706_vm1, %v7707_v3  ;;  %7028 = vmatprep.mubr.msk.f32.mxu0 %vm7706_vm1, %v7707_v3  ;;  %v8208_v53 = vpack.c.bf16 %v3383_v7, %v3382_v5  ;;  %v8213_v58 = vpack.c.bf16 %v6386_v57, %v6385_v10  ;;  %v6390_v7 = vld [vmem:[%s8612_s3 + $0x20] sm:$0xff]  ;;  %v6391_v10 = vld [vmem:[%s8612_s3 + $0x28] sm:$0xff] }
 0x450   :  { %7379 = vmatprep.subr.bf16.mxu1 %v7705_v0  ;;  %7382 = vmatprep.subr.bf16.mxu0 %v7705_v0 }
 0x451   :  { %7022 = vmatmul.mubr.msk.f32.vlgmr.msra.gmra.mrb[28].mxu1 %vm49_vm2, %v8147_v15  ;;  %7029 = vmatmul.mubr.msk.f32.vlgmr.msra.gmra.mrb[30].mxu0 %vm49_vm2, %v8147_v15 }
 0x452   :  { %7035 = vmatprep.mubr.msk.f32.mxu1 %vm7706_vm1, %v7707_v3  ;;  %7042 = vmatprep.mubr.msk.f32.mxu0 %vm7706_vm1, %v7707_v3 }
 0x453   :  { %7381 = vmatpush3.bf16.msra.mxu1 %v8208_v53  ;;  %7384 = vmatpush3.bf16.msra.mxu0 %v8213_v58 }
 0x454   :  { %7385 = vmatprep.subr.bf16.mxu1 %v7705_v0  ;;  %7391 = vmatprep.subr.bf16.mxu0 %v7705_v0 }
 0x518   :  { %v2851_v62 = vpop.f32.mrb[26].mxu0 }
 0x519   :  { %v6988_v30 = vpop.f32.mrb[27].mxu0  ;;  %v2852_v26 = vadd.f32 %v7968_v48, %v2851_v62  ;;  %v6398_v62 = vld [vmem:[%s8615_s5 + $0x18] sm:$0xff] }
 0x51c   :  { %v2933_v35 = vpop.f32.mrb[24].mxu0  ;;  %v3012_v41 = vpop.f32.mrb[24].mxu1 }
 0x51d   :  { %v7491_v17 = vadd.f32 %v7940_v6, %v2933_v35  ;;  %v6995_v42 = vpop.f32.mrb[25].mxu0  ;;  %v7002_v43 = vpop.f32.mrb[25].mxu1  ;;  %v7493_v47 = vadd.f32 %v7948_v13, %v3012_v41  ;;  %v6367_v13 = vld [vmem:[%s8614_s0 + $0x18] sm:$0x3]  ;;  %v8271_v41 = vpack.c.bf16 %v6391_v10, %v6390_v7 }
 0x51e   :  { %v3622_v42 = vld [vmem:[%s8615_s5] sm:$0xff]  ;;  %v3623_v43 = vld [vmem:[%s8615_s5 + $0x8] sm:$0xff] }
 0x51f   :  { %v6363_v45 = vmul.f32 -1.442695, %v7491_v17  ;;  %v6364_v60 = vmul.f32 -1.442695, %v7493_v47  ;;  %v3891_v47 = vld [vmem:[%s8611_s1] sm:$0xff] }
 0x520   :  { %v3091_v49 = vpop.f32.mrb[26].mxu1  ;;  %v3199_v51 = vpop.f32.mrb[28].mxu0 }
 0x521   :  { %7615 = vpow2.f32 %v6363_v45  ;;  %v3200_v52 = vadd.f32 %v8223_v44, %v3199_v51  ;;  %v7009_v6 = vpop.f32.mrb[27].mxu1  ;;  %v7016_v55 = vpop.f32.mrb[29].mxu0  ;;  %v3092_v24 = vadd.f32 %v7963_v46, %v3091_v49  ;;  %v6368_v46 = vld [vmem:[%s8614_s0 + $0x28] sm:$0x3] }
 0x522   :  { %v3892_v49 = vld [vmem:[%s8611_s1 + $0x8] sm:$0xff]  ;;  %v6415_v55 = vld [vmem:[%s8611_s1 + $0x10] sm:$0xff] }
 0x523   :  { %v3361_v59 = vadd.f32 %v6366_v50, %v3200_v52  ;;  %v6402_v50 = vld [vmem:[%s8615_s5 + $0x20] sm:$0xff]  ;;  %v6403_v51 = vld [vmem:[%s8615_s5 + $0x28] sm:$0xff]  ;;  %v8314_v52 = vpack.c.bf16 %v3892_v49, %v3891_v47 }
 0x524   :  { %v3278_v63 = vpop.f32.mrb[28].mxu1  ;;  %v3357_v1 = vpop.f32.mrb[30].mxu0  ;;  %v8316_v6 = vpack.c.bf16 %v6403_v51, %v6402_v50 }
 0x525   :  { %v6381_v4 = vmul.f32 -1.442695, %v3361_v59  ;;  %v3279_v8 = vadd.f32 %v8233_v56, %v3278_v63  ;;  %v7023_v18 = vpop.f32.mrb[29].mxu1  ;;  %v7030_v9 = vpop.f32.mrb[31].mxu0  ;;  %v3358_v31 = vadd.f32 %v8244_v54, %v3357_v1  ;;  %v6416_v59 = vld [vmem:[%s8611_s1 + $0x18] sm:$0xff] }
 0x526   :  { %v8337_v63 = vpack.c.bf16 %v6416_v59, %v6415_v55 }
 0x527   :  { %7617 = vpow2.f32 %v6381_v4  ;;  %v3368_v11 = vadd.f32 %v6367_v13, %v3279_v8  ;;  %v6421_v13 = vld [vmem:[%s8611_s1 + $0x28] sm:$0xff]  ;;  %v6383_v4 = vld [vmem:[%s8617_s4] ss:$0 sm:$0xff] }
 0x528   :  { %7619 = vpow2.f32 %v6364_v60  ;;  %v6420_v60 = vld [vmem:[%s8611_s1 + $0x20] sm:$0xff] }
 0x529   :  { %v6382_v12 = vmul.f32 -1.442695, %v3368_v11  ;;  %v8339_v1 = vpack.c.bf16 %v6421_v13, %v6420_v60  ;;  %v6395_v8 = vld [vmem:[%s8616_s6] ss:$0 sm:$0xff] }
 0x52a   :  { %v8377_v11 = vadd.f32 %v6395_v8, %v6383_v4  ;;  %v6412_v8 = vld [vmem:[%s8614_s0 + $0x2a] sm:$0x3] }
 0x52b   :  { %v7616_v2 = vpop.eup %7615  ;;  %7621 = vpow2.f32 %v6382_v12  ;;  %v6388_v12 = vld [vmem:[%s8617_s4 + $0x1] ss:$0 sm:$0xff] }
 0x52c   :  { %v3099_v14 = vadd.f32 1.0, %v7616_v2  ;;  %v6400_v2 = vld [vmem:[%s8616_s6 + $0x1] ss:$0 sm:$0xff] }
 0x52e   :  { %7623 = vrcp.f32 %v3099_v14 }
 0x531   :  { %v7618_v16 = vpop.eup %7617 }
 0x532   :  { %v7620_v21 = vpop.eup %7619  ;;  %v3365_v22 = vadd.f32 1.0, %v7618_v16 }
 0x533   :  { %v3106_v19 = vadd.f32 1.0, %v7620_v21  ;;  %v8385_v21 = vadd.f32 %v6400_v2, %v6388_v12 }
 0x534   :  { %7625 = vrcp.f32 %v3365_v22 }
 0x535   :  { %v7622_v23 = vpop.eup %7621  ;;  %7627 = vrcp.f32 %v3106_v19 }
 0x536   :  { %v3372_v29 = vadd.f32 1.0, %v7622_v23 }
 0x538   :  { %v7624_v61 = vpop.eup %7623 }
 0x539   :  { %v3109_v27 = vmul.f32 %v7624_v61, %v3092_v24 }
 0x53b   :  { %v3110_v28 = vadd.f32 %v3109_v27, %v2852_v26  ;;  %v6410_v27 = vld [vmem:[%s8614_s0 + $0xa] sm:$0x3] }
 0x53d   :  { %7629 = vtanh.f32 %v3110_v28 }
 0x53e   :  { %v7626_v32 = vpop.eup %7625  ;;  %7631 = vrcp.f32 %v3372_v29 }
 0x53f   :  { %v3375_v33 = vmul.f32 %v7626_v32, %v3358_v31  ;;  %v7628_v34 = vpop.eup %7627 }
 0x540   :  { %v3112_v20 = vsub.f32 1.0, %v7628_v34  ;;  %v3114_v37 = vmul.f32 %v7628_v34, %v8139_v36  ;;  %v6397_v36 = vld [vmem:[%s8615_s5 + $0x10] sm:$0xff] }
 0x541   :  { %v3376_v48 = vadd.f32 %v6368_v46, %v3375_v33  ;;  %v8281_v45 = vpack.c.bf16 %v6398_v62, %v6397_v36 }
 0x543   :  { %7633 = vtanh.f32 %v3376_v48  ;;  %v6411_v48 = vld [vmem:[%s8614_s0 + $0x1a] sm:$0x3] }
 0x547   :  { %v7630_v25 = vpop.eup %7629 }
 0x548   :  { %v3113_v38 = vmul.f32 %v7630_v25, %v3112_v20  ;;  %v7632_v39 = vpop.eup %7631 }
 0x549   :  { %v3378_v5 = vsub.f32 1.0, %v7632_v39  ;;  %v3380_v30 = vmul.f32 %v7632_v39, %v8147_v15  ;;  %v8290_v15 = vpack.c.bf16 %v3623_v43, %v3622_v42  ;;  %v8405_v43 = vld [vmem:[%s8617_s4 + $0x2] ss:$0 sm:$0xff] }
 0x54a   :  { %v8251_v40 = vadd.f32 %v3114_v37, %v3113_v38 }
 0x54c   :  { %6365 = vst.msk [vmem:[%s8618_s7 + $0x6] sm:$0x3] %vm30_vm0, %v8251_v40 }
 0x54d   :  { %v7634_v57 = vpop.eup %7633 }
 0x54e   :  { %v3379_v35 = vmul.f32 %v7634_v57, %v3378_v5 }
 0x550   :  { %v8273_v17 = vadd.f32 %v3380_v30, %v3379_v35  ;;  %v8400_v35 = vld [vmem:[%s8616_s6 + $0x2] ss:$0 sm:$0xff] }
 0x552   :  { %7036 = vmatmul.mubr.msk.f32.vlgmr.msra.gmra.mrb[30].mxu1 %vm49_vm2, %v8273_v17  ;;  %7043 = vmatmul.mubr.msk.f32.vlgmr.msra.gmra.mrb[32].mxu0 %vm49_vm2, %v8273_v17 }
 0x553   :  { %7387 = vmatpush3.bf16.msra.mxu1 %v8271_v41  ;;  %7049 = vmatprep.mubr.msk.f32.mxu1 %vm7706_vm1, %v7707_v3 }
 0x554   :  { %7388 = vmatprep.subr.bf16.mxu1 %v7705_v0  ;;  %7393 = vmatpush3.bf16.msra.mxu0 %v8281_v45 }
 0x555   :  { %7063 = vmatprep.mubr.msk.f32.mxu0 %vm7706_vm1, %v7707_v3  ;;  %7394 = vmatprep.subr.bf16.mxu0 %v7705_v0 }
 0x556   :  { %7050 = vmatmul.mubr.msk.f32.vlgmr.msra.gmra.mrb[32].mxu1 %vm49_vm2, %v8273_v17 }
 0x557   :  { %7390 = vmatpush3.bf16.msra.mxu1 %v8290_v15  ;;  %7056 = vmatprep.mubr.msk.f32.mxu1 %vm7706_vm1, %v7707_v3 }
 0x558   :  { %7397 = vmatprep.subr.bf16.mxu1 %v7705_v0 }
 0x55a   :  { %7057 = vmatmul.mubr.msk.f32.vlgmr.msra.gmra.mrb[30].mxu1 %vm49_vm2, %v8251_v40  ;;  %7064 = vmatmul.mubr.msk.f32.vlgmr.msra.gmra.mrb[32].mxu0 %vm49_vm2, %v8251_v40 }
 0x55b   :  { %7399 = vmatpush3.bf16.msra.mxu1 %v8314_v52  ;;  %7396 = vmatpush3.bf16.msra.mxu0 %v8316_v6 }
 0x55c   :  { %7070 = vmatprep.mubr.msk.f32.mxu0 %vm7706_vm1, %v7707_v3  ;;  %7077 = vmatprep.mubr.msk.f32.mxu1 %vm7706_vm1, %v7707_v3 }
 0x55d   :  { %7400 = vmatprep.subr.bf16.mxu0 %v7705_v0  ;;  %7403 = vmatprep.subr.bf16.mxu1 %v7705_v0 }
 0x55e   :  { %7071 = vmatmul.mubr.msk.f32.vlgmr.msra.gmra.mrb[34].mxu0 %vm49_vm2, %v8251_v40  ;;  %7078 = vmatmul.mubr.msk.f32.vlgmr.msra.gmra.mrb[34].mxu1 %vm49_vm2, %v8273_v17 }
 0x55f   :  { %7402 = vmatpush3.bf16.msra.mxu0 %v8337_v63  ;;  %7405 = vmatpush3.bf16.msra.mxu1 %v8339_v1 }
 0x560   :  { %7084 = vmatprep.mubr.msk.f32.mxu0 %vm7706_vm1, %v7707_v3  ;;  %7091 = vmatprep.mubr.msk.f32.mxu1 %vm7706_vm1, %v7707_v3 }
 0x561   :  { %7406 = vmatprep.subr.bf16.mxu0 %v7705_v0  ;;  %7409 = vmatprep.subr.bf16.mxu1 %v7705_v0 }
 0x562   :  { %7085 = vmatmul.mubr.msk.f32.vlgmr.msra.gmra.mrb[36].mxu0 %vm49_vm2, %v8273_v17  ;;  %7092 = vmatmul.mubr.msk.f32.vlgmr.msra.gmra.mrb[36].mxu1 %vm49_vm2, %v8273_v17 }
 0x563   :  { %7408 = vmatpush3.bf16.msra.mxu0 %v8208_v53  ;;  %7411 = vmatpush3.bf16.msra.mxu1 %v8213_v58 }
 0x564   :  { %7098 = vmatprep.mubr.msk.f32.mxu0 %vm7706_vm1, %v7707_v3  ;;  %7105 = vmatprep.mubr.msk.f32.mxu1 %vm7706_vm1, %v7707_v3 }
 0x565   :  { %7412 = vmatprep.subr.bf16.mxu0 %v7705_v0  ;;  %7418 = vmatprep.subr.bf16.mxu1 %v7705_v0 }
 0x629   :  { %v3618_v18 = vpop.f32.mrb[32].mxu1 }
 0x62a   :  { %v7051_v9 = vpop.f32.mrb[33].mxu1  ;;  %v3619_v51 = vadd.f32 %v8405_v43, %v3618_v18 }
 0x62d   :  { %v3700_v14 = vpop.f32.mrb[30].mxu1  ;;  %v3779_v16 = vpop.f32.mrb[32].mxu0 }
 0x62e   :  { %v7495_v22 = vadd.f32 %v8377_v11, %v3700_v14  ;;  %v7058_v19 = vpop.f32.mrb[31].mxu1  ;;  %v7065_v23 = vpop.f32.mrb[33].mxu0  ;;  %v7497_v61 = vadd.f32 %v8385_v21, %v3779_v16 }
 0x630   :  { %v6407_v24 = vmul.f32 -1.442695, %v7495_v22  ;;  %v6408_v33 = vmul.f32 -1.442695, %v7497_v61 }
 0x631   :  { %v3858_v26 = vpop.f32.mrb[34].mxu0  ;;  %v3966_v28 = vpop.f32.mrb[34].mxu1 }
 0x632   :  { %7635 = vpow2.f32 %v6407_v24  ;;  %v3967_v29 = vadd.f32 %v8223_v44, %v3966_v28  ;;  %v7072_v31 = vpop.f32.mrb[35].mxu0  ;;  %v7079_v32 = vpop.f32.mrb[35].mxu1  ;;  %v3859_v49 = vadd.f32 %v8400_v35, %v3858_v26 }
 0x634   :  { %v4128_v46 = vadd.f32 %v6410_v27, %v3967_v29 }
 0x635   :  { %v4045_v34 = vpop.f32.mrb[36].mxu0  ;;  %v4124_v20 = vpop.f32.mrb[36].mxu1 }
 0x636   :  { %v6425_v25 = vmul.f32 -1.442695, %v4128_v46  ;;  %v4046_v38 = vadd.f32 %v8233_v56, %v4045_v34  ;;  %v7086_v37 = vpop.f32.mrb[37].mxu0  ;;  %v7093_v39 = vpop.f32.mrb[37].mxu1  ;;  %v4125_v13 = vadd.f32 %v8244_v54, %v4124_v20 }
 0x638   :  { %7637 = vpow2.f32 %v6425_v25  ;;  %v4135_v5 = vadd.f32 %v6411_v48, %v4046_v38  ;;  %v6454_v25 = vld [vmem:[%s8614_s0 + $0xc] sm:$0x3] }
 0x639   :  { %7639 = vpow2.f32 %v6408_v33 }
 0x63a   :  { %v6426_v7 = vmul.f32 -1.442695, %v4135_v5 }
 0x63c   :  { %v7636_v10 = vpop.eup %7635  ;;  %7641 = vpow2.f32 %v6426_v7 }
 0x63d   :  { %v3866_v57 = vadd.f32 1.0, %v7636_v10 }
 0x63f   :  { %7643 = vrcp.f32 %v3866_v57  ;;  %v6455_v57 = vld [vmem:[%s8614_s0 + $0x1c] sm:$0x3] }
 0x642   :  { %v7638_v36 = vpop.eup %7637 }
 0x643   :  { %v7640_v62 = vpop.eup %7639  ;;  %v4132_v30 = vadd.f32 1.0, %v7638_v36 }
 0x644   :  { %v3873_v42 = vadd.f32 1.0, %v7640_v62 }
 0x645   :  { %7645 = vrcp.f32 %v4132_v30 }
 0x646   :  { %v7642_v47 = vpop.eup %7641  ;;  %7647 = vrcp.f32 %v3873_v42 }
 0x647   :  { %v4139_v60 = vadd.f32 1.0, %v7642_v47 }
 0x649   :  { %v7644_v50 = vpop.eup %7643 }
 0x64a   :  { %v3876_v55 = vmul.f32 %v7644_v50, %v3859_v49 }
 0x64c   :  { %v3877_v59 = vadd.f32 %v3876_v55, %v3619_v51 }
 0x64e   :  { %7649 = vtanh.f32 %v3877_v59 }
 0x64f   :  { %v7646_v4 = vpop.eup %7645  ;;  %7651 = vrcp.f32 %v4139_v60 }
 0x650   :  { %v4142_v9 = vmul.f32 %v7646_v4, %v4125_v13  ;;  %v7648_v2 = vpop.eup %7647 }
 0x651   :  { %v3879_v14 = vsub.f32 1.0, %v7648_v2  ;;  %v3881_v22 = vmul.f32 %v7648_v2, %v8251_v40 }
 0x652   :  { %v4143_v12 = vadd.f32 %v6412_v8, %v4142_v9 }
 0x654   :  { %7653 = vtanh.f32 %v4143_v12 }
 0x658   :  { %v7650_v16 = vpop.eup %7649 }
 0x659   :  { %v3880_v18 = vmul.f32 %v7650_v16, %v3879_v14  ;;  %v7652_v19 = vpop.eup %7651 }
 0x65a   :  { %v4145_v24 = vsub.f32 1.0, %v7652_v19  ;;  %v4147_v26 = vmul.f32 %v7652_v19, %v8273_v17 }
 0x65b   :  { %v8414_v23 = vadd.f32 %v3881_v22, %v3880_v18 }
 0x65d   :  { %6409 = vst.msk [vmem:[%s8618_s7 + $0x8] sm:$0x3] %vm30_vm0, %v8414_v23 }
 0x65e   :  { %v7654_v61 = vpop.eup %7653 }
 0x65f   :  { %v4146_v27 = vmul.f32 %v7654_v61, %v4145_v24  ;;  %v6456_v61 = vld [vmem:[%s8614_s0 + $0x2c] sm:$0x3] }
 0x661   :  { %v8422_v28 = vadd.f32 %v4147_v26, %v4146_v27 }
 0x663   :  { %7099 = vmatmul.mubr.msk.f32.vlgmr.msra.gmra.mrb[38].mxu0 %vm49_vm2, %v8422_v28  ;;  %7106 = vmatmul.mubr.msk.f32.vlgmr.msra.gmra.mrb[38].mxu1 %vm49_vm2, %v8422_v28 }
 0x664   :  { %7414 = vmatpush3.bf16.msra.mxu0 %v8271_v41  ;;  %7112 = vmatprep.mubr.msk.f32.mxu0 %vm7706_vm1, %v7707_v3 }
 0x665   :  { %7415 = vmatprep.subr.bf16.mxu0 %v7705_v0  ;;  %7420 = vmatpush3.bf16.msra.mxu1 %v8281_v45 }
 0x666   :  { %7126 = vmatprep.mubr.msk.f32.mxu1 %vm7706_vm1, %v7707_v3  ;;  %7421 = vmatprep.subr.bf16.mxu1 %v7705_v0 }
 0x667   :  { %7113 = vmatmul.mubr.msk.f32.vlgmr.msra.gmra.mrb[40].mxu0 %vm49_vm2, %v8422_v28 }
 0x668   :  { %7417 = vmatpush3.bf16.msra.mxu0 %v8290_v15  ;;  %7119 = vmatprep.mubr.msk.f32.mxu0 %vm7706_vm1, %v7707_v3 }
 0x669   :  { %7424 = vmatprep.subr.bf16.mxu0 %v7705_v0 }
 0x66b   :  { %7120 = vmatmul.mubr.msk.f32.vlgmr.msra.gmra.mrb[38].mxu0 %vm49_vm2, %v8414_v23  ;;  %7127 = vmatmul.mubr.msk.f32.vlgmr.msra.gmra.mrb[38].mxu1 %vm49_vm2, %v8414_v23 }
 0x66c   :  { %7426 = vmatpush3.bf16.msra.mxu0 %v8314_v52  ;;  %7423 = vmatpush3.bf16.msra.mxu1 %v8316_v6 }
 0x66d   :  { %7133 = vmatprep.mubr.msk.f32.mxu1 %vm7706_vm1, %v7707_v3  ;;  %7140 = vmatprep.mubr.msk.f32.mxu0 %vm7706_vm1, %v7707_v3 }
 0x66e   :  { %7427 = vmatprep.subr.bf16.mxu1 %v7705_v0  ;;  %7430 = vmatprep.subr.bf16.mxu0 %v7705_v0 }
 0x66f   :  { %7134 = vmatmul.mubr.msk.f32.vlgmr.msra.gmra.mrb[40].mxu1 %vm49_vm2, %v8414_v23  ;;  %7141 = vmatmul.mubr.msk.f32.vlgmr.msra.gmra.mrb[42].mxu0 %vm49_vm2, %v8422_v28 }
 0x670   :  { %7429 = vmatpush3.bf16.msra.mxu1 %v8337_v63  ;;  %7432 = vmatpush3.bf16.msra.mxu0 %v8339_v1 }
 0x671   :  { %7147 = vmatprep.mubr.msk.f32.mxu1 %vm7706_vm1, %v7707_v3  ;;  %7154 = vmatprep.mubr.msk.f32.mxu0 %vm7706_vm1, %v7707_v3 }
 0x672   :  { %7433 = vmatprep.subr.bf16.mxu1 %v7705_v0  ;;  %7436 = vmatprep.subr.bf16.mxu0 %v7705_v0 }
 0x673   :  { %7148 = vmatmul.mubr.msk.f32.vlgmr.msra.gmra.mrb[42].mxu1 %vm49_vm2, %v8422_v28  ;;  %7155 = vmatmul.mubr.msk.f32.vlgmr.msra.gmra.mrb[44].mxu0 %vm49_vm2, %v8422_v28 }
 0x674   :  { %7435 = vmatpush3.bf16.msra.mxu1 %v8208_v53  ;;  %7438 = vmatpush3.bf16.msra.mxu0 %v8213_v58 }
 0x675   :  { %7161 = vmatprep.mubr.msk.f32.mxu1 %vm7706_vm1, %v7707_v3  ;;  %7168 = vmatprep.mubr.msk.f32.mxu0 %vm7706_vm1, %v7707_v3 }
 0x676   :  { %7439 = vmatprep.subr.bf16.mxu1 %v7705_v0  ;;  %7445 = vmatprep.subr.bf16.mxu0 %v7705_v0 }
 0x73a   :  { %v4385_v40 = vpop.f32.mrb[40].mxu0 }
 0x73b   :  { %v7114_v17 = vpop.f32.mrb[41].mxu0  ;;  %v4386_v14 = vadd.f32 %v8405_v43, %v4385_v40 }
 0x73e   :  { %v4467_v29 = vpop.f32.mrb[38].mxu0  ;;  %v4546_v31 = vpop.f32.mrb[38].mxu1 }
 0x73f   :  { %v7499_v32 = vadd.f32 %v8377_v11, %v4467_v29  ;;  %v7121_v46 = vpop.f32.mrb[39].mxu0  ;;  %v7128_v33 = vpop.f32.mrb[39].mxu1  ;;  %v7501_v34 = vadd.f32 %v8385_v21, %v4546_v31 }
 0x741   :  { %v6451_v48 = vmul.f32 -1.442695, %v7499_v32  ;;  %v6452_v10 = vmul.f32 -1.442695, %v7501_v34 }
 0x742   :  { %v4625_v20 = vpop.f32.mrb[40].mxu1  ;;  %v4733_v38 = vpop.f32.mrb[42].mxu0 }
 0x743   :  { %7655 = vpow2.f32 %v6451_v48  ;;  %v4734_v37 = vadd.f32 %v8223_v44, %v4733_v38  ;;  %v7135_v39 = vpop.f32.mrb[41].mxu1  ;;  %v7142_v5 = vpop.f32.mrb[43].mxu0  ;;  %v4626_v12 = vadd.f32 %v8400_v35, %v4625_v20 }
 0x745   :  { %v4895_v7 = vadd.f32 %v6454_v25, %v4734_v37 }
 0x746   :  { %v4812_v36 = vpop.f32.mrb[42].mxu1  ;;  %v4891_v62 = vpop.f32.mrb[44].mxu0 }
 0x747   :  { %v6469_v30 = vmul.f32 -1.442695, %v4895_v7  ;;  %v4813_v42 = vadd.f32 %v8233_v56, %v4812_v36  ;;  %v7149_v47 = vpop.f32.mrb[43].mxu1  ;;  %v7156_v49 = vpop.f32.mrb[45].mxu0  ;;  %v4892_v19 = vadd.f32 %v8244_v54, %v4891_v62  ;;  %v6498_v7 = vld [vmem:[%s8614_s0 + $0xe] sm:$0x3] }
 0x748   :  { %v6499_v47 = vld [vmem:[%s8614_s0 + $0x1e] sm:$0x3] }
 0x749   :  { %7657 = vpow2.f32 %v6469_v30  ;;  %v4902_v50 = vadd.f32 %v6455_v57, %v4813_v42 }
 0x74a   :  { %7659 = vpow2.f32 %v6452_v10 }
 0x74b   :  { %v6470_v51 = vmul.f32 -1.442695, %v4902_v50 }
 0x74d   :  { %v7656_v55 = vpop.eup %7655  ;;  %7661 = vpow2.f32 %v6470_v51 }
 0x74e   :  { %v4633_v59 = vadd.f32 1.0, %v7656_v55 }
 0x750   :  { %7663 = vrcp.f32 %v4633_v59 }
 0x753   :  { %v7658_v60 = vpop.eup %7657 }
 0x754   :  { %v7660_v13 = vpop.eup %7659  ;;  %v4899_v4 = vadd.f32 1.0, %v7658_v60 }
 0x755   :  { %v4640_v8 = vadd.f32 1.0, %v7660_v13 }
 0x756   :  { %7665 = vrcp.f32 %v4899_v4 }
 0x757   :  { %v7662_v9 = vpop.eup %7661  ;;  %7667 = vrcp.f32 %v4640_v8 }
 0x758   :  { %v4906_v22 = vadd.f32 1.0, %v7662_v9 }
 0x75a   :  { %v7664_v2 = vpop.eup %7663 }
 0x75b   :  { %v4643_v16 = vmul.f32 %v7664_v2, %v4626_v12 }
 0x75d   :  { %v4644_v18 = vadd.f32 %v4643_v16, %v4386_v14 }
 0x75f   :  { %7669 = vtanh.f32 %v4644_v18 }
 0x760   :  { %v7666_v24 = vpop.eup %7665  ;;  %7671 = vrcp.f32 %v4906_v22 }
 0x761   :  { %v4909_v26 = vmul.f32 %v7666_v24, %v4892_v19  ;;  %v7668_v17 = vpop.eup %7667 }
 0x762   :  { %v4646_v29 = vsub.f32 1.0, %v7668_v17  ;;  %v4648_v32 = vmul.f32 %v7668_v17, %v8414_v23  ;;  %v6500_v17 = vld [vmem:[%s8614_s0 + $0x2e] sm:$0x3] }
 0x763   :  { %v4910_v27 = vadd.f32 %v6456_v61, %v4909_v26 }
 0x765   :  { %7673 = vtanh.f32 %v4910_v27 }
 0x769   :  { %v7670_v31 = vpop.eup %7669 }
 0x76a   :  { %v4647_v40 = vmul.f32 %v7670_v31, %v4646_v29  ;;  %v7672_v46 = vpop.eup %7671 }
 0x76b   :  { %v4912_v48 = vsub.f32 1.0, %v7672_v46  ;;  %v4914_v20 = vmul.f32 %v7672_v46, %v8422_v28 }
 0x76c   :  { %v8495_v33 = vadd.f32 %v4648_v32, %v4647_v40 }
 0x76e   :  { %6453 = vst.msk [vmem:[%s8618_s7 + $0xa] sm:$0x3] %vm30_vm0, %v8495_v33 }
 0x76f   :  { %v7674_v34 = vpop.eup %7673 }
 0x770   :  { %v4913_v25 = vmul.f32 %v7674_v34, %v4912_v48 }
 0x772   :  { %v8503_v38 = vadd.f32 %v4914_v20, %v4913_v25 }
 0x774   :  { %7162 = vmatmul.mubr.msk.f32.vlgmr.msra.gmra.mrb[44].mxu1 %vm49_vm2, %v8503_v38  ;;  %7169 = vmatmul.mubr.msk.f32.vlgmr.msra.gmra.mrb[46].mxu0 %vm49_vm2, %v8503_v38 }
 0x775   :  { %7441 = vmatpush3.bf16.msra.mxu1 %v8271_v41  ;;  %7175 = vmatprep.mubr.msk.f32.mxu1 %vm7706_vm1, %v7707_v3 }
 0x776   :  { %7442 = vmatprep.subr.bf16.mxu1 %v7705_v0  ;;  %7447 = vmatpush3.bf16.msra.mxu0 %v8281_v45 }
 0x777   :  { %7189 = vmatprep.mubr.msk.f32.mxu0 %vm7706_vm1, %v7707_v3  ;;  %7448 = vmatprep.subr.bf16.mxu0 %v7705_v0 }
 0x778   :  { %7176 = vmatmul.mubr.msk.f32.vlgmr.msra.gmra.mrb[46].mxu1 %vm49_vm2, %v8503_v38 }
 0x779   :  { %7444 = vmatpush3.bf16.msra.mxu1 %v8290_v15  ;;  %7182 = vmatprep.mubr.msk.f32.mxu1 %vm7706_vm1, %v7707_v3 }
 0x77a   :  { %7451 = vmatprep.subr.bf16.mxu1 %v7705_v0 }
 0x77c   :  { %7183 = vmatmul.mubr.msk.f32.vlgmr.msra.gmra.mrb[44].mxu1 %vm49_vm2, %v8495_v33  ;;  %7190 = vmatmul.mubr.msk.f32.vlgmr.msra.gmra.mrb[46].mxu0 %vm49_vm2, %v8495_v33 }
 0x77d   :  { %7453 = vmatpush3.bf16.msra.mxu1 %v8314_v52  ;;  %7450 = vmatpush3.bf16.msra.mxu0 %v8316_v6 }
 0x77e   :  { %7196 = vmatprep.mubr.msk.f32.mxu0 %vm7706_vm1, %v7707_v3  ;;  %7203 = vmatprep.mubr.msk.f32.mxu1 %vm7706_vm1, %v7707_v3 }
 0x77f   :  { %7454 = vmatprep.subr.bf16.mxu0 %v7705_v0  ;;  %7457 = vmatprep.subr.bf16.mxu1 %v7705_v0 }
 0x780   :  { %7197 = vmatmul.mubr.msk.f32.vlgmr.msra.gmra.mrb[48].mxu0 %vm49_vm2, %v8495_v33  ;;  %7204 = vmatmul.mubr.msk.f32.vlgmr.msra.gmra.mrb[48].mxu1 %vm49_vm2, %v8503_v38 }
 0x781   :  { %7456 = vmatpush3.bf16.msra.mxu0 %v8337_v63  ;;  %7459 = vmatpush3.bf16.msra.mxu1 %v8339_v1 }
 0x782   :  { %7210 = vmatprep.mubr.msk.f32.mxu0 %vm7706_vm1, %v7707_v3  ;;  %7217 = vmatprep.mubr.msk.f32.mxu1 %vm7706_vm1, %v7707_v3 }
 0x783   :  { %7460 = vmatprep.subr.bf16.mxu0 %v7705_v0  ;;  %7463 = vmatprep.subr.bf16.mxu1 %v7705_v0 }
 0x784   :  { %7211 = vmatmul.mubr.msk.f32.vlgmr.msra.gmra.mrb[50].mxu0 %vm49_vm2, %v8503_v38  ;;  %7218 = vmatmul.mubr.msk.f32.vlgmr.msra.gmra.mrb[50].mxu1 %vm49_vm2, %v8503_v38 }
 0x785   :  { %7462 = vmatpush3.bf16.msra.mxu0 %v8208_v53  ;;  %7465 = vmatpush3.bf16.msra.mxu1 %v8213_v58 }
 0x786   :  { %7224 = vmatprep.mubr.msk.f32.mxu0 %vm7706_vm1, %v7707_v3  ;;  %7231 = vmatprep.mubr.msk.f32.mxu1 %vm7706_vm1, %v7707_v3 }
 0x787   :  { %7466 = vmatprep.subr.bf16.mxu0 %v7705_v0  ;;  %7472 = vmatprep.subr.bf16.mxu1 %v7705_v0 }
 0x84b   :  { %v5152_v52 = vpop.f32.mrb[46].mxu1 }
 0x84c   :  { %v7177_v63 = vpop.f32.mrb[47].mxu1 }
 0x84f   :  { %v5234_v1 = vpop.f32.mrb[44].mxu1  ;;  %v5313_v23 = vpop.f32.mrb[46].mxu0 }
 0x850   :  { %v7503_v28 = vadd.f32 %v8377_v11, %v5234_v1  ;;  %v7184_v37 = vpop.f32.mrb[45].mxu1  ;;  %v7191_v53 = vpop.f32.mrb[47].mxu0  ;;  %v7505_v58 = vadd.f32 %v8385_v21, %v5313_v23 }
 0x852   :  { %v6495_v39 = vmul.f32 -1.442695, %v7503_v28  ;;  %v6496_v42 = vmul.f32 -1.442695, %v7505_v58 }
 0x853   :  { %v5392_v5 = vpop.f32.mrb[48].mxu0  ;;  %v5500_v10 = vpop.f32.mrb[48].mxu1 }
 0x854   :  { %7675 = vpow2.f32 %v6495_v39  ;;  %v5501_v57 = vadd.f32 %v8223_v44, %v5500_v10  ;;  %v7198_v36 = vpop.f32.mrb[49].mxu0  ;;  %v7205_v62 = vpop.f32.mrb[49].mxu1  ;;  %v5393_v18 = vadd.f32 %v8400_v35, %v5392_v5 }
 0x856   :  { %v5662_v30 = vadd.f32 %v6498_v7, %v5501_v57 }
 0x857   :  { %v5579_v49 = vpop.f32.mrb[50].mxu0  ;;  %v5658_v50 = vpop.f32.mrb[50].mxu1 }
 0x858   :  { %v6513_v51 = vmul.f32 -1.442695, %v5662_v30  ;;  %v5580_v55 = vadd.f32 %v8233_v56, %v5579_v49  ;;  %v7212_v59 = vpop.f32.mrb[51].mxu0  ;;  %v7219_v60 = vpop.f32.mrb[51].mxu1  ;;  %v5153_v56 = vadd.f32 %v8405_v43, %v5152_v52  ;;  %v5659_v26 = vadd.f32 %v8244_v54, %v5658_v50 }
 0x85a   :  { %7677 = vpow2.f32 %v6513_v51  ;;  %v5669_v13 = vadd.f32 %v6499_v47, %v5580_v55 }
 0x85b   :  { %7679 = vpow2.f32 %v6496_v42 }
 0x85c   :  { %v6514_v4 = vmul.f32 -1.442695, %v5669_v13 }
 0x85e   :  { %v7676_v44 = vpop.eup %7675  ;;  %7681 = vpow2.f32 %v6514_v4 }
 0x85f   :  { %v5400_v8 = vadd.f32 1.0, %v7676_v44 }
 0x861   :  { %7683 = vrcp.f32 %v5400_v8 }
 0x864   :  { %v7678_v9 = vpop.eup %7677 }
 0x865   :  { %v7680_v12 = vpop.eup %7679  ;;  %v5666_v2 = vadd.f32 1.0, %v7678_v9 }
 0x866   :  { %v5407_v14 = vadd.f32 1.0, %v7680_v12 }
 0x867   :  { %7685 = vrcp.f32 %v5666_v2 }
 0x868   :  { %v7682_v16 = vpop.eup %7681  ;;  %7687 = vrcp.f32 %v5407_v14 }
 0x869   :  { %v5673_v61 = vadd.f32 1.0, %v7682_v16 }
 0x86b   :  { %v7684_v22 = vpop.eup %7683 }
 0x86c   :  { %v5410_v19 = vmul.f32 %v7684_v22, %v5393_v18 }
 0x86e   :  { %v5411_v24 = vadd.f32 %v5410_v19, %v5153_v56 }
 0x870   :  { %7689 = vtanh.f32 %v5411_v24 }
 0x871   :  { %v7686_v27 = vpop.eup %7685  ;;  %7691 = vrcp.f32 %v5673_v61 }
 0x872   :  { %v5676_v29 = vmul.f32 %v7686_v27, %v5659_v26  ;;  %v7688_v40 = vpop.eup %7687 }
 0x873   :  { %v5413_v32 = vsub.f32 1.0, %v7688_v40  ;;  %v5415_v34 = vmul.f32 %v7688_v40, %v8495_v33 }
 0x874   :  { %v5677_v31 = vadd.f32 %v6500_v17, %v5676_v29 }
 0x876   :  { %7693 = vtanh.f32 %v5677_v31 }
 0x87a   :  { %v7690_v46 = vpop.eup %7689 }
 0x87b   :  { %v5414_v48 = vmul.f32 %v7690_v46, %v5413_v32  ;;  %v7692_v20 = vpop.eup %7691 }
 0x87c   :  { %v5679_v52 = vsub.f32 1.0, %v7692_v20  ;;  %v5681_v1 = vmul.f32 %v7692_v20, %v8503_v38 }
 0x87d   :  { %v5416_v25 = vadd.f32 %v5415_v34, %v5414_v48 }
 0x87f   :  { %6497 = vst.msk [vmem:[%s8618_s7 + $0xc] sm:$0x3] %vm30_vm0, %v5416_v25 }
 0x880   :  { %v7694_v54 = vpop.eup %7693 }
 0x881   :  { %v5680_v63 = vmul.f32 %v7694_v54, %v5679_v52 }
 0x883   :  { %v5682_v23 = vadd.f32 %v5681_v1, %v5680_v63 }
 0x885   :  { %7225 = vmatmul.mubr.msk.f32.vlgmr.msra.gmra.mrb[52].mxu0 %vm49_vm2, %v5682_v23  ;;  %6186 = vst.msk [vmem:[#allocation2] sm:$0x3] %vm30_vm0, %v5682_v23  ;;  %7232 = vmatmul.mubr.msk.f32.vlgmr.msra.gmra.mrb[52].mxu1 %vm49_vm2, %v5682_v23 }
 0x886   :  { %7468 = vmatpush3.bf16.msra.mxu0 %v8271_v41  ;;  %7238 = vmatprep.mubr.msk.f32.mxu0 %vm7706_vm1, %v7707_v3 }
 0x887   :  { %7469 = vmatprep.subr.bf16.mxu0 %v7705_v0  ;;  %7474 = vmatpush3.bf16.msra.mxu1 %v8281_v45 }
 0x888   :  { %7252 = vmatprep.mubr.msk.f32.mxu1 %vm7706_vm1, %v7707_v3  ;;  %7475 = vmatprep.subr.bf16.mxu1 %v7705_v0 }
 0x889   :  { %7239 = vmatmul.mubr.msk.f32.vlgmr.msra.gmra.mrb[54].mxu0 %vm49_vm2, %v5682_v23 }
 0x88a   :  { %7471 = vmatpush3.bf16.msra.mxu0 %v8290_v15  ;;  %7245 = vmatprep.mubr.msk.f32.mxu0 %vm7706_vm1, %v7707_v3 }
 0x88d   :  { %7246 = vmatmul.mubr.msk.f32.vlgmr.msra.gmra.mrb[52].mxu0 %vm49_vm2, %v5416_v25  ;;  %7253 = vmatmul.mubr.msk.f32.vlgmr.msra.gmra.mrb[52].mxu1 %vm49_vm2, %v5416_v25 }
 0x88e   :  { %7477 = vmatpush3.bf16.msra.mxu1 %v8316_v6  ;;  %7259 = vmatprep.mubr.msk.f32.mxu1 %vm7706_vm1, %v7707_v3 }
 0x891   :  { %7260 = vmatmul.mubr.msk.f32.vlgmr.msra.gmra.mrb[54].mxu1 %vm49_vm2, %v5416_v25 }
 0x95c   :  { %v5919_v41 = vpop.f32.mrb[54].mxu0 }
 0x95d   :  { %v7240_v0 = vpop.f32.mrb[55].mxu0 }
 0x960   :  { %v6001_v45 = vpop.f32.mrb[52].mxu0  ;;  %v6080_v33 = vpop.f32.mrb[52].mxu1 }
 0x961   :  { %v7507_v15 = vadd.f32 %v8377_v11, %v6001_v45  ;;  %v7247_v38 = vpop.f32.mrb[53].mxu0  ;;  %v7254_v28 = vpop.f32.mrb[53].mxu1  ;;  %v7509_v53 = vadd.f32 %v8385_v21, %v6080_v33  ;;  %v5920_v11 = vadd.f32 %v8405_v43, %v5919_v41 }
 0x963   :  { %v6539_v37 = vmul.f32 -1.442695, %v7507_v15  ;;  %v6540_v6 = vmul.f32 -1.442695, %v7509_v53 }
 0x964   :  { %v6159_v39 = vpop.f32.mrb[54].mxu1 }
 0x965   :  { %7695 = vpow2.f32 %v6539_v37  ;;  %v7261_v58 = vpop.f32.mrb[55].mxu1  ;;  %v6160_v57 = vadd.f32 %v8400_v35, %v6159_v39 }
 0x966   :  { %7697 = vpow2.f32 %v6540_v6 }
 0x96f   :  { %v7696_v5 = vpop.eup %7695 }
 0x970   :  { %v6167_v3 = vadd.f32 1.0, %v7696_v5  ;;  %v7698_v7 = vpop.eup %7697 }
 0x971   :  { %v6174_v10 = vadd.f32 1.0, %v7698_v7 }
 0x972   :  { %7699 = vrcp.f32 %v6167_v3 }
 0x973   :  { %7701 = vrcp.f32 %v6174_v10 }
 0x97c   :  { %v7700_v36 = vpop.eup %7699 }
 0x97d   :  { %v6177_v62 = vmul.f32 %v7700_v36, %v6160_v57  ;;  %v7702_v21 = vpop.eup %7701 }
 0x97e   :  { %v6180_v42 = vsub.f32 1.0, %v7702_v21  ;;  %v6182_v49 = vmul.f32 %v7702_v21, %v5416_v25 }
 0x97f   :  { %v6178_v30 = vadd.f32 %v6177_v62, %v5920_v11 }
 0x981   :  { %7703 = vtanh.f32 %v6178_v30 }
 0x98b   :  { %v7704_v47 = vpop.eup %7703 }
 0x98c   :  { %v6181_v50 = vmul.f32 %v7704_v47, %v6180_v42 }
 0x98e   :  { %v6183_v51 = vadd.f32 %v6182_v49, %v6181_v50 }
 0x990   :  { %6541 = vst.msk [vmem:[%s8618_s7 + $0xe] sm:$0x3] %vm30_vm0, %v6183_v51  ;;  %6187 = vst.msk [vmem:[#allocation3] sm:$0x3] %vm30_vm0, %v6183_v51 }

</bundles_post_ra>
